<compile_context>
chip_gen: v6e
topology: v6e:2x2x1
jax: 0.10.0
libtpu: 0.0.40
codegen_flags: <defaults>
</compile_context>

<pallas_src>
import math
import functools

import jax
import jax.numpy as jnp
from jax import lax
from jax.experimental import pallas as pl
from jax.experimental.pallas import tpu as pltpu


# ------------------------------ spec helpers ------------------------------- #

def _full_spec(shape):
    """Whole-array block; same block (0,...,0) for every grid step."""
    n = len(shape)
    return pl.BlockSpec(shape, lambda *args, _n=n: (0,) * _n)


def _layer_weight_spec(shape):
    """Stacked per-layer weight: block = one layer slice, indexed by the layer
    grid axis (second grid dim)."""
    nd = len(shape) - 1
    return pl.BlockSpec((1,) + tuple(shape[1:]),
                        lambda s, l, _nd=nd: (l,) + (0,) * _nd)


def _pick_seq_block(LB, Tt, max_rows=512):
    """Largest divisor of LB whose row count Bblk*Tt stays within max_rows.
    Fills MXU rows / makes the output store lane-dense.  At production sizes
    LB//Bblk >= 2, so the leading 'parallel' axis also feeds both v7x TCs."""
    best = 1
    for d in range(1, LB + 1):
        if LB % d == 0 and d * Tt <= max_rows:
            best = d
    return best


def _pick_vocab_tile(V, pref=2048):
    """Vocab tile: full V when small, else a multiple-of-128 divisor <= pref."""
    if V <= pref:
        return V
    for t in range(pref, 127, -128):
        if V % t == 0:
            return t
    return V


# ----------------------------- encoder fusion ------------------------------ #

def _encoder_fuse_kernel(detr_ref, djw_ref, djb_ref,
                         qenc_ref, bjw_ref, bjb_ref,
                         emb_ref, aiw_ref, aib_ref,
                         prior_ref, rpw_ref, rpb_ref, rtok_ref,
                         detr_out_ref, lv_out_ref, tgt_out_ref,
                         rel_out_ref, fused_out_ref, *, n_vl_rows):
    # detr_joiner
    detr = jnp.dot(detr_ref[...], djw_ref[...],
                   preferred_element_type=jnp.float32) + djb_ref[...]
    detr_out_ref[...] = detr.astype(detr_out_ref.dtype)
    # bert_joiner
    lv = jnp.dot(qenc_ref[...], bjw_ref[...],
                 preferred_element_type=jnp.float32) + bjb_ref[...]
    lv_out_ref[...] = lv.astype(lv_out_ref.dtype)
    # answer input embedding transform
    tgt = jnp.dot(emb_ref[...], aiw_ref[...],
                  preferred_element_type=jnp.float32) + aib_ref[...]
    tgt_out_ref[...] = tgt.astype(tgt_out_ref.dtype)

    # relevance predictor + prior add + softmax conditioning on last detr layer
    Md = detr.shape[0]
    vl = detr[Md - n_vl_rows:, :]                       # (B*Tv, D) static slice
    lg = (jnp.dot(vl, rpw_ref[...], preferred_element_type=jnp.float32)
          + rpb_ref[...] + prior_ref[...])              # (B*Tv, 2)
    rel_out_ref[...] = lg.astype(rel_out_ref.dtype)
    m = jnp.max(lg, axis=-1, keepdims=True)
    e = jnp.exp(lg - m)
    p = e / jnp.sum(e, axis=-1, keepdims=True)          # exact fp32 softmax
    fused = vl + jnp.dot(p, rtok_ref[...], preferred_element_type=jnp.float32)
    fused_out_ref[...] = fused.astype(fused_out_ref.dtype)


def encoder_fuse(detr_flat, djw, djb, qenc_flat, bjw, bjb, emb_flat, aiw, aib,
                 prior, rpw, rpb, rtok, *, n_vl_rows):
    D = djw.shape[1]
    R = prior.shape[1]
    out_shape = (
        jax.ShapeDtypeStruct((detr_flat.shape[0], D), jnp.float32),   # joined detr_hs
        jax.ShapeDtypeStruct((qenc_flat.shape[0], D), jnp.float32),   # lv_hs
        jax.ShapeDtypeStruct((emb_flat.shape[0], D), jnp.float32),    # target
        jax.ShapeDtypeStruct((n_vl_rows, R), jnp.float32),            # pred_relevance_logits
        jax.ShapeDtypeStruct((n_vl_rows, D), jnp.float32),            # relevance-conditioned vl_hs
    )
    args = (detr_flat, djw, djb, qenc_flat, bjw, bjb, emb_flat, aiw, aib,
            prior, rpw, rpb, rtok)
    return pl.pallas_call(
        functools.partial(_encoder_fuse_kernel, n_vl_rows=n_vl_rows),
        out_shape=out_shape,
        grid=(1,),
        in_specs=[_full_spec(a.shape) for a in args],
        out_specs=tuple(_full_spec(s.shape) for s in out_shape),
    )(*args)


# -------------------------- fused decoder stack ----------------------------- #

_DEC_WEIGHT_NAMES = ('sa_wqkv', 'sa_bqkv', 'sa_wo', 'sa_bo',
                     'ca_wq', 'ca_bq', 'ca_wkv', 'ca_bkv', 'ca_wo', 'ca_bo',
                     'w1', 'b1', 'w2', 'b2', 'ln_g', 'ln_b')


def _decoder_stack_kernel(tgt_ref, mem_ref,
                          sa_wqkv, sa_bqkv, sa_wo, sa_bo,
                          ca_wq, ca_bq, ca_wkv, ca_bkv, ca_wo, ca_bo,
                          w1, b1, w2, b2, lng, lnb,
                          o_ref, *, nheads, eps):
    layer_id = pl.program_id(1)

    # At the first layer, seed the resident activation block from the target.
    @pl.when(layer_id == 0)
    def _():
        o_ref[...] = tgt_ref[...]

    x3 = o_ref[...].astype(jnp.float32)          # (Bblk, Tt, D) resident activation
    mem3 = mem_ref[...].astype(jnp.float32)      # (Bblk, Tm, D)
    Bblk, Tt, D = x3.shape
    Tm = mem3.shape[1]
    H = nheads
    dh = D // H
    scale = 1.0 / math.sqrt(dh)

    xf = x3.reshape(Bblk * Tt, D)
    memf = mem3.reshape(Bblk * Tm, D)

    # causal additive mask generated in-kernel (no HBM input / DMA)
    row = lax.broadcasted_iota(jnp.int32, (Tt, Tt), 0)
    col = lax.broadcasted_iota(jnp.int32, (Tt, Tt), 1)
    causal = jnp.where(col > row, jnp.float32(-1e30), jnp.float32(0.0))

    def layer_norm(v, i):
        mu = jnp.mean(v, axis=-1, keepdims=True)
        vc = v - mu
        var = jnp.mean(vc * vc, axis=-1, keepdims=True)
        return vc * lax.rsqrt(var + eps) * lng[0, i] + lnb[0, i]

    def heads_attend(q, k, v, Tq, Tk, mask):
        # q: (Bblk*Tq, D), k/v: (Bblk*Tk, D) -> (Bblk*Tq, D)
        outs = []
        for h in range(H):                        # static unroll; per-head only here
            qh = q[:, h * dh:(h + 1) * dh].reshape(Bblk, Tq, dh)
            kh = k[:, h * dh:(h + 1) * dh].reshape(Bblk, Tk, dh)
            vh = v[:, h * dh:(h + 1) * dh].reshape(Bblk, Tk, dh)
            s = jnp.einsum('bqd,bkd->bqk', qh, kh,
                           preferred_element_type=jnp.float32) * scale
            if mask is not None:
                s = s + mask
            s = s - jnp.max(s, axis=-1, keepdims=True)
            e = jnp.exp(s)
            p = e * pl.reciprocal(jnp.sum(e, axis=-1, keepdims=True), approx=True)
            outs.append(jnp.einsum('bqk,bkd->bqd', p, vh,
                                   preferred_element_type=jnp.float32))
        return jnp.concatenate(outs, axis=-1).reshape(Bblk * Tq, D)

    # ---- self-attention: fused QKV projection, single output projection ----
    qkv = jnp.dot(xf, sa_wqkv[0], preferred_element_type=jnp.float32) + sa_bqkv[0]
    q, k, v = qkv[:, :D], qkv[:, D:2 * D], qkv[:, 2 * D:]
    sa = heads_attend(q, k, v, Tt, Tt, causal)
    sa = jnp.dot(sa, sa_wo[0], preferred_element_type=jnp.float32) + sa_bo[0]
    xf = layer_norm(xf + sa, 0)

    # ---- cross-attention: fused KV projection over memory ----
    q = jnp.dot(xf, ca_wq[0], preferred_element_type=jnp.float32) + ca_bq[0]
    kv = jnp.dot(memf, ca_wkv[0], preferred_element_type=jnp.float32) + ca_bkv[0]
    k, v = kv[:, :D], kv[:, D:]
    ca = heads_attend(q, k, v, Tt, Tm, None)
    ca = jnp.dot(ca, ca_wo[0], preferred_element_type=jnp.float32) + ca_bo[0]
    xf = layer_norm(xf + ca, 1)

    # ---- FFN (intermediate stays in VMEM) ----
    # TODO(synk): at production (D~768, dff~3072) tile the dff axis on v7x.
    h1 = jnp.maximum(jnp.dot(xf, w1[0], preferred_element_type=jnp.float32) + b1[0], 0.0)
    h2 = jnp.dot(h1, w2[0], preferred_element_type=jnp.float32) + b2[0]
    xf = layer_norm(xf + h2, 2)

    o_ref[...] = xf.reshape(Bblk, Tt, D).astype(o_ref.dtype)


def decoder_stack(tgt, mem, dec, nheads):
    """Whole nn.TransformerDecoder (post-norm, ReLU, eval-mode dropout) in one
    pallas_call.  tgt: (LB, Tt, D), mem: (LB, Tm, D)."""
    LB, Tt, D = tgt.shape
    Tm = mem.shape[1]
    NL = dec['w1'].shape[0]
    Bblk = _pick_seq_block(LB, Tt)
    weights = tuple(dec[n] for n in _DEC_WEIGHT_NAMES)

    in_specs = ([pl.BlockSpec((Bblk, Tt, D), lambda s, l: (s, 0, 0)),
                 pl.BlockSpec((Bblk, Tm, D), lambda s, l: (s, 0, 0))]
                + [_layer_weight_spec(w.shape) for w in weights])
    return pl.pallas_call(
        functools.partial(_decoder_stack_kernel, nheads=nheads, eps=1e-5),
        out_shape=jax.ShapeDtypeStruct((LB, Tt, D), tgt.dtype),
        grid=(LB // Bblk, NL),
        in_specs=in_specs,
        # same block index across the layer axis -> activation stays resident
        out_specs=pl.BlockSpec((Bblk, Tt, D), lambda s, l: (s, 0, 0)),
        compiler_params=pltpu.CompilerParams(
            dimension_semantics=("parallel", "arbitrary"),
            vmem_limit_bytes=32 * 1024 * 1024),
    )(tgt, mem, *weights)


# ------------------------------- answer head -------------------------------- #

def _answer_head_kernel(x_ref, ve_ref, w_ref, b_ref, o_ref):
    # answer-head transform of a vocab tile, then logits contraction; operand
    # kept transposed (contract last dims) so no XLU transpose is materialized.
    vp = jnp.dot(ve_ref[...], w_ref[...],
                 preferred_element_type=jnp.float32) + b_ref[...]        # (Vt, D)
    o_ref[...] = lax.dot_general(
        x_ref[...], vp,
        dimension_numbers=(((1,), (1,)), ((), ())),
        preferred_element_type=jnp.float32).astype(o_ref.dtype)


def answer_head(x, vocab_embed, w, b):
    # TODO(synk): build_answer_head source not provided; linear answer head assumed.
    M, D = x.shape
    V, bert_dim = vocab_embed.shape
    vt = _pick_vocab_tile(V)
    return pl.pallas_call(
        _answer_head_kernel,
        out_shape=jax.ShapeDtypeStruct((M, V), x.dtype),
        grid=(V // vt,),
        in_specs=[pl.BlockSpec((M, D), lambda v: (0, 0)),
                  pl.BlockSpec((vt, bert_dim), lambda v: (v, 0)),
                  pl.BlockSpec((bert_dim, D), lambda v: (0, 0)),
                  pl.BlockSpec((1, D), lambda v: (0, 0))],
        out_specs=pl.BlockSpec((M, vt), lambda v: (0, v)),
        compiler_params=pltpu.CompilerParams(dimension_semantics=("parallel",)),
    )(x, vocab_embed, w, b)


# -------------------------- model building blocks -------------------------- #

def positionalencoding1d(d_model, length):
    if d_model % 2 != 0:
        raise ValueError(f'Cannot use sin/cos positional encoding with odd dim (got dim={d_model})')
    position = jnp.arange(length, dtype=jnp.float32)[:, None]
    div_term = jnp.exp(jnp.arange(0, d_model, 2, dtype=jnp.float32) *
                       (-(math.log(10000.0) / d_model)))
    pe = jnp.zeros((length, d_model), jnp.float32)
    pe = pe.at[:, 0::2].set(jnp.sin(position * div_term))
    pe = pe.at[:, 1::2].set(jnp.cos(position * div_term))
    return pe


def decode_text(target, memory, params, cfg):
    L, B, Tm, D = memory.shape
    Tt = target.shape[2]
    if cfg['pos_enc']:
        target = target + params['pos_enc'][:, :Tt]
    tgt = target.reshape(L * B, Tt, D)
    mem = memory.reshape(L * B, Tm, D)
    x = decoder_stack(tgt, mem, params['dec'], cfg['nheads'])
    # drop the last position BEFORE the answer head (reference slices [:, :, :-1])
    x = x.reshape(L, B, Tt, D)[:, :, :Tt - 1]
    flat = x.reshape(L * B * (Tt - 1), D)
    V = params['vocab_embed'].shape[0]
    logits = answer_head(flat, params['vocab_embed'],
                         params['ans_head_w'], params['ans_head_b'])
    return logits.reshape(L, B, Tt - 1, V)


def gpv_forward(detr_hs, pred_relevance_logits, query_encodings, answer_token_ids, params, cfg):
    """GPV.forward with answer_token_ids provided (teacher-forced path), targets=None."""
    Ld, B, Tv, detr_dim = detr_hs.shape
    D = cfg['hidden_dim']
    _, Tl, bert_dim = query_encodings.shape
    Tt = answer_token_ids.shape[1]
    R = pred_relevance_logits.shape[2]
    outputs = {}

    # TODO(synk): create_detr / Bert backbones are external; their outputs arrive as inputs here.
    # TODO(synk): BertConnectionLayer (co_att_transformer) source not provided; treated as identity.

    # embedding lookup for the answer tokens (plain-JAX gather glue)
    embed = params['vocab_embed'][answer_token_ids]            # (B, Tt, bert_dim)

    detr_p, lv, target, pred_rel, fused = encoder_fuse(
        detr_hs.reshape(Ld * B * Tv, detr_dim),
        params['detr_joiner_w'], params['detr_joiner_b'],
        query_encodings.reshape(B * Tl, bert_dim),
        params['bert_joiner_w'], params['bert_joiner_b'],
        embed.reshape(B * Tt, bert_dim),
        params['ans_in_w'], params['ans_in_b'],
        pred_relevance_logits.reshape(B * Tv, R),
        params['rel_pred_w'], params['rel_pred_b'],
        params['relevance_tokens'],
        n_vl_rows=B * Tv)

    outputs['detr_hs'] = detr_p.reshape(Ld, B, Tv, D)
    outputs['pred_relevance_logits'] = pred_rel.reshape(B, Tv, R)
    # cfg.detr.aux_loss == False, so no aux outputs to update.

    if cfg['relevance_conditioning']:
        vl_hs = fused.reshape(1, B, Tv, D)
    else:
        vl_hs = detr_p[(Ld - 1) * B * Tv:].reshape(1, B, Tv, D)
    lv_hs = lv.reshape(1, B, Tl, D)

    memory = jnp.concatenate((vl_hs, lv_hs), axis=2)           # (1, B, Tv+Tl, D)
    L = memory.shape[0]

    target = target.reshape(B, Tt, D)
    target = jnp.broadcast_to(target[None], (L, B, Tt, D))

    outputs['answer_logits'] = decode_text(target, memory, params, cfg)
    return outputs


# ------------------------------- init / main ------------------------------- #

def init_params(cfg):
    D = cfg['hidden_dim']
    detr_dim = cfg['detr_dim']
    bert_dim = cfg['bert_dim']
    dff = cfg['dim_feedforward']
    V = cfg['vocab_size']
    NL = cfg['num_decoder_layers']

    keys = iter(jax.random.split(jax.random.PRNGKey(0), 1024))

    def rnd(shape, scale=0.05):
        return scale * jax.random.normal(next(keys), shape, jnp.float32)

    def dec_layer_params():
        # fused-projection layout: QKV packed as (D, 3D) [q | k | v], heads
        # contiguous (dh columns per head) inside each D block.
        return {'sa_wqkv': rnd((D, 3 * D)), 'sa_bqkv': rnd((1, 3 * D)),
                'sa_wo': rnd((D, D)), 'sa_bo': rnd((1, D)),
                'ca_wq': rnd((D, D)), 'ca_bq': rnd((1, D)),
                'ca_wkv': rnd((D, 2 * D)), 'ca_bkv': rnd((1, 2 * D)),
                'ca_wo': rnd((D, D)), 'ca_bo': rnd((1, D)),
                'w1': rnd((D, dff)), 'b1': rnd((1, dff)),
                'w2': rnd((dff, D)), 'b2': rnd((1, D)),
                'ln_g': jnp.ones((3, 1, D), jnp.float32),
                'ln_b': jnp.zeros((3, 1, D), jnp.float32)}

    layers = [dec_layer_params() for _ in range(NL)]
    dec = {k: jnp.stack([lp[k] for lp in layers], axis=0) for k in layers[0]}

    params = {
        'detr_joiner_w': rnd((detr_dim, D)), 'detr_joiner_b': rnd((1, D)),
        'bert_joiner_w': rnd((bert_dim, D)), 'bert_joiner_b': rnd((1, D)),
        'rel_pred_w': rnd((D, cfg['num_classes'] + 1)),
        'rel_pred_b': rnd((1, cfg['num_classes'] + 1)),
        'relevance_tokens': 0.1 * jax.random.normal(next(keys), (2, D), jnp.float32),
        'vocab_embed': rnd((V, bert_dim), scale=0.1),
        'ans_in_w': rnd((bert_dim, D)), 'ans_in_b': rnd((1, D)),
        'ans_head_w': rnd((bert_dim, D)), 'ans_head_b': rnd((1, D)),
        'dec': dec,
        'pos_enc': positionalencoding1d(D, cfg['max_pos_enc_len']).reshape(
            1, cfg['max_pos_enc_len'], D),
    }
    return params


if __name__ == "__main__":
    cfg = dict(
        hidden_dim=32,
        nheads=4,
        num_decoder_layers=2,
        dim_feedforward=2048,          # nn.TransformerDecoderLayer default
        detr_dim=64,
        bert_dim=64,
        num_classes=1,                 # relevance head outputs num_classes+1 == 2
        vocab_size=16,
        max_pos_enc_len=16,
        max_text_len=8,
        pos_enc=True,
        relevance_conditioning=True,
    )
    # synthetic vocab mirroring the module's special tokens (only needed for decode-loop path)
    vocab = ['__cls__', '__stop__', '__pad__', '__unk__'] + [f'w{i}' for i in range(cfg['vocab_size'] - 4)]
    word_to_idx = {w: i for i, w in enumerate(vocab)}

    params = init_params(cfg)

    # synthetic backbone outputs / inputs
    B, Tv, Tl, Tt, Ld = 2, 8, 8, cfg['max_text_len'], 2
    k = jax.random.PRNGKey(0)
    k1, k2, k3, k4 = jax.random.split(k, 4)
    detr_hs = jax.random.normal(k1, (Ld, B, Tv, cfg['detr_dim']), jnp.float32)   # detr decoder states
    pred_relevance_logits = jax.random.normal(k2, (B, Tv, cfg['num_classes'] + 1), jnp.float32)
    query_encodings = jax.random.normal(k3, (B, Tl, cfg['bert_dim']), jnp.float32)  # bert outputs
    answer_token_ids = jax.random.randint(k4, (B, Tt), 0, cfg['vocab_size'], jnp.int32)

    fwd = jax.jit(lambda a, b, c, d: gpv_forward(a, b, c, d, params, cfg))
    out = fwd(detr_hs, pred_relevance_logits, query_encodings, answer_token_ids)
    jax.block_until_ready(out)

    assert out['answer_logits'].shape == (1, B, Tt - 1, cfg['vocab_size'])
    assert out['pred_relevance_logits'].shape == (B, Tv, cfg['num_classes'] + 1)
    assert out['detr_hs'].shape == (Ld, B, Tv, cfg['hidden_dim'])
    assert all(bool(jnp.all(jnp.isfinite(v))) for v in
               (out['answer_logits'], out['pred_relevance_logits'], out['detr_hs']))
    print("KERNEL_OK")
</pallas_src>

<mosaic_0001>
module attributes {stable_mosaic.version = 11 : i64} {
  func.func @_encoder_fuse_kernel(%arg0: i32, %arg1: memref<32x64xf32, #tpu.memory_space<vmem>>, %arg2: memref<64x32xf32, #tpu.memory_space<vmem>>, %arg3: memref<1x32xf32, #tpu.memory_space<vmem>>, %arg4: memref<16x64xf32, #tpu.memory_space<vmem>>, %arg5: memref<64x32xf32, #tpu.memory_space<vmem>>, %arg6: memref<1x32xf32, #tpu.memory_space<vmem>>, %arg7: memref<16x64xf32, #tpu.memory_space<vmem>>, %arg8: memref<64x32xf32, #tpu.memory_space<vmem>>, %arg9: memref<1x32xf32, #tpu.memory_space<vmem>>, %arg10: memref<16x2xf32, #tpu.memory_space<vmem>>, %arg11: memref<32x2xf32, #tpu.memory_space<vmem>>, %arg12: memref<1x2xf32, #tpu.memory_space<vmem>>, %arg13: memref<2x32xf32, #tpu.memory_space<vmem>>, %arg14: memref<32x32xf32, #tpu.memory_space<vmem>>, %arg15: memref<16x32xf32, #tpu.memory_space<vmem>>, %arg16: memref<16x32xf32, #tpu.memory_space<vmem>>, %arg17: memref<16x2xf32, #tpu.memory_space<vmem>>, %arg18: memref<16x32xf32, #tpu.memory_space<vmem>>) attributes {dimension_semantics = [#tpu.dimension_semantics<arbitrary>], iteration_bounds = array<i64: 1>, scalar_prefetch = 0 : i64, scratch_operands = 0 : i64, tpu.core_type = #tpu.core_type<tc>, window_params = [{pipeline_mode = #tpu.pipeline_mode<synchronous>, transform_indices = @transform_0, window_bounds = array<i64: 32, 64>}, {pipeline_mode = #tpu.pipeline_mode<synchronous>, transform_indices = @transform_1, window_bounds = array<i64: 64, 32>}, {pipeline_mode = #tpu.pipeline_mode<synchronous>, transform_indices = @transform_2, window_bounds = array<i64: 1, 32>}, {pipeline_mode = #tpu.pipeline_mode<synchronous>, transform_indices = @transform_3, window_bounds = array<i64: 16, 64>}, {pipeline_mode = #tpu.pipeline_mode<synchronous>, transform_indices = @transform_4, window_bounds = array<i64: 64, 32>}, {pipeline_mode = #tpu.pipeline_mode<synchronous>, transform_indices = @transform_5, window_bounds = array<i64: 1, 32>}, {pipeline_mode = #tpu.pipeline_mode<synchronous>, transform_indices = @transform_6, window_bounds = array<i64: 16, 64>}, {pipeline_mode = #tpu.pipeline_mode<synchronous>, transform_indices = @transform_7, window_bounds = array<i64: 64, 32>}, {pipeline_mode = #tpu.pipeline_mode<synchronous>, transform_indices = @transform_8, window_bounds = array<i64: 1, 32>}, {pipeline_mode = #tpu.pipeline_mode<synchronous>, transform_indices = @transform_9, window_bounds = array<i64: 16, 2>}, {pipeline_mode = #tpu.pipeline_mode<synchronous>, transform_indices = @transform_10, window_bounds = array<i64: 32, 2>}, {pipeline_mode = #tpu.pipeline_mode<synchronous>, transform_indices = @transform_11, window_bounds = array<i64: 1, 2>}, {pipeline_mode = #tpu.pipeline_mode<synchronous>, transform_indices = @transform_12, window_bounds = array<i64: 2, 32>}, {pipeline_mode = #tpu.pipeline_mode<synchronous>, transform_indices = @transform_13, window_bounds = array<i64: 32, 32>}, {pipeline_mode = #tpu.pipeline_mode<synchronous>, transform_indices = @transform_14, window_bounds = array<i64: 16, 32>}, {pipeline_mode = #tpu.pipeline_mode<synchronous>, transform_indices = @transform_15, window_bounds = array<i64: 16, 32>}, {pipeline_mode = #tpu.pipeline_mode<synchronous>, transform_indices = @transform_16, window_bounds = array<i64: 16, 2>}, {pipeline_mode = #tpu.pipeline_mode<synchronous>, transform_indices = @transform_17, window_bounds = array<i64: 16, 32>}]} {
    %c0 = arith.constant 0 : index
    %c0_0 = arith.constant 0 : index
    %0 = vector.load %arg1[%c0, %c0_0] : memref<32x64xf32, #tpu.memory_space<vmem>>, vector<32x64xf32>
    %c0_1 = arith.constant 0 : index
    %c0_2 = arith.constant 0 : index
    %1 = vector.load %arg2[%c0_1, %c0_2] : memref<64x32xf32, #tpu.memory_space<vmem>>, vector<64x32xf32>
    %cst = arith.constant dense<0.000000e+00> : vector<32x32xf32>
    %2 = tpu.matmul %0, %1, %cst {dimension_numbers = #tpu.dot_dimension_numbers<[1], [0], [0], [1], [0, 0, 1, 1], [], []>} : vector<32x64xf32>, vector<64x32xf32>, vector<32x32xf32> -> vector<32x32xf32>
    %c0_3 = arith.constant 0 : index
    %c0_4 = arith.constant 0 : index
    %3 = vector.load %arg3[%c0_3, %c0_4] : memref<1x32xf32, #tpu.memory_space<vmem>>, vector<1x32xf32>
    %4 = vector.broadcast %3 : vector<1x32xf32> to vector<32x32xf32>
    %5 = arith.addf %2, %4 : vector<32x32xf32>
    %c0_5 = arith.constant 0 : index
    %c0_6 = arith.constant 0 : index
    %6 = vector.load %arg14[%c0_5, %c0_6] : memref<32x32xf32, #tpu.memory_space<vmem>>, vector<32x32xf32>
    tpu.vector_store %arg14[%c0_5, %c0_6], %5 {strides = array<i32>} : memref<32x32xf32, #tpu.memory_space<vmem>>, vector<32x32xf32>,
    %c0_7 = arith.constant 0 : index
    %c0_8 = arith.constant 0 : index
    %7 = vector.load %arg4[%c0_7, %c0_8] : memref<16x64xf32, #tpu.memory_space<vmem>>, vector<16x64xf32>
    %c0_9 = arith.constant 0 : index
    %c0_10 = arith.constant 0 : index
    %8 = vector.load %arg5[%c0_9, %c0_10] : memref<64x32xf32, #tpu.memory_space<vmem>>, vector<64x32xf32>
    %cst_11 = arith.constant dense<0.000000e+00> : vector<16x32xf32>
    %9 = tpu.matmul %7, %8, %cst_11 {dimension_numbers = #tpu.dot_dimension_numbers<[1], [0], [0], [1], [0, 0, 1, 1], [], []>} : vector<16x64xf32>, vector<64x32xf32>, vector<16x32xf32> -> vector<16x32xf32>
    %c0_12 = arith.constant 0 : index
    %c0_13 = arith.constant 0 : index
    %10 = vector.load %arg6[%c0_12, %c0_13] : memref<1x32xf32, #tpu.memory_space<vmem>>, vector<1x32xf32>
    %11 = vector.broadcast %10 : vector<1x32xf32> to vector<16x32xf32>
    %12 = arith.addf %9, %11 : vector<16x32xf32>
    %c0_14 = arith.constant 0 : index
    %c0_15 = arith.constant 0 : index
    %13 = vector.load %arg15[%c0_14, %c0_15] : memref<16x32xf32, #tpu.memory_space<vmem>>, vector<16x32xf32>
    tpu.vector_store %arg15[%c0_14, %c0_15], %12 {strides = array<i32>} : memref<16x32xf32, #tpu.memory_space<vmem>>, vector<16x32xf32>,
    %c0_16 = arith.constant 0 : index
    %c0_17 = arith.constant 0 : index
    %14 = vector.load %arg7[%c0_16, %c0_17] : memref<16x64xf32, #tpu.memory_space<vmem>>, vector<16x64xf32>
    %c0_18 = arith.constant 0 : index
    %c0_19 = arith.constant 0 : index
    %15 = vector.load %arg8[%c0_18, %c0_19] : memref<64x32xf32, #tpu.memory_space<vmem>>, vector<64x32xf32>
    %cst_20 = arith.constant dense<0.000000e+00> : vector<16x32xf32>
    %16 = tpu.matmul %14, %15, %cst_20 {dimension_numbers = #tpu.dot_dimension_numbers<[1], [0], [0], [1], [0, 0, 1, 1], [], []>} : vector<16x64xf32>, vector<64x32xf32>, vector<16x32xf32> -> vector<16x32xf32>
    %c0_21 = arith.constant 0 : index
    %c0_22 = arith.constant 0 : index
    %17 = vector.load %arg9[%c0_21, %c0_22] : memref<1x32xf32, #tpu.memory_space<vmem>>, vector<1x32xf32>
    %18 = vector.broadcast %17 : vector<1x32xf32> to vector<16x32xf32>
    %19 = arith.addf %16, %18 : vector<16x32xf32>
    %c0_23 = arith.constant 0 : index
    %c0_24 = arith.constant 0 : index
    %20 = vector.load %arg16[%c0_23, %c0_24] : memref<16x32xf32, #tpu.memory_space<vmem>>, vector<16x32xf32>
    tpu.vector_store %arg16[%c0_23, %c0_24], %19 {strides = array<i32>} : memref<16x32xf32, #tpu.memory_space<vmem>>, vector<16x32xf32>,
    %21 = vector.extract_strided_slice %5 {offsets = [16, 0], sizes = [16, 32], strides = [1, 1]} : vector<32x32xf32> to vector<16x32xf32>
    %c0_25 = arith.constant 0 : index
    %c0_26 = arith.constant 0 : index
    %22 = vector.load %arg11[%c0_25, %c0_26] : memref<32x2xf32, #tpu.memory_space<vmem>>, vector<32x2xf32>
    %cst_27 = arith.constant dense<0.000000e+00> : vector<16x2xf32>
    %23 = tpu.matmul %21, %22, %cst_27 {dimension_numbers = #tpu.dot_dimension_numbers<[1], [0], [0], [1], [0, 0, 1, 1], [], []>} : vector<16x32xf32>, vector<32x2xf32>, vector<16x2xf32> -> vector<16x2xf32>
    %c0_28 = arith.constant 0 : index
    %c0_29 = arith.constant 0 : index
    %24 = vector.load %arg12[%c0_28, %c0_29] : memref<1x2xf32, #tpu.memory_space<vmem>>, vector<1x2xf32>
    %25 = vector.broadcast %24 : vector<1x2xf32> to vector<16x2xf32>
    %26 = arith.addf %23, %25 : vector<16x2xf32>
    %c0_30 = arith.constant 0 : index
    %c0_31 = arith.constant 0 : index
    %27 = vector.load %arg10[%c0_30, %c0_31] : memref<16x2xf32, #tpu.memory_space<vmem>>, vector<16x2xf32>
    %28 = arith.addf %26, %27 : vector<16x2xf32>
    %c0_32 = arith.constant 0 : index
    %c0_33 = arith.constant 0 : index
    %29 = vector.load %arg17[%c0_32, %c0_33] : memref<16x2xf32, #tpu.memory_space<vmem>>, vector<16x2xf32>
    tpu.vector_store %arg17[%c0_32, %c0_33], %28 {strides = array<i32>} : memref<16x2xf32, #tpu.memory_space<vmem>>, vector<16x2xf32>,
    %cst_34 = arith.constant dense<0xFF800000> : vector<16xf32>
    %30 = vector.multi_reduction <maximumf>, %28, %cst_34 [1] : vector<16x2xf32> to vector<16xf32>
    %31 = vector.shape_cast %30 : vector<16xf32> to vector<16x1xf32>
    %32 = vector.broadcast %31 : vector<16x1xf32> to vector<16x2xf32>
    %33 = arith.subf %28, %32 : vector<16x2xf32>
    %34 = math.exp %33 : vector<16x2xf32>
    %cst_35 = arith.constant dense<0.000000e+00> : vector<16xf32>
    %35 = vector.multi_reduction <add>, %34, %cst_35 [1] : vector<16x2xf32> to vector<16xf32>
    %36 = vector.shape_cast %35 : vector<16xf32> to vector<16x1xf32>
    %37 = vector.broadcast %36 : vector<16x1xf32> to vector<16x2xf32>
    %38 = arith.divf %34, %37 : vector<16x2xf32>
    %c0_36 = arith.constant 0 : index
    %c0_37 = arith.constant 0 : index
    %39 = vector.load %arg13[%c0_36, %c0_37] : memref<2x32xf32, #tpu.memory_space<vmem>>, vector<2x32xf32>
    %cst_38 = arith.constant dense<0.000000e+00> : vector<16x32xf32>
    %40 = tpu.matmul %38, %39, %cst_38 {dimension_numbers = #tpu.dot_dimension_numbers<[1], [0], [0], [1], [0, 0, 1, 1], [], []>} : vector<16x2xf32>, vector<2x32xf32>, vector<16x32xf32> -> vector<16x32xf32>
    %41 = arith.addf %21, %40 : vector<16x32xf32>
    %c0_39 = arith.constant 0 : index
    %c0_40 = arith.constant 0 : index
    %42 = vector.load %arg18[%c0_39, %c0_40] : memref<16x32xf32, #tpu.memory_space<vmem>>, vector<16x32xf32>
    tpu.vector_store %arg18[%c0_39, %c0_40], %41 {strides = array<i32>} : memref<16x32xf32, #tpu.memory_space<vmem>>, vector<16x32xf32>,
    return
  }
  func.func @transform_0(%arg0: i32) -> (i32, i32) {
    %c0_i32 = arith.constant 0 : i32
    %c0_i32_0 = arith.constant 0 : i32
    %c0_i32_1 = arith.constant 0 : i32
    return %c0_i32, %c0_i32_0 : i32, i32
  }
  func.func @transform_1(%arg0: i32) -> (i32, i32) {
    %c0_i32 = arith.constant 0 : i32
    %c0_i32_0 = arith.constant 0 : i32
    %c0_i32_1 = arith.constant 0 : i32
    return %c0_i32, %c0_i32_0 : i32, i32
  }
  func.func @transform_2(%arg0: i32) -> (i32, i32) {
    %c0_i32 = arith.constant 0 : i32
    %c0_i32_0 = arith.constant 0 : i32
    %c0_i32_1 = arith.constant 0 : i32
    return %c0_i32, %c0_i32_0 : i32, i32
  }
  func.func @transform_3(%arg0: i32) -> (i32, i32) {
    %c0_i32 = arith.constant 0 : i32
    %c0_i32_0 = arith.constant 0 : i32
    %c0_i32_1 = arith.constant 0 : i32
    return %c0_i32, %c0_i32_0 : i32, i32
  }
  func.func @transform_4(%arg0: i32) -> (i32, i32) {
    %c0_i32 = arith.constant 0 : i32
    %c0_i32_0 = arith.constant 0 : i32
    %c0_i32_1 = arith.constant 0 : i32
    return %c0_i32, %c0_i32_0 : i32, i32
  }
  func.func @transform_5(%arg0: i32) -> (i32, i32) {
    %c0_i32 = arith.constant 0 : i32
    %c0_i32_0 = arith.constant 0 : i32
    %c0_i32_1 = arith.constant 0 : i32
    return %c0_i32, %c0_i32_0 : i32, i32
  }
  func.func @transform_6(%arg0: i32) -> (i32, i32) {
    %c0_i32 = arith.constant 0 : i32
    %c0_i32_0 = arith.constant 0 : i32
    %c0_i32_1 = arith.constant 0 : i32
    return %c0_i32, %c0_i32_0 : i32, i32
  }
  func.func @transform_7(%arg0: i32) -> (i32, i32) {
    %c0_i32 = arith.constant 0 : i32
    %c0_i32_0 = arith.constant 0 : i32
    %c0_i32_1 = arith.constant 0 : i32
    return %c0_i32, %c0_i32_0 : i32, i32
  }
  func.func @transform_8(%arg0: i32) -> (i32, i32) {
    %c0_i32 = arith.constant 0 : i32
    %c0_i32_0 = arith.constant 0 : i32
    %c0_i32_1 = arith.constant 0 : i32
    return %c0_i32, %c0_i32_0 : i32, i32
  }
  func.func @transform_9(%arg0: i32) -> (i32, i32) {
    %c0_i32 = arith.constant 0 : i32
    %c0_i32_0 = arith.constant 0 : i32
    %c0_i32_1 = arith.constant 0 : i32
    return %c0_i32, %c0_i32_0 : i32, i32
  }
  func.func @transform_10(%arg0: i32) -> (i32, i32) {
    %c0_i32 = arith.constant 0 : i32
    %c0_i32_0 = arith.constant 0 : i32
    %c0_i32_1 = arith.constant 0 : i32
    return %c0_i32, %c0_i32_0 : i32, i32
  }
  func.func @transform_11(%arg0: i32) -> (i32, i32) {
    %c0_i32 = arith.constant 0 : i32
    %c0_i32_0 = arith.constant 0 : i32
    %c0_i32_1 = arith.constant 0 : i32
    return %c0_i32, %c0_i32_0 : i32, i32
  }
  func.func @transform_12(%arg0: i32) -> (i32, i32) {
    %c0_i32 = arith.constant 0 : i32
    %c0_i32_0 = arith.constant 0 : i32
    %c0_i32_1 = arith.constant 0 : i32
    return %c0_i32, %c0_i32_0 : i32, i32
  }
  func.func @transform_13(%arg0: i32) -> (i32, i32) {
    %c0_i32 = arith.constant 0 : i32
    %c0_i32_0 = arith.constant 0 : i32
    %c0_i32_1 = arith.constant 0 : i32
    return %c0_i32, %c0_i32_0 : i32, i32
  }
  func.func @transform_14(%arg0: i32) -> (i32, i32) {
    %c0_i32 = arith.constant 0 : i32
    %c0_i32_0 = arith.constant 0 : i32
    %c0_i32_1 = arith.constant 0 : i32
    return %c0_i32, %c0_i32_0 : i32, i32
  }
  func.func @transform_15(%arg0: i32) -> (i32, i32) {
    %c0_i32 = arith.constant 0 : i32
    %c0_i32_0 = arith.constant 0 : i32
    %c0_i32_1 = arith.constant 0 : i32
    return %c0_i32, %c0_i32_0 : i32, i32
  }
  func.func @transform_16(%arg0: i32) -> (i32, i32) {
    %c0_i32 = arith.constant 0 : i32
    %c0_i32_0 = arith.constant 0 : i32
    %c0_i32_1 = arith.constant 0 : i32
    return %c0_i32, %c0_i32_0 : i32, i32
  }
  func.func @transform_17(%arg0: i32) -> (i32, i32) {
    %c0_i32 = arith.constant 0 : i32
    %c0_i32_0 = arith.constant 0 : i32
    %c0_i32_1 = arith.constant 0 : i32
    return %c0_i32, %c0_i32_0 : i32, i32
  }
}

module attributes {stable_mosaic.version = 11 : i64} {
  func.func @_answer_head_kernel(%arg0: i32, %arg1: memref<14x32xf32, #tpu.memory_space<vmem>>, %arg2: memref<16x64xf32, #tpu.memory_space<vmem>>, %arg3: memref<64x32xf32, #tpu.memory_space<vmem>>, %arg4: memref<1x32xf32, #tpu.memory_space<vmem>>, %arg5: memref<14x16xf32, #tpu.memory_space<vmem>>) attributes {dimension_semantics = [#tpu.dimension_semantics<parallel>], iteration_bounds = array<i64: 1>, scalar_prefetch = 0 : i64, scratch_operands = 0 : i64, tpu.core_type = #tpu.core_type<tc>, window_params = [{pipeline_mode = #tpu.pipeline_mode<synchronous>, transform_indices = @transform_0, window_bounds = array<i64: 14, 32>}, {transform_indices = @transform_1, window_bounds = array<i64: 16, 64>}, {pipeline_mode = #tpu.pipeline_mode<synchronous>, transform_indices = @transform_2, window_bounds = array<i64: 64, 32>}, {pipeline_mode = #tpu.pipeline_mode<synchronous>, transform_indices = @transform_3, window_bounds = array<i64: 1, 32>}, {transform_indices = @transform_4, window_bounds = array<i64: 14, 16>}]} {
    %c0 = arith.constant 0 : index
    %c0_0 = arith.constant 0 : index
    %0 = vector.load %arg2[%c0, %c0_0] : memref<16x64xf32, #tpu.memory_space<vmem>>, vector<16x64xf32>
    %c0_1 = arith.constant 0 : index
    %c0_2 = arith.constant 0 : index
    %1 = vector.load %arg3[%c0_1, %c0_2] : memref<64x32xf32, #tpu.memory_space<vmem>>, vector<64x32xf32>
    %cst = arith.constant dense<0.000000e+00> : vector<16x32xf32>
    %2 = tpu.matmul %0, %1, %cst {dimension_numbers = #tpu.dot_dimension_numbers<[1], [0], [0], [1], [0, 0, 1, 1], [], []>} : vector<16x64xf32>, vector<64x32xf32>, vector<16x32xf32> -> vector<16x32xf32>
    %c0_3 = arith.constant 0 : index
    %c0_4 = arith.constant 0 : index
    %3 = vector.load %arg4[%c0_3, %c0_4] : memref<1x32xf32, #tpu.memory_space<vmem>>, vector<1x32xf32>
    %4 = vector.broadcast %3 : vector<1x32xf32> to vector<16x32xf32>
    %5 = arith.addf %2, %4 : vector<16x32xf32>
    %c0_5 = arith.constant 0 : index
    %c0_6 = arith.constant 0 : index
    %6 = vector.load %arg1[%c0_5, %c0_6] : memref<14x32xf32, #tpu.memory_space<vmem>>, vector<14x32xf32>
    %cst_7 = arith.constant dense<0.000000e+00> : vector<14x16xf32>
    %7 = tpu.matmul %6, %5, %cst_7 {dimension_numbers = #tpu.dot_dimension_numbers<[1], [1], [0], [0], [0, 0, 1, 0], [], []>} : vector<14x32xf32>, vector<16x32xf32>, vector<14x16xf32> -> vector<14x16xf32>
    %c0_8 = arith.constant 0 : index
    %c0_9 = arith.constant 0 : index
    %8 = vector.load %arg5[%c0_8, %c0_9] : memref<14x16xf32, #tpu.memory_space<vmem>>, vector<14x16xf32>
    tpu.vector_store %arg5[%c0_8, %c0_9], %7 {strides = array<i32>} : memref<14x16xf32, #tpu.memory_space<vmem>>, vector<14x16xf32>,
    return
  }
  func.func @transform_0(%arg0: i32) -> (i32, i32) {
    %c0_i32 = arith.constant 0 : i32
    %c0_i32_0 = arith.constant 0 : i32
    %c0_i32_1 = arith.constant 0 : i32
    return %c0_i32, %c0_i32_0 : i32, i32
  }
  func.func @transform_1(%arg0: i32) -> (i32, i32) {
    %c0_i32 = arith.constant 0 : i32
    %c0_i32_0 = arith.constant 0 : i32
    return %arg0, %c0_i32 : i32, i32
  }
  func.func @transform_2(%arg0: i32) -> (i32, i32) {
    %c0_i32 = arith.constant 0 : i32
    %c0_i32_0 = arith.constant 0 : i32
    %c0_i32_1 = arith.constant 0 : i32
    return %c0_i32, %c0_i32_0 : i32, i32
  }
  func.func @transform_3(%arg0: i32) -> (i32, i32) {
    %c0_i32 = arith.constant 0 : i32
    %c0_i32_0 = arith.constant 0 : i32
    %c0_i32_1 = arith.constant 0 : i32
    return %c0_i32, %c0_i32_0 : i32, i32
  }
  func.func @transform_4(%arg0: i32) -> (i32, i32) {
    %c0_i32 = arith.constant 0 : i32
    %c0_i32_0 = arith.constant 0 : i32
    return %c0_i32, %arg0 : i32, i32
  }
}

module attributes {stable_mosaic.version = 11 : i64} {
  func.func @_decoder_stack_kernel(%arg0: i32, %arg1: i32, %arg2: memref<2x8x32xf32, #tpu.memory_space<vmem>>, %arg3: memref<2x16x32xf32, #tpu.memory_space<vmem>>, %arg4: memref<1x32x96xf32, #tpu.memory_space<vmem>>, %arg5: memref<1x1x96xf32, #tpu.memory_space<vmem>>, %arg6: memref<1x32x32xf32, #tpu.memory_space<vmem>>, %arg7: memref<1x1x32xf32, #tpu.memory_space<vmem>>, %arg8: memref<1x32x32xf32, #tpu.memory_space<vmem>>, %arg9: memref<1x1x32xf32, #tpu.memory_space<vmem>>, %arg10: memref<1x32x64xf32, #tpu.memory_space<vmem>>, %arg11: memref<1x1x64xf32, #tpu.memory_space<vmem>>, %arg12: memref<1x32x32xf32, #tpu.memory_space<vmem>>, %arg13: memref<1x1x32xf32, #tpu.memory_space<vmem>>, %arg14: memref<1x32x2048xf32, #tpu.memory_space<vmem>>, %arg15: memref<1x1x2048xf32, #tpu.memory_space<vmem>>, %arg16: memref<1x2048x32xf32, #tpu.memory_space<vmem>>, %arg17: memref<1x1x32xf32, #tpu.memory_space<vmem>>, %arg18: memref<1x3x1x32xf32, #tpu.memory_space<vmem>>, %arg19: memref<1x3x1x32xf32, #tpu.memory_space<vmem>>, %arg20: memref<2x8x32xf32, #tpu.memory_space<vmem>>) attributes {dimension_semantics = [#tpu.dimension_semantics<parallel>, #tpu.dimension_semantics<arbitrary>], iteration_bounds = array<i64: 1, 2>, scalar_prefetch = 0 : i64, scratch_operands = 0 : i64, tpu.core_type = #tpu.core_type<tc>, window_params = [{transform_indices = @transform_0, window_bounds = array<i64: 2, 8, 32>}, {transform_indices = @transform_1, window_bounds = array<i64: 2, 16, 32>}, {transform_indices = @transform_2, window_bounds = array<i64: 1, 32, 96>}, {transform_indices = @transform_3, window_bounds = array<i64: 1, 1, 96>}, {transform_indices = @transform_4, window_bounds = array<i64: 1, 32, 32>}, {transform_indices = @transform_5, window_bounds = array<i64: 1, 1, 32>}, {transform_indices = @transform_6, window_bounds = array<i64: 1, 32, 32>}, {transform_indices = @transform_7, window_bounds = array<i64: 1, 1, 32>}, {transform_indices = @transform_8, window_bounds = array<i64: 1, 32, 64>}, {transform_indices = @transform_9, window_bounds = array<i64: 1, 1, 64>}, {transform_indices = @transform_10, window_bounds = array<i64: 1, 32, 32>}, {transform_indices = @transform_11, window_bounds = array<i64: 1, 1, 32>}, {transform_indices = @transform_12, window_bounds = array<i64: 1, 32, 2048>}, {transform_indices = @transform_13, window_bounds = array<i64: 1, 1, 2048>}, {transform_indices = @transform_14, window_bounds = array<i64: 1, 2048, 32>}, {transform_indices = @transform_15, window_bounds = array<i64: 1, 1, 32>}, {transform_indices = @transform_16, window_bounds = array<i64: 1, 3, 1, 32>}, {transform_indices = @transform_17, window_bounds = array<i64: 1, 3, 1, 32>}, {transform_indices = @transform_18, window_bounds = array<i64: 2, 8, 32>}]} {
    %c0_i32 = arith.constant 0 : i32
    %0 = arith.cmpi eq, %arg1, %c0_i32 : i32
    %1 = arith.extui %0 : i1 to i32
    %c0_i32_0 = arith.constant 0 : i32
    %2 = arith.cmpi ne, %1, %c0_i32_0 : i32
    scf.if %2 {
      %c0_137 = arith.constant 0 : index
      %c0_138 = arith.constant 0 : index
      %c0_139 = arith.constant 0 : index
      %322 = vector.load %arg2[%c0_137, %c0_138, %c0_139] : memref<2x8x32xf32, #tpu.memory_space<vmem>>, vector<2x8x32xf32>
      %c0_140 = arith.constant 0 : index
      %c0_141 = arith.constant 0 : index
      %c0_142 = arith.constant 0 : index
      %323 = vector.load %arg20[%c0_140, %c0_141, %c0_142] : memref<2x8x32xf32, #tpu.memory_space<vmem>>, vector<2x8x32xf32>
      tpu.vector_store %arg20[%c0_140, %c0_141, %c0_142], %322 {strides = array<i32>} : memref<2x8x32xf32, #tpu.memory_space<vmem>>, vector<2x8x32xf32>,
    } else {
    }
    %c0 = arith.constant 0 : index
    %c0_1 = arith.constant 0 : index
    %c0_2 = arith.constant 0 : index
    %3 = vector.load %arg20[%c0, %c0_1, %c0_2] : memref<2x8x32xf32, #tpu.memory_space<vmem>>, vector<2x8x32xf32>
    %c0_3 = arith.constant 0 : index
    %c0_4 = arith.constant 0 : index
    %c0_5 = arith.constant 0 : index
    %4 = vector.load %arg3[%c0_3, %c0_4, %c0_5] : memref<2x16x32xf32, #tpu.memory_space<vmem>>, vector<2x16x32xf32>
    %5 = vector.shape_cast %3 : vector<2x8x32xf32> to vector<16x32xf32>
    %6 = vector.shape_cast %4 : vector<2x16x32xf32> to vector<32x32xf32>
    %7 = tpu.iota {dimensions = array<i32: 0>} : vector<8x8xi32>
    %8 = tpu.iota {dimensions = array<i32: 1>} : vector<8x8xi32>
    %9 = arith.cmpi sgt, %8, %7 : vector<8x8xi32>
    %cst = arith.constant -1.000000e+30 : f32
    %cst_6 = arith.constant 0.000000e+00 : f32
    %10 = vector.broadcast %cst : f32 to vector<8x8xf32>
    %11 = vector.broadcast %cst_6 : f32 to vector<8x8xf32>
    %12 = arith.select %9, %10, %11 : vector<8x8xi1>, vector<8x8xf32>
    %c0_7 = arith.constant 0 : index
    %c0_8 = arith.constant 0 : index
    %c0_9 = arith.constant 0 : index
    %13 = vector.load %arg4[%c0_7, %c0_8, %c0_9] : memref<1x32x96xf32, #tpu.memory_space<vmem>>, vector<1x32x96xf32>
    %14 = vector.shape_cast %13 : vector<1x32x96xf32> to vector<32x96xf32>
    %cst_10 = arith.constant dense<0.000000e+00> : vector<16x96xf32>
    %15 = tpu.matmul %5, %14, %cst_10 {dimension_numbers = #tpu.dot_dimension_numbers<[1], [0], [0], [1], [0, 0, 1, 1], [], []>} : vector<16x32xf32>, vector<32x96xf32>, vector<16x96xf32> -> vector<16x96xf32>
    %c0_11 = arith.constant 0 : index
    %c0_12 = arith.constant 0 : index
    %c0_13 = arith.constant 0 : index
    %16 = vector.load %arg5[%c0_11, %c0_12, %c0_13] : memref<1x1x96xf32, #tpu.memory_space<vmem>>, vector<1x1x96xf32>
    %17 = vector.shape_cast %16 : vector<1x1x96xf32> to vector<1x96xf32>
    %18 = vector.broadcast %17 : vector<1x96xf32> to vector<16x96xf32>
    %19 = arith.addf %15, %18 : vector<16x96xf32>
    %20 = vector.extract_strided_slice %19 {offsets = [0, 0], sizes = [16, 32], strides = [1, 1]} : vector<16x96xf32> to vector<16x32xf32>
    %21 = vector.extract_strided_slice %19 {offsets = [0, 32], sizes = [16, 32], strides = [1, 1]} : vector<16x96xf32> to vector<16x32xf32>
    %22 = vector.extract_strided_slice %19 {offsets = [0, 64], sizes = [16, 32], strides = [1, 1]} : vector<16x96xf32> to vector<16x32xf32>
    %23 = vector.extract_strided_slice %20 {offsets = [0, 0], sizes = [16, 8], strides = [1, 1]} : vector<16x32xf32> to vector<16x8xf32>
    %24 = vector.shape_cast %23 : vector<16x8xf32> to vector<2x8x8xf32>
    %25 = vector.extract_strided_slice %21 {offsets = [0, 0], sizes = [16, 8], strides = [1, 1]} : vector<16x32xf32> to vector<16x8xf32>
    %26 = vector.shape_cast %25 : vector<16x8xf32> to vector<2x8x8xf32>
    %27 = vector.extract_strided_slice %22 {offsets = [0, 0], sizes = [16, 8], strides = [1, 1]} : vector<16x32xf32> to vector<16x8xf32>
    %28 = vector.shape_cast %27 : vector<16x8xf32> to vector<2x8x8xf32>
    "tpu.trace_start"() <{level = 10 : i32, message = "bqd,bkd->bqk"}> : () -> ()
    %cst_14 = arith.constant dense<0.000000e+00> : vector<2x8x8xf32>
    %29 = tpu.matmul %24, %26, %cst_14 {dimension_numbers = #tpu.dot_dimension_numbers<[2], [2], [1], [1], [0, 0, 0, 1, 1, 1], [0], [0]>} : vector<2x8x8xf32>, vector<2x8x8xf32>, vector<2x8x8xf32> -> vector<2x8x8xf32>
    "tpu.trace_stop"() : () -> ()
    %cst_15 = arith.constant 0.353553385 : f32
    %30 = vector.broadcast %cst_15 : f32 to vector<2x8x8xf32>
    %31 = arith.mulf %29, %30 : vector<2x8x8xf32>
    %32 = vector.shape_cast %12 : vector<8x8xf32> to vector<1x8x8xf32>
    %33 = vector.broadcast %32 : vector<1x8x8xf32> to vector<2x8x8xf32>
    %34 = arith.addf %31, %33 : vector<2x8x8xf32>
    %cst_16 = arith.constant dense<0xFF800000> : vector<2x8xf32>
    %35 = vector.multi_reduction <maximumf>, %34, %cst_16 [2] : vector<2x8x8xf32> to vector<2x8xf32>
    %36 = vector.shape_cast %35 : vector<2x8xf32> to vector<2x8x1xf32>
    %37 = vector.broadcast %36 : vector<2x8x1xf32> to vector<2x8x8xf32>
    %38 = arith.subf %34, %37 : vector<2x8x8xf32>
    %39 = math.exp %38 : vector<2x8x8xf32>
    %cst_17 = arith.constant dense<0.000000e+00> : vector<2x8xf32>
    %40 = vector.multi_reduction <add>, %39, %cst_17 [2] : vector<2x8x8xf32> to vector<2x8xf32>
    %41 = vector.shape_cast %40 : vector<2x8xf32> to vector<2x8x1xf32>
    %42 = tpu.reciprocal %41 {approx = true} : vector<2x8x1xf32> -> vector<2x8x1xf32>
    %43 = vector.broadcast %42 : vector<2x8x1xf32> to vector<2x8x8xf32>
    %44 = arith.mulf %39, %43 : vector<2x8x8xf32>
    "tpu.trace_start"() <{level = 10 : i32, message = "bqk,bkd->bqd"}> : () -> ()
    %cst_18 = arith.constant dense<0.000000e+00> : vector<2x8x8xf32>
    %45 = tpu.matmul %44, %28, %cst_18 {dimension_numbers = #tpu.dot_dimension_numbers<[2], [1], [1], [2], [0, 0, 0, 1, 1, 2], [0], [0]>} : vector<2x8x8xf32>, vector<2x8x8xf32>, vector<2x8x8xf32> -> vector<2x8x8xf32>
    "tpu.trace_stop"() : () -> ()
    %46 = vector.extract_strided_slice %20 {offsets = [0, 8], sizes = [16, 8], strides = [1, 1]} : vector<16x32xf32> to vector<16x8xf32>
    %47 = vector.shape_cast %46 : vector<16x8xf32> to vector<2x8x8xf32>
    %48 = vector.extract_strided_slice %21 {offsets = [0, 8], sizes = [16, 8], strides = [1, 1]} : vector<16x32xf32> to vector<16x8xf32>
    %49 = vector.shape_cast %48 : vector<16x8xf32> to vector<2x8x8xf32>
    %50 = vector.extract_strided_slice %22 {offsets = [0, 8], sizes = [16, 8], strides = [1, 1]} : vector<16x32xf32> to vector<16x8xf32>
    %51 = vector.shape_cast %50 : vector<16x8xf32> to vector<2x8x8xf32>
    "tpu.trace_start"() <{level = 10 : i32, message = "bqd,bkd->bqk"}> : () -> ()
    %cst_19 = arith.constant dense<0.000000e+00> : vector<2x8x8xf32>
    %52 = tpu.matmul %47, %49, %cst_19 {dimension_numbers = #tpu.dot_dimension_numbers<[2], [2], [1], [1], [0, 0, 0, 1, 1, 1], [0], [0]>} : vector<2x8x8xf32>, vector<2x8x8xf32>, vector<2x8x8xf32> -> vector<2x8x8xf32>
    "tpu.trace_stop"() : () -> ()
    %cst_20 = arith.constant 0.353553385 : f32
    %53 = vector.broadcast %cst_20 : f32 to vector<2x8x8xf32>
    %54 = arith.mulf %52, %53 : vector<2x8x8xf32>
    %55 = vector.shape_cast %12 : vector<8x8xf32> to vector<1x8x8xf32>
    %56 = vector.broadcast %55 : vector<1x8x8xf32> to vector<2x8x8xf32>
    %57 = arith.addf %54, %56 : vector<2x8x8xf32>
    %cst_21 = arith.constant dense<0xFF800000> : vector<2x8xf32>
    %58 = vector.multi_reduction <maximumf>, %57, %cst_21 [2] : vector<2x8x8xf32> to vector<2x8xf32>
    %59 = vector.shape_cast %58 : vector<2x8xf32> to vector<2x8x1xf32>
    %60 = vector.broadcast %59 : vector<2x8x1xf32> to vector<2x8x8xf32>
    %61 = arith.subf %57, %60 : vector<2x8x8xf32>
    %62 = math.exp %61 : vector<2x8x8xf32>
    %cst_22 = arith.constant dense<0.000000e+00> : vector<2x8xf32>
    %63 = vector.multi_reduction <add>, %62, %cst_22 [2] : vector<2x8x8xf32> to vector<2x8xf32>
    %64 = vector.shape_cast %63 : vector<2x8xf32> to vector<2x8x1xf32>
    %65 = tpu.reciprocal %64 {approx = true} : vector<2x8x1xf32> -> vector<2x8x1xf32>
    %66 = vector.broadcast %65 : vector<2x8x1xf32> to vector<2x8x8xf32>
    %67 = arith.mulf %62, %66 : vector<2x8x8xf32>
    "tpu.trace_start"() <{level = 10 : i32, message = "bqk,bkd->bqd"}> : () -> ()
    %cst_23 = arith.constant dense<0.000000e+00> : vector<2x8x8xf32>
    %68 = tpu.matmul %67, %51, %cst_23 {dimension_numbers = #tpu.dot_dimension_numbers<[2], [1], [1], [2], [0, 0, 0, 1, 1, 2], [0], [0]>} : vector<2x8x8xf32>, vector<2x8x8xf32>, vector<2x8x8xf32> -> vector<2x8x8xf32>
    "tpu.trace_stop"() : () -> ()
    %69 = vector.extract_strided_slice %20 {offsets = [0, 16], sizes = [16, 8], strides = [1, 1]} : vector<16x32xf32> to vector<16x8xf32>
    %70 = vector.shape_cast %69 : vector<16x8xf32> to vector<2x8x8xf32>
    %71 = vector.extract_strided_slice %21 {offsets = [0, 16], sizes = [16, 8], strides = [1, 1]} : vector<16x32xf32> to vector<16x8xf32>
    %72 = vector.shape_cast %71 : vector<16x8xf32> to vector<2x8x8xf32>
    %73 = vector.extract_strided_slice %22 {offsets = [0, 16], sizes = [16, 8], strides = [1, 1]} : vector<16x32xf32> to vector<16x8xf32>
    %74 = vector.shape_cast %73 : vector<16x8xf32> to vector<2x8x8xf32>
    "tpu.trace_start"() <{level = 10 : i32, message = "bqd,bkd->bqk"}> : () -> ()
    %cst_24 = arith.constant dense<0.000000e+00> : vector<2x8x8xf32>
    %75 = tpu.matmul %70, %72, %cst_24 {dimension_numbers = #tpu.dot_dimension_numbers<[2], [2], [1], [1], [0, 0, 0, 1, 1, 1], [0], [0]>} : vector<2x8x8xf32>, vector<2x8x8xf32>, vector<2x8x8xf32> -> vector<2x8x8xf32>
    "tpu.trace_stop"() : () -> ()
    %cst_25 = arith.constant 0.353553385 : f32
    %76 = vector.broadcast %cst_25 : f32 to vector<2x8x8xf32>
    %77 = arith.mulf %75, %76 : vector<2x8x8xf32>
    %78 = vector.shape_cast %12 : vector<8x8xf32> to vector<1x8x8xf32>
    %79 = vector.broadcast %78 : vector<1x8x8xf32> to vector<2x8x8xf32>
    %80 = arith.addf %77, %79 : vector<2x8x8xf32>
    %cst_26 = arith.constant dense<0xFF800000> : vector<2x8xf32>
    %81 = vector.multi_reduction <maximumf>, %80, %cst_26 [2] : vector<2x8x8xf32> to vector<2x8xf32>
    %82 = vector.shape_cast %81 : vector<2x8xf32> to vector<2x8x1xf32>
    %83 = vector.broadcast %82 : vector<2x8x1xf32> to vector<2x8x8xf32>
    %84 = arith.subf %80, %83 : vector<2x8x8xf32>
    %85 = math.exp %84 : vector<2x8x8xf32>
    %cst_27 = arith.constant dense<0.000000e+00> : vector<2x8xf32>
    %86 = vector.multi_reduction <add>, %85, %cst_27 [2] : vector<2x8x8xf32> to vector<2x8xf32>
    %87 = vector.shape_cast %86 : vector<2x8xf32> to vector<2x8x1xf32>
    %88 = tpu.reciprocal %87 {approx = true} : vector<2x8x1xf32> -> vector<2x8x1xf32>
    %89 = vector.broadcast %88 : vector<2x8x1xf32> to vector<2x8x8xf32>
    %90 = arith.mulf %85, %89 : vector<2x8x8xf32>
    "tpu.trace_start"() <{level = 10 : i32, message = "bqk,bkd->bqd"}> : () -> ()
    %cst_28 = arith.constant dense<0.000000e+00> : vector<2x8x8xf32>
    %91 = tpu.matmul %90, %74, %cst_28 {dimension_numbers = #tpu.dot_dimension_numbers<[2], [1], [1], [2], [0, 0, 0, 1, 1, 2], [0], [0]>} : vector<2x8x8xf32>, vector<2x8x8xf32>, vector<2x8x8xf32> -> vector<2x8x8xf32>
    "tpu.trace_stop"() : () -> ()
    %92 = vector.extract_strided_slice %20 {offsets = [0, 24], sizes = [16, 8], strides = [1, 1]} : vector<16x32xf32> to vector<16x8xf32>
    %93 = vector.shape_cast %92 : vector<16x8xf32> to vector<2x8x8xf32>
    %94 = vector.extract_strided_slice %21 {offsets = [0, 24], sizes = [16, 8], strides = [1, 1]} : vector<16x32xf32> to vector<16x8xf32>
    %95 = vector.shape_cast %94 : vector<16x8xf32> to vector<2x8x8xf32>
    %96 = vector.extract_strided_slice %22 {offsets = [0, 24], sizes = [16, 8], strides = [1, 1]} : vector<16x32xf32> to vector<16x8xf32>
    %97 = vector.shape_cast %96 : vector<16x8xf32> to vector<2x8x8xf32>
    "tpu.trace_start"() <{level = 10 : i32, message = "bqd,bkd->bqk"}> : () -> ()
    %cst_29 = arith.constant dense<0.000000e+00> : vector<2x8x8xf32>
    %98 = tpu.matmul %93, %95, %cst_29 {dimension_numbers = #tpu.dot_dimension_numbers<[2], [2], [1], [1], [0, 0, 0, 1, 1, 1], [0], [0]>} : vector<2x8x8xf32>, vector<2x8x8xf32>, vector<2x8x8xf32> -> vector<2x8x8xf32>
    "tpu.trace_stop"() : () -> ()
    %cst_30 = arith.constant 0.353553385 : f32
    %99 = vector.broadcast %cst_30 : f32 to vector<2x8x8xf32>
    %100 = arith.mulf %98, %99 : vector<2x8x8xf32>
    %101 = vector.shape_cast %12 : vector<8x8xf32> to vector<1x8x8xf32>
    %102 = vector.broadcast %101 : vector<1x8x8xf32> to vector<2x8x8xf32>
    %103 = arith.addf %100, %102 : vector<2x8x8xf32>
    %cst_31 = arith.constant dense<0xFF800000> : vector<2x8xf32>
    %104 = vector.multi_reduction <maximumf>, %103, %cst_31 [2] : vector<2x8x8xf32> to vector<2x8xf32>
    %105 = vector.shape_cast %104 : vector<2x8xf32> to vector<2x8x1xf32>
    %106 = vector.broadcast %105 : vector<2x8x1xf32> to vector<2x8x8xf32>
    %107 = arith.subf %103, %106 : vector<2x8x8xf32>
    %108 = math.exp %107 : vector<2x8x8xf32>
    %cst_32 = arith.constant dense<0.000000e+00> : vector<2x8xf32>
    %109 = vector.multi_reduction <add>, %108, %cst_32 [2] : vector<2x8x8xf32> to vector<2x8xf32>
    %110 = vector.shape_cast %109 : vector<2x8xf32> to vector<2x8x1xf32>
    %111 = tpu.reciprocal %110 {approx = true} : vector<2x8x1xf32> -> vector<2x8x1xf32>
    %112 = vector.broadcast %111 : vector<2x8x1xf32> to vector<2x8x8xf32>
    %113 = arith.mulf %108, %112 : vector<2x8x8xf32>
    "tpu.trace_start"() <{level = 10 : i32, message = "bqk,bkd->bqd"}> : () -> ()
    %cst_33 = arith.constant dense<0.000000e+00> : vector<2x8x8xf32>
    %114 = tpu.matmul %113, %97, %cst_33 {dimension_numbers = #tpu.dot_dimension_numbers<[2], [1], [1], [2], [0, 0, 0, 1, 1, 2], [0], [0]>} : vector<2x8x8xf32>, vector<2x8x8xf32>, vector<2x8x8xf32> -> vector<2x8x8xf32>
    "tpu.trace_stop"() : () -> ()
    %115 = tpu.concatenate %45, %68, %91, %114 in 2 : vector<2x8x8xf32>, vector<2x8x8xf32>, vector<2x8x8xf32>, vector<2x8x8xf32> -> vector<2x8x32xf32>
    %116 = vector.shape_cast %115 : vector<2x8x32xf32> to vector<16x32xf32>
    %c0_34 = arith.constant 0 : index
    %c0_35 = arith.constant 0 : index
    %c0_36 = arith.constant 0 : index
    %117 = vector.load %arg6[%c0_34, %c0_35, %c0_36] : memref<1x32x32xf32, #tpu.memory_space<vmem>>, vector<1x32x32xf32>
    %118 = vector.shape_cast %117 : vector<1x32x32xf32> to vector<32x32xf32>
    %cst_37 = arith.constant dense<0.000000e+00> : vector<16x32xf32>
    %119 = tpu.matmul %116, %118, %cst_37 {dimension_numbers = #tpu.dot_dimension_numbers<[1], [0], [0], [1], [0, 0, 1, 1], [], []>} : vector<16x32xf32>, vector<32x32xf32>, vector<16x32xf32> -> vector<16x32xf32>
    %c0_38 = arith.constant 0 : index
    %c0_39 = arith.constant 0 : index
    %c0_40 = arith.constant 0 : index
    %120 = vector.load %arg7[%c0_38, %c0_39, %c0_40] : memref<1x1x32xf32, #tpu.memory_space<vmem>>, vector<1x1x32xf32>
    %121 = vector.shape_cast %120 : vector<1x1x32xf32> to vector<1x32xf32>
    %122 = vector.broadcast %121 : vector<1x32xf32> to vector<16x32xf32>
    %123 = arith.addf %119, %122 : vector<16x32xf32>
    %124 = arith.addf %5, %123 : vector<16x32xf32>
    %cst_41 = arith.constant dense<0.000000e+00> : vector<16xf32>
    %125 = vector.multi_reduction <add>, %124, %cst_41 [1] : vector<16x32xf32> to vector<16xf32>
    %126 = vector.shape_cast %125 : vector<16xf32> to vector<16x1xf32>
    %cst_42 = arith.constant 3.200000e+01 : f32
    %127 = vector.broadcast %cst_42 : f32 to vector<16x1xf32>
    %128 = arith.divf %126, %127 : vector<16x1xf32>
    %129 = vector.broadcast %128 : vector<16x1xf32> to vector<16x32xf32>
    %130 = arith.subf %124, %129 : vector<16x32xf32>
    %131 = arith.mulf %130, %130 : vector<16x32xf32>
    %cst_43 = arith.constant dense<0.000000e+00> : vector<16xf32>
    %132 = vector.multi_reduction <add>, %131, %cst_43 [1] : vector<16x32xf32> to vector<16xf32>
    %133 = vector.shape_cast %132 : vector<16xf32> to vector<16x1xf32>
    %cst_44 = arith.constant 3.200000e+01 : f32
    %134 = vector.broadcast %cst_44 : f32 to vector<16x1xf32>
    %135 = arith.divf %133, %134 : vector<16x1xf32>
    %cst_45 = arith.constant 9.99999974E-6 : f32
    %136 = vector.broadcast %cst_45 : f32 to vector<16x1xf32>
    %137 = arith.addf %135, %136 : vector<16x1xf32>
    %138 = math.rsqrt %137 : vector<16x1xf32>
    %139 = vector.broadcast %138 : vector<16x1xf32> to vector<16x32xf32>
    %140 = arith.mulf %130, %139 : vector<16x32xf32>
    %c0_46 = arith.constant 0 : index
    %c0_47 = arith.constant 0 : index
    %c0_48 = arith.constant 0 : index
    %c0_49 = arith.constant 0 : index
    %141 = vector.load %arg18[%c0_46, %c0_47, %c0_48, %c0_49] : memref<1x3x1x32xf32, #tpu.memory_space<vmem>>, vector<1x1x1x32xf32>
    %142 = vector.shape_cast %141 : vector<1x1x1x32xf32> to vector<1x32xf32>
    %143 = vector.broadcast %142 : vector<1x32xf32> to vector<16x32xf32>
    %144 = arith.mulf %140, %143 : vector<16x32xf32>
    %c0_50 = arith.constant 0 : index
    %c0_51 = arith.constant 0 : index
    %c0_52 = arith.constant 0 : index
    %c0_53 = arith.constant 0 : index
    %145 = vector.load %arg19[%c0_50, %c0_51, %c0_52, %c0_53] : memref<1x3x1x32xf32, #tpu.memory_space<vmem>>, vector<1x1x1x32xf32>
    %146 = vector.shape_cast %145 : vector<1x1x1x32xf32> to vector<1x32xf32>
    %147 = vector.broadcast %146 : vector<1x32xf32> to vector<16x32xf32>
    %148 = arith.addf %144, %147 : vector<16x32xf32>
    %c0_54 = arith.constant 0 : index
    %c0_55 = arith.constant 0 : index
    %c0_56 = arith.constant 0 : index
    %149 = vector.load %arg8[%c0_54, %c0_55, %c0_56] : memref<1x32x32xf32, #tpu.memory_space<vmem>>, vector<1x32x32xf32>
    %150 = vector.shape_cast %149 : vector<1x32x32xf32> to vector<32x32xf32>
    %cst_57 = arith.constant dense<0.000000e+00> : vector<16x32xf32>
    %151 = tpu.matmul %148, %150, %cst_57 {dimension_numbers = #tpu.dot_dimension_numbers<[1], [0], [0], [1], [0, 0, 1, 1], [], []>} : vector<16x32xf32>, vector<32x32xf32>, vector<16x32xf32> -> vector<16x32xf32>
    %c0_58 = arith.constant 0 : index
    %c0_59 = arith.constant 0 : index
    %c0_60 = arith.constant 0 : index
    %152 = vector.load %arg9[%c0_58, %c0_59, %c0_60] : memref<1x1x32xf32, #tpu.memory_space<vmem>>, vector<1x1x32xf32>
    %153 = vector.shape_cast %152 : vector<1x1x32xf32> to vector<1x32xf32>
    %154 = vector.broadcast %153 : vector<1x32xf32> to vector<16x32xf32>
    %155 = arith.addf %151, %154 : vector<16x32xf32>
    %c0_61 = arith.constant 0 : index
    %c0_62 = arith.constant 0 : index
    %c0_63 = arith.constant 0 : index
    %156 = vector.load %arg10[%c0_61, %c0_62, %c0_63] : memref<1x32x64xf32, #tpu.memory_space<vmem>>, vector<1x32x64xf32>
    %157 = vector.shape_cast %156 : vector<1x32x64xf32> to vector<32x64xf32>
    %cst_64 = arith.constant dense<0.000000e+00> : vector<32x64xf32>
    %158 = tpu.matmul %6, %157, %cst_64 {dimension_numbers = #tpu.dot_dimension_numbers<[1], [0], [0], [1], [0, 0, 1, 1], [], []>} : vector<32x32xf32>, vector<32x64xf32>, vector<32x64xf32> -> vector<32x64xf32>
    %c0_65 = arith.constant 0 : index
    %c0_66 = arith.constant 0 : index
    %c0_67 = arith.constant 0 : index
    %159 = vector.load %arg11[%c0_65, %c0_66, %c0_67] : memref<1x1x64xf32, #tpu.memory_space<vmem>>, vector<1x1x64xf32>
    %160 = vector.shape_cast %159 : vector<1x1x64xf32> to vector<1x64xf32>
    %161 = vector.broadcast %160 : vector<1x64xf32> to vector<32x64xf32>
    %162 = arith.addf %158, %161 : vector<32x64xf32>
    %163 = vector.extract_strided_slice %162 {offsets = [0, 0], sizes = [32, 32], strides = [1, 1]} : vector<32x64xf32> to vector<32x32xf32>
    %164 = vector.extract_strided_slice %162 {offsets = [0, 32], sizes = [32, 32], strides = [1, 1]} : vector<32x64xf32> to vector<32x32xf32>
    %165 = vector.extract_strided_slice %155 {offsets = [0, 0], sizes = [16, 8], strides = [1, 1]} : vector<16x32xf32> to vector<16x8xf32>
    %166 = vector.shape_cast %165 : vector<16x8xf32> to vector<2x8x8xf32>
    %167 = vector.extract_strided_slice %163 {offsets = [0, 0], sizes = [32, 8], strides = [1, 1]} : vector<32x32xf32> to vector<32x8xf32>
    %168 = vector.shape_cast %167 : vector<32x8xf32> to vector<2x16x8xf32>
    %169 = vector.extract_strided_slice %164 {offsets = [0, 0], sizes = [32, 8], strides = [1, 1]} : vector<32x32xf32> to vector<32x8xf32>
    %170 = vector.shape_cast %169 : vector<32x8xf32> to vector<2x16x8xf32>
    "tpu.trace_start"() <{level = 10 : i32, message = "bqd,bkd->bqk"}> : () -> ()
    %cst_68 = arith.constant dense<0.000000e+00> : vector<2x8x16xf32>
    %171 = tpu.matmul %166, %168, %cst_68 {dimension_numbers = #tpu.dot_dimension_numbers<[2], [2], [1], [1], [0, 0, 0, 1, 1, 1], [0], [0]>} : vector<2x8x8xf32>, vector<2x16x8xf32>, vector<2x8x16xf32> -> vector<2x8x16xf32>
    "tpu.trace_stop"() : () -> ()
    %cst_69 = arith.constant 0.353553385 : f32
    %172 = vector.broadcast %cst_69 : f32 to vector<2x8x16xf32>
    %173 = arith.mulf %171, %172 : vector<2x8x16xf32>
    %cst_70 = arith.constant dense<0xFF800000> : vector<2x8xf32>
    %174 = vector.multi_reduction <maximumf>, %173, %cst_70 [2] : vector<2x8x16xf32> to vector<2x8xf32>
    %175 = vector.shape_cast %174 : vector<2x8xf32> to vector<2x8x1xf32>
    %176 = vector.broadcast %175 : vector<2x8x1xf32> to vector<2x8x16xf32>
    %177 = arith.subf %173, %176 : vector<2x8x16xf32>
    %178 = math.exp %177 : vector<2x8x16xf32>
    %cst_71 = arith.constant dense<0.000000e+00> : vector<2x8xf32>
    %179 = vector.multi_reduction <add>, %178, %cst_71 [2] : vector<2x8x16xf32> to vector<2x8xf32>
    %180 = vector.shape_cast %179 : vector<2x8xf32> to vector<2x8x1xf32>
    %181 = tpu.reciprocal %180 {approx = true} : vector<2x8x1xf32> -> vector<2x8x1xf32>
    %182 = vector.broadcast %181 : vector<2x8x1xf32> to vector<2x8x16xf32>
    %183 = arith.mulf %178, %182 : vector<2x8x16xf32>
    "tpu.trace_start"() <{level = 10 : i32, message = "bqk,bkd->bqd"}> : () -> ()
    %cst_72 = arith.constant dense<0.000000e+00> : vector<2x8x8xf32>
    %184 = tpu.matmul %183, %170, %cst_72 {dimension_numbers = #tpu.dot_dimension_numbers<[2], [1], [1], [2], [0, 0, 0, 1, 1, 2], [0], [0]>} : vector<2x8x16xf32>, vector<2x16x8xf32>, vector<2x8x8xf32> -> vector<2x8x8xf32>
    "tpu.trace_stop"() : () -> ()
    %185 = vector.extract_strided_slice %155 {offsets = [0, 8], sizes = [16, 8], strides = [1, 1]} : vector<16x32xf32> to vector<16x8xf32>
    %186 = vector.shape_cast %185 : vector<16x8xf32> to vector<2x8x8xf32>
    %187 = vector.extract_strided_slice %163 {offsets = [0, 8], sizes = [32, 8], strides = [1, 1]} : vector<32x32xf32> to vector<32x8xf32>
    %188 = vector.shape_cast %187 : vector<32x8xf32> to vector<2x16x8xf32>
    %189 = vector.extract_strided_slice %164 {offsets = [0, 8], sizes = [32, 8], strides = [1, 1]} : vector<32x32xf32> to vector<32x8xf32>
    %190 = vector.shape_cast %189 : vector<32x8xf32> to vector<2x16x8xf32>
    "tpu.trace_start"() <{level = 10 : i32, message = "bqd,bkd->bqk"}> : () -> ()
    %cst_73 = arith.constant dense<0.000000e+00> : vector<2x8x16xf32>
    %191 = tpu.matmul %186, %188, %cst_73 {dimension_numbers = #tpu.dot_dimension_numbers<[2], [2], [1], [1], [0, 0, 0, 1, 1, 1], [0], [0]>} : vector<2x8x8xf32>, vector<2x16x8xf32>, vector<2x8x16xf32> -> vector<2x8x16xf32>
    "tpu.trace_stop"() : () -> ()
    %cst_74 = arith.constant 0.353553385 : f32
    %192 = vector.broadcast %cst_74 : f32 to vector<2x8x16xf32>
    %193 = arith.mulf %191, %192 : vector<2x8x16xf32>
    %cst_75 = arith.constant dense<0xFF800000> : vector<2x8xf32>
    %194 = vector.multi_reduction <maximumf>, %193, %cst_75 [2] : vector<2x8x16xf32> to vector<2x8xf32>
    %195 = vector.shape_cast %194 : vector<2x8xf32> to vector<2x8x1xf32>
    %196 = vector.broadcast %195 : vector<2x8x1xf32> to vector<2x8x16xf32>
    %197 = arith.subf %193, %196 : vector<2x8x16xf32>
    %198 = math.exp %197 : vector<2x8x16xf32>
    %cst_76 = arith.constant dense<0.000000e+00> : vector<2x8xf32>
    %199 = vector.multi_reduction <add>, %198, %cst_76 [2] : vector<2x8x16xf32> to vector<2x8xf32>
    %200 = vector.shape_cast %199 : vector<2x8xf32> to vector<2x8x1xf32>
    %201 = tpu.reciprocal %200 {approx = true} : vector<2x8x1xf32> -> vector<2x8x1xf32>
    %202 = vector.broadcast %201 : vector<2x8x1xf32> to vector<2x8x16xf32>
    %203 = arith.mulf %198, %202 : vector<2x8x16xf32>
    "tpu.trace_start"() <{level = 10 : i32, message = "bqk,bkd->bqd"}> : () -> ()
    %cst_77 = arith.constant dense<0.000000e+00> : vector<2x8x8xf32>
    %204 = tpu.matmul %203, %190, %cst_77 {dimension_numbers = #tpu.dot_dimension_numbers<[2], [1], [1], [2], [0, 0, 0, 1, 1, 2], [0], [0]>} : vector<2x8x16xf32>, vector<2x16x8xf32>, vector<2x8x8xf32> -> vector<2x8x8xf32>
    "tpu.trace_stop"() : () -> ()
    %205 = vector.extract_strided_slice %155 {offsets = [0, 16], sizes = [16, 8], strides = [1, 1]} : vector<16x32xf32> to vector<16x8xf32>
    %206 = vector.shape_cast %205 : vector<16x8xf32> to vector<2x8x8xf32>
    %207 = vector.extract_strided_slice %163 {offsets = [0, 16], sizes = [32, 8], strides = [1, 1]} : vector<32x32xf32> to vector<32x8xf32>
    %208 = vector.shape_cast %207 : vector<32x8xf32> to vector<2x16x8xf32>
    %209 = vector.extract_strided_slice %164 {offsets = [0, 16], sizes = [32, 8], strides = [1, 1]} : vector<32x32xf32> to vector<32x8xf32>
    %210 = vector.shape_cast %209 : vector<32x8xf32> to vector<2x16x8xf32>
    "tpu.trace_start"() <{level = 10 : i32, message = "bqd,bkd->bqk"}> : () -> ()
    %cst_78 = arith.constant dense<0.000000e+00> : vector<2x8x16xf32>
    %211 = tpu.matmul %206, %208, %cst_78 {dimension_numbers = #tpu.dot_dimension_numbers<[2], [2], [1], [1], [0, 0, 0, 1, 1, 1], [0], [0]>} : vector<2x8x8xf32>, vector<2x16x8xf32>, vector<2x8x16xf32> -> vector<2x8x16xf32>
    "tpu.trace_stop"() : () -> ()
    %cst_79 = arith.constant 0.353553385 : f32
    %212 = vector.broadcast %cst_79 : f32 to vector<2x8x16xf32>
    %213 = arith.mulf %211, %212 : vector<2x8x16xf32>
    %cst_80 = arith.constant dense<0xFF800000> : vector<2x8xf32>
    %214 = vector.multi_reduction <maximumf>, %213, %cst_80 [2] : vector<2x8x16xf32> to vector<2x8xf32>
    %215 = vector.shape_cast %214 : vector<2x8xf32> to vector<2x8x1xf32>
    %216 = vector.broadcast %215 : vector<2x8x1xf32> to vector<2x8x16xf32>
    %217 = arith.subf %213, %216 : vector<2x8x16xf32>
    %218 = math.exp %217 : vector<2x8x16xf32>
    %cst_81 = arith.constant dense<0.000000e+00> : vector<2x8xf32>
    %219 = vector.multi_reduction <add>, %218, %cst_81 [2] : vector<2x8x16xf32> to vector<2x8xf32>
    %220 = vector.shape_cast %219 : vector<2x8xf32> to vector<2x8x1xf32>
    %221 = tpu.reciprocal %220 {approx = true} : vector<2x8x1xf32> -> vector<2x8x1xf32>
    %222 = vector.broadcast %221 : vector<2x8x1xf32> to vector<2x8x16xf32>
    %223 = arith.mulf %218, %222 : vector<2x8x16xf32>
    "tpu.trace_start"() <{level = 10 : i32, message = "bqk,bkd->bqd"}> : () -> ()
    %cst_82 = arith.constant dense<0.000000e+00> : vector<2x8x8xf32>
    %224 = tpu.matmul %223, %210, %cst_82 {dimension_numbers = #tpu.dot_dimension_numbers<[2], [1], [1], [2], [0, 0, 0, 1, 1, 2], [0], [0]>} : vector<2x8x16xf32>, vector<2x16x8xf32>, vector<2x8x8xf32> -> vector<2x8x8xf32>
    "tpu.trace_stop"() : () -> ()
    %225 = vector.extract_strided_slice %155 {offsets = [0, 24], sizes = [16, 8], strides = [1, 1]} : vector<16x32xf32> to vector<16x8xf32>
    %226 = vector.shape_cast %225 : vector<16x8xf32> to vector<2x8x8xf32>
    %227 = vector.extract_strided_slice %163 {offsets = [0, 24], sizes = [32, 8], strides = [1, 1]} : vector<32x32xf32> to vector<32x8xf32>
    %228 = vector.shape_cast %227 : vector<32x8xf32> to vector<2x16x8xf32>
    %229 = vector.extract_strided_slice %164 {offsets = [0, 24], sizes = [32, 8], strides = [1, 1]} : vector<32x32xf32> to vector<32x8xf32>
    %230 = vector.shape_cast %229 : vector<32x8xf32> to vector<2x16x8xf32>
    "tpu.trace_start"() <{level = 10 : i32, message = "bqd,bkd->bqk"}> : () -> ()
    %cst_83 = arith.constant dense<0.000000e+00> : vector<2x8x16xf32>
    %231 = tpu.matmul %226, %228, %cst_83 {dimension_numbers = #tpu.dot_dimension_numbers<[2], [2], [1], [1], [0, 0, 0, 1, 1, 1], [0], [0]>} : vector<2x8x8xf32>, vector<2x16x8xf32>, vector<2x8x16xf32> -> vector<2x8x16xf32>
    "tpu.trace_stop"() : () -> ()
    %cst_84 = arith.constant 0.353553385 : f32
    %232 = vector.broadcast %cst_84 : f32 to vector<2x8x16xf32>
    %233 = arith.mulf %231, %232 : vector<2x8x16xf32>
    %cst_85 = arith.constant dense<0xFF800000> : vector<2x8xf32>
    %234 = vector.multi_reduction <maximumf>, %233, %cst_85 [2] : vector<2x8x16xf32> to vector<2x8xf32>
    %235 = vector.shape_cast %234 : vector<2x8xf32> to vector<2x8x1xf32>
    %236 = vector.broadcast %235 : vector<2x8x1xf32> to vector<2x8x16xf32>
    %237 = arith.subf %233, %236 : vector<2x8x16xf32>
    %238 = math.exp %237 : vector<2x8x16xf32>
    %cst_86 = arith.constant dense<0.000000e+00> : vector<2x8xf32>
    %239 = vector.multi_reduction <add>, %238, %cst_86 [2] : vector<2x8x16xf32> to vector<2x8xf32>
    %240 = vector.shape_cast %239 : vector<2x8xf32> to vector<2x8x1xf32>
    %241 = tpu.reciprocal %240 {approx = true} : vector<2x8x1xf32> -> vector<2x8x1xf32>
    %242 = vector.broadcast %241 : vector<2x8x1xf32> to vector<2x8x16xf32>
    %243 = arith.mulf %238, %242 : vector<2x8x16xf32>
    "tpu.trace_start"() <{level = 10 : i32, message = "bqk,bkd->bqd"}> : () -> ()
    %cst_87 = arith.constant dense<0.000000e+00> : vector<2x8x8xf32>
    %244 = tpu.matmul %243, %230, %cst_87 {dimension_numbers = #tpu.dot_dimension_numbers<[2], [1], [1], [2], [0, 0, 0, 1, 1, 2], [0], [0]>} : vector<2x8x16xf32>, vector<2x16x8xf32>, vector<2x8x8xf32> -> vector<2x8x8xf32>
    "tpu.trace_stop"() : () -> ()
    %245 = tpu.concatenate %184, %204, %224, %244 in 2 : vector<2x8x8xf32>, vector<2x8x8xf32>, vector<2x8x8xf32>, vector<2x8x8xf32> -> vector<2x8x32xf32>
    %246 = vector.shape_cast %245 : vector<2x8x32xf32> to vector<16x32xf32>
    %c0_88 = arith.constant 0 : index
    %c0_89 = arith.constant 0 : index
    %c0_90 = arith.constant 0 : index
    %247 = vector.load %arg12[%c0_88, %c0_89, %c0_90] : memref<1x32x32xf32, #tpu.memory_space<vmem>>, vector<1x32x32xf32>
    %248 = vector.shape_cast %247 : vector<1x32x32xf32> to vector<32x32xf32>
    %cst_91 = arith.constant dense<0.000000e+00> : vector<16x32xf32>
    %249 = tpu.matmul %246, %248, %cst_91 {dimension_numbers = #tpu.dot_dimension_numbers<[1], [0], [0], [1], [0, 0, 1, 1], [], []>} : vector<16x32xf32>, vector<32x32xf32>, vector<16x32xf32> -> vector<16x32xf32>
    %c0_92 = arith.constant 0 : index
    %c0_93 = arith.constant 0 : index
    %c0_94 = arith.constant 0 : index
    %250 = vector.load %arg13[%c0_92, %c0_93, %c0_94] : memref<1x1x32xf32, #tpu.memory_space<vmem>>, vector<1x1x32xf32>
    %251 = vector.shape_cast %250 : vector<1x1x32xf32> to vector<1x32xf32>
    %252 = vector.broadcast %251 : vector<1x32xf32> to vector<16x32xf32>
    %253 = arith.addf %249, %252 : vector<16x32xf32>
    %254 = arith.addf %148, %253 : vector<16x32xf32>
    %cst_95 = arith.constant dense<0.000000e+00> : vector<16xf32>
    %255 = vector.multi_reduction <add>, %254, %cst_95 [1] : vector<16x32xf32> to vector<16xf32>
    %256 = vector.shape_cast %255 : vector<16xf32> to vector<16x1xf32>
    %cst_96 = arith.constant 3.200000e+01 : f32
    %257 = vector.broadcast %cst_96 : f32 to vector<16x1xf32>
    %258 = arith.divf %256, %257 : vector<16x1xf32>
    %259 = vector.broadcast %258 : vector<16x1xf32> to vector<16x32xf32>
    %260 = arith.subf %254, %259 : vector<16x32xf32>
    %261 = arith.mulf %260, %260 : vector<16x32xf32>
    %cst_97 = arith.constant dense<0.000000e+00> : vector<16xf32>
    %262 = vector.multi_reduction <add>, %261, %cst_97 [1] : vector<16x32xf32> to vector<16xf32>
    %263 = vector.shape_cast %262 : vector<16xf32> to vector<16x1xf32>
    %cst_98 = arith.constant 3.200000e+01 : f32
    %264 = vector.broadcast %cst_98 : f32 to vector<16x1xf32>
    %265 = arith.divf %263, %264 : vector<16x1xf32>
    %cst_99 = arith.constant 9.99999974E-6 : f32
    %266 = vector.broadcast %cst_99 : f32 to vector<16x1xf32>
    %267 = arith.addf %265, %266 : vector<16x1xf32>
    %268 = math.rsqrt %267 : vector<16x1xf32>
    %269 = vector.broadcast %268 : vector<16x1xf32> to vector<16x32xf32>
    %270 = arith.mulf %260, %269 : vector<16x32xf32>
    %c0_100 = arith.constant 0 : index
    %c1 = arith.constant 1 : index
    %c0_101 = arith.constant 0 : index
    %c0_102 = arith.constant 0 : index
    %271 = vector.load %arg18[%c0_100, %c1, %c0_101, %c0_102] : memref<1x3x1x32xf32, #tpu.memory_space<vmem>>, vector<1x1x1x32xf32>
    %272 = vector.shape_cast %271 : vector<1x1x1x32xf32> to vector<1x32xf32>
    %273 = vector.broadcast %272 : vector<1x32xf32> to vector<16x32xf32>
    %274 = arith.mulf %270, %273 : vector<16x32xf32>
    %c0_103 = arith.constant 0 : index
    %c1_104 = arith.constant 1 : index
    %c0_105 = arith.constant 0 : index
    %c0_106 = arith.constant 0 : index
    %275 = vector.load %arg19[%c0_103, %c1_104, %c0_105, %c0_106] : memref<1x3x1x32xf32, #tpu.memory_space<vmem>>, vector<1x1x1x32xf32>
    %276 = vector.shape_cast %275 : vector<1x1x1x32xf32> to vector<1x32xf32>
    %277 = vector.broadcast %276 : vector<1x32xf32> to vector<16x32xf32>
    %278 = arith.addf %274, %277 : vector<16x32xf32>
    %c0_107 = arith.constant 0 : index
    %c0_108 = arith.constant 0 : index
    %c0_109 = arith.constant 0 : index
    %279 = vector.load %arg14[%c0_107, %c0_108, %c0_109] : memref<1x32x2048xf32, #tpu.memory_space<vmem>>, vector<1x32x2048xf32>
    %280 = vector.shape_cast %279 : vector<1x32x2048xf32> to vector<32x2048xf32>
    %cst_110 = arith.constant dense<0.000000e+00> : vector<16x2048xf32>
    %281 = tpu.matmul %278, %280, %cst_110 {dimension_numbers = #tpu.dot_dimension_numbers<[1], [0], [0], [1], [0, 0, 1, 1], [], []>} : vector<16x32xf32>, vector<32x2048xf32>, vector<16x2048xf32> -> vector<16x2048xf32>
    %c0_111 = arith.constant 0 : index
    %c0_112 = arith.constant 0 : index
    %c0_113 = arith.constant 0 : index
    %282 = vector.load %arg15[%c0_111, %c0_112, %c0_113] : memref<1x1x2048xf32, #tpu.memory_space<vmem>>, vector<1x1x2048xf32>
    %283 = vector.shape_cast %282 : vector<1x1x2048xf32> to vector<1x2048xf32>
    %284 = vector.broadcast %283 : vector<1x2048xf32> to vector<16x2048xf32>
    %285 = arith.addf %281, %284 : vector<16x2048xf32>
    %cst_114 = arith.constant 0.000000e+00 : f32
    %286 = vector.broadcast %cst_114 : f32 to vector<16x2048xf32>
    %287 = arith.maximumf %285, %286 : vector<16x2048xf32>
    %c0_115 = arith.constant 0 : index
    %c0_116 = arith.constant 0 : index
    %c0_117 = arith.constant 0 : index
    %288 = vector.load %arg16[%c0_115, %c0_116, %c0_117] : memref<1x2048x32xf32, #tpu.memory_space<vmem>>, vector<1x2048x32xf32>
    %289 = vector.shape_cast %288 : vector<1x2048x32xf32> to vector<2048x32xf32>
    %cst_118 = arith.constant dense<0.000000e+00> : vector<16x32xf32>
    %290 = tpu.matmul %287, %289, %cst_118 {dimension_numbers = #tpu.dot_dimension_numbers<[1], [0], [0], [1], [0, 0, 1, 1], [], []>} : vector<16x2048xf32>, vector<2048x32xf32>, vector<16x32xf32> -> vector<16x32xf32>
    %c0_119 = arith.constant 0 : index
    %c0_120 = arith.constant 0 : index
    %c0_121 = arith.constant 0 : index
    %291 = vector.load %arg17[%c0_119, %c0_120, %c0_121] : memref<1x1x32xf32, #tpu.memory_space<vmem>>, vector<1x1x32xf32>
    %292 = vector.shape_cast %291 : vector<1x1x32xf32> to vector<1x32xf32>
    %293 = vector.broadcast %292 : vector<1x32xf32> to vector<16x32xf32>
    %294 = arith.addf %290, %293 : vector<16x32xf32>
    %295 = arith.addf %278, %294 : vector<16x32xf32>
    %cst_122 = arith.constant dense<0.000000e+00> : vector<16xf32>
    %296 = vector.multi_reduction <add>, %295, %cst_122 [1] : vector<16x32xf32> to vector<16xf32>
    %297 = vector.shape_cast %296 : vector<16xf32> to vector<16x1xf32>
    %cst_123 = arith.constant 3.200000e+01 : f32
    %298 = vector.broadcast %cst_123 : f32 to vector<16x1xf32>
    %299 = arith.divf %297, %298 : vector<16x1xf32>
    %300 = vector.broadcast %299 : vector<16x1xf32> to vector<16x32xf32>
    %301 = arith.subf %295, %300 : vector<16x32xf32>
    %302 = arith.mulf %301, %301 : vector<16x32xf32>
    %cst_124 = arith.constant dense<0.000000e+00> : vector<16xf32>
    %303 = vector.multi_reduction <add>, %302, %cst_124 [1] : vector<16x32xf32> to vector<16xf32>
    %304 = vector.shape_cast %303 : vector<16xf32> to vector<16x1xf32>
    %cst_125 = arith.constant 3.200000e+01 : f32
    %305 = vector.broadcast %cst_125 : f32 to vector<16x1xf32>
    %306 = arith.divf %304, %305 : vector<16x1xf32>
    %cst_126 = arith.constant 9.99999974E-6 : f32
    %307 = vector.broadcast %cst_126 : f32 to vector<16x1xf32>
    %308 = arith.addf %306, %307 : vector<16x1xf32>
    %309 = math.rsqrt %308 : vector<16x1xf32>
    %310 = vector.broadcast %309 : vector<16x1xf32> to vector<16x32xf32>
    %311 = arith.mulf %301, %310 : vector<16x32xf32>
    %c0_127 = arith.constant 0 : index
    %c2 = arith.constant 2 : index
    %c0_128 = arith.constant 0 : index
    %c0_129 = arith.constant 0 : index
    %312 = vector.load %arg18[%c0_127, %c2, %c0_128, %c0_129] : memref<1x3x1x32xf32, #tpu.memory_space<vmem>>, vector<1x1x1x32xf32>
    %313 = vector.shape_cast %312 : vector<1x1x1x32xf32> to vector<1x32xf32>
    %314 = vector.broadcast %313 : vector<1x32xf32> to vector<16x32xf32>
    %315 = arith.mulf %311, %314 : vector<16x32xf32>
    %c0_130 = arith.constant 0 : index
    %c2_131 = arith.constant 2 : index
    %c0_132 = arith.constant 0 : index
    %c0_133 = arith.constant 0 : index
    %316 = vector.load %arg19[%c0_130, %c2_131, %c0_132, %c0_133] : memref<1x3x1x32xf32, #tpu.memory_space<vmem>>, vector<1x1x1x32xf32>
    %317 = vector.shape_cast %316 : vector<1x1x1x32xf32> to vector<1x32xf32>
    %318 = vector.broadcast %317 : vector<1x32xf32> to vector<16x32xf32>
    %319 = arith.addf %315, %318 : vector<16x32xf32>
    %320 = vector.shape_cast %319 : vector<16x32xf32> to vector<2x8x32xf32>
    %c0_134 = arith.constant 0 : index
    %c0_135 = arith.constant 0 : index
    %c0_136 = arith.constant 0 : index
    %321 = vector.load %arg20[%c0_134, %c0_135, %c0_136] : memref<2x8x32xf32, #tpu.memory_space<vmem>>, vector<2x8x32xf32>
    tpu.vector_store %arg20[%c0_134, %c0_135, %c0_136], %320 {strides = array<i32>} : memref<2x8x32xf32, #tpu.memory_space<vmem>>, vector<2x8x32xf32>,
    return
  }
  func.func @transform_0(%arg0: i32, %arg1: i32) -> (i32, i32, i32) {
    %c0_i32 = arith.constant 0 : i32
    %c0_i32_0 = arith.constant 0 : i32
    %c0_i32_1 = arith.constant 0 : i32
    return %arg0, %c0_i32, %c0_i32_0 : i32, i32, i32
  }
  func.func @transform_1(%arg0: i32, %arg1: i32) -> (i32, i32, i32) {
    %c0_i32 = arith.constant 0 : i32
    %c0_i32_0 = arith.constant 0 : i32
    %c0_i32_1 = arith.constant 0 : i32
    return %arg0, %c0_i32, %c0_i32_0 : i32, i32, i32
  }
  func.func @transform_2(%arg0: i32, %arg1: i32) -> (i32, i32, i32) {
    %c0_i32 = arith.constant 0 : i32
    %c0_i32_0 = arith.constant 0 : i32
    %c0_i32_1 = arith.constant 0 : i32
    return %arg1, %c0_i32, %c0_i32_0 : i32, i32, i32
  }
  func.func @transform_3(%arg0: i32, %arg1: i32) -> (i32, i32, i32) {
    %c0_i32 = arith.constant 0 : i32
    %c0_i32_0 = arith.constant 0 : i32
    %c0_i32_1 = arith.constant 0 : i32
    return %arg1, %c0_i32, %c0_i32_0 : i32, i32, i32
  }
  func.func @transform_4(%arg0: i32, %arg1: i32) -> (i32, i32, i32) {
    %c0_i32 = arith.constant 0 : i32
    %c0_i32_0 = arith.constant 0 : i32
    %c0_i32_1 = arith.constant 0 : i32
    return %arg1, %c0_i32, %c0_i32_0 : i32, i32, i32
  }
  func.func @transform_5(%arg0: i32, %arg1: i32) -> (i32, i32, i32) {
    %c0_i32 = arith.constant 0 : i32
    %c0_i32_0 = arith.constant 0 : i32
    %c0_i32_1 = arith.constant 0 : i32
    return %arg1, %c0_i32, %c0_i32_0 : i32, i32, i32
  }
  func.func @transform_6(%arg0: i32, %arg1: i32) -> (i32, i32, i32) {
    %c0_i32 = arith.constant 0 : i32
    %c0_i32_0 = arith.constant 0 : i32
    %c0_i32_1 = arith.constant 0 : i32
    return %arg1, %c0_i32, %c0_i32_0 : i32, i32, i32
  }
  func.func @transform_7(%arg0: i32, %arg1: i32) -> (i32, i32, i32) {
    %c0_i32 = arith.constant 0 : i32
    %c0_i32_0 = arith.constant 0 : i32
    %c0_i32_1 = arith.constant 0 : i32
    return %arg1, %c0_i32, %c0_i32_0 : i32, i32, i32
  }
  func.func @transform_8(%arg0: i32, %arg1: i32) -> (i32, i32, i32) {
    %c0_i32 = arith.constant 0 : i32
    %c0_i32_0 = arith.constant 0 : i32
    %c0_i32_1 = arith.constant 0 : i32
    return %arg1, %c0_i32, %c0_i32_0 : i32, i32, i32
  }
  func.func @transform_9(%arg0: i32, %arg1: i32) -> (i32, i32, i32) {
    %c0_i32 = arith.constant 0 : i32
    %c0_i32_0 = arith.constant 0 : i32
    %c0_i32_1 = arith.constant 0 : i32
    return %arg1, %c0_i32, %c0_i32_0 : i32, i32, i32
  }
  func.func @transform_10(%arg0: i32, %arg1: i32) -> (i32, i32, i32) {
    %c0_i32 = arith.constant 0 : i32
    %c0_i32_0 = arith.constant 0 : i32
    %c0_i32_1 = arith.constant 0 : i32
    return %arg1, %c0_i32, %c0_i32_0 : i32, i32, i32
  }
  func.func @transform_11(%arg0: i32, %arg1: i32) -> (i32, i32, i32) {
    %c0_i32 = arith.constant 0 : i32
    %c0_i32_0 = arith.constant 0 : i32
    %c0_i32_1 = arith.constant 0 : i32
    return %arg1, %c0_i32, %c0_i32_0 : i32, i32, i32
  }
  func.func @transform_12(%arg0: i32, %arg1: i32) -> (i32, i32, i32) {
    %c0_i32 = arith.constant 0 : i32
    %c0_i32_0 = arith.constant 0 : i32
    %c0_i32_1 = arith.constant 0 : i32
    return %arg1, %c0_i32, %c0_i32_0 : i32, i32, i32
  }
  func.func @transform_13(%arg0: i32, %arg1: i32) -> (i32, i32, i32) {
    %c0_i32 = arith.constant 0 : i32
    %c0_i32_0 = arith.constant 0 : i32
    %c0_i32_1 = arith.constant 0 : i32
    return %arg1, %c0_i32, %c0_i32_0 : i32, i32, i32
  }
  func.func @transform_14(%arg0: i32, %arg1: i32) -> (i32, i32, i32) {
    %c0_i32 = arith.constant 0 : i32
    %c0_i32_0 = arith.constant 0 : i32
    %c0_i32_1 = arith.constant 0 : i32
    return %arg1, %c0_i32, %c0_i32_0 : i32, i32, i32
  }
  func.func @transform_15(%arg0: i32, %arg1: i32) -> (i32, i32, i32) {
    %c0_i32 = arith.constant 0 : i32
    %c0_i32_0 = arith.constant 0 : i32
    %c0_i32_1 = arith.constant 0 : i32
    return %arg1, %c0_i32, %c0_i32_0 : i32, i32, i32
  }
  func.func @transform_16(%arg0: i32, %arg1: i32) -> (i32, i32, i32, i32) {
    %c0_i32 = arith.constant 0 : i32
    %c0_i32_0 = arith.constant 0 : i32
    %c0_i32_1 = arith.constant 0 : i32
    %c0_i32_2 = arith.constant 0 : i32
    return %arg1, %c0_i32, %c0_i32_0, %c0_i32_1 : i32, i32, i32, i32
  }
  func.func @transform_17(%arg0: i32, %arg1: i32) -> (i32, i32, i32, i32) {
    %c0_i32 = arith.constant 0 : i32
    %c0_i32_0 = arith.constant 0 : i32
    %c0_i32_1 = arith.constant 0 : i32
    %c0_i32_2 = arith.constant 0 : i32
    return %arg1, %c0_i32, %c0_i32_0, %c0_i32_1 : i32, i32, i32, i32
  }
  func.func @transform_18(%arg0: i32, %arg1: i32) -> (i32, i32, i32) {
    %c0_i32 = arith.constant 0 : i32
    %c0_i32_0 = arith.constant 0 : i32
    %c0_i32_1 = arith.constant 0 : i32
    return %arg0, %c0_i32, %c0_i32_0 : i32, i32, i32
  }
}

</mosaic_0001>

<bundles_post_ra>
// kernel: _lambda_.5
= control target key start
LH: loop header
LB: loop body
LE: loop exit
PB: predicated region body
PF: predicated region fallthrough
CT: control target
= control target key end

     0   :  { %vm34_vm0 = vcmask 523264   ;;  %vm118_vm1 = vcmask 261120   ;;  %vm208_vm2 = vcmask 128000   ;;  %vm206_vm3 = vcmask 130048   ;;  %s333_s2 = inlined_call_operand.vmem [shape: f32[64,32], index: 2, kind: input, shape index: {}]   ;;  %s334_s1 = inlined_call_operand.vmem [shape: f32[16,64], index: 1, kind: input, shape index: {}]   ;;  %s335_s0 = inlined_call_operand.vmem [shape: f32[14,32], index: 0, kind: input, shape index: {}]   ;;  %s336_s3 = inlined_call_operand.vmem [shape: f32[1,32], index: 3, kind: input, shape index: {}]   ;;  %s337_s4 = inlined_call_operand.vmem [shape: f32[14,16], index: 4, kind: output, shape index: {}]  }
   0x1   :  { %v26_v0 = vld [vmem:[%s333_s2 + $0x38] sm:$0xff]  ;;  %v25_v1 = vld [vmem:[%s333_s2 + $0x30] sm:$0xff]  ;;  %v24_v2 = vld [vmem:[%s333_s2 + $0x28] sm:$0xff] }
   0x2   :  { %235 = vmatprep.subr.mxu0 %v26_v0  ;;  %v17_v3 = vld [vmem:[%s334_s1] sm:$0xff]  ;;  %v22_v5 = vld [vmem:[%s333_s2 + $0x18] sm:$0xff]  ;;  %v21_v6 = vld [vmem:[%s333_s2 + $0x10] sm:$0xff] }
   0x3   :  { %236 = vmatpush3.msra.mxu0 %v26_v0  ;;  %251 = vmatprep.mubr.msk.f32.mxu0 %vm34_vm0, %v17_v3  ;;  %v23_v4 = vld [vmem:[%s333_s2 + $0x20] sm:$0xff]  ;;  %v20_v7 = vld [vmem:[%s333_s2 + $0x8] sm:$0xff] }
   0x4   :  { %237 = vmatprep.subr.mxu0 %v25_v1  ;;  %v19_v8 = vld [vmem:[%s333_s2] sm:$0xff]  ;;  %v18_v9 = vld [vmem:[%s334_s1 + $0x8] sm:$0xff] }
   0x5   :  { %238 = vmatpush3.msra.mxu0 %v25_v1  ;;  %v116_v10 = vld [vmem:[%s335_s0] sm:$0xff]  ;;  %v117_v16 = vld [vmem:[%s335_s0 + $0x8] sm:$0x3f] }
   0x6   :  { %239 = vmatprep.subr.mxu0 %v24_v2  ;;  %258 = vmatprep.mubr.msk.f32.mxu1 %vm118_vm1, %v116_v10  ;;  %v214_v11 = vld [vmem:[%s336_s3] ss:$0 sm:$0xff] }
   0x7   :  { %240 = vmatpush3.msra.mxu0 %v24_v2 }
   0x8   :  { %241 = vmatprep.subr.mxu0 %v23_v4 }
   0x9   :  { %242 = vmatpush3.msra.mxu0 %v23_v4 }
   0xa   :  { %243 = vmatprep.subr.mxu0 %v22_v5 }
   0xb   :  { %244 = vmatpush3.msra.mxu0 %v22_v5 }
   0xc   :  { %245 = vmatprep.subr.mxu0 %v21_v6 }
   0xd   :  { %246 = vmatpush3.msra.mxu0 %v21_v6 }
   0xe   :  { %247 = vmatprep.subr.mxu0 %v20_v7 }
   0xf   :  { %248 = vmatpush3.msra.mxu0 %v20_v7 }
  0x10   :  { %249 = vmatprep.subr.mxu0 %v19_v8 }
  0x11   :  { %250 = vmatpush3.msra.mxu0 %v19_v8 }
  0x12   :  { %252 = vmatmul.mubr.msk.f32.vlgmr.msra.gmra.mxu0 %vm34_vm0, %v18_v9 }
  0xd2   :  { %v253_v12 = vpop.f32.mrf.mxu0 }
  0xd3   :  { %v113_v13 = vadd.f32 %v253_v12, %v214_v11 }
  0xd4   :  { %v107_v14 = vpop.f32.mrf.mxu0 }
  0xd5   :  { %v108_v15 = vadd.f32 %v214_v11, %v107_v14  ;;  %254 = vmatprep.subr.msk.mxu1 %vm118_vm1, %v113_v13 }
  0xd6   :  { %255 = vmatpush3.xpose.msk.msra.mxu1 %vm118_vm1, %v113_v13 }
  0xd7   :  { %256 = vmatprep.subr.msk.mxu1 %vm118_vm1, %v108_v15 }
  0xda   :  { %257 = vmatpush3.xpose.msk.msra.mxu1 %vm118_vm1, %v108_v15 }
  0xdd   :  { %259 = vmatmul.mubr.msk.f32.vlgmr.msra.gmra.mxu1 %vm118_vm1, %v117_v16 }
 0x19d   :  { %v260_v17 = vpop.f32.mrf.mxu1 }
 0x19e   :  { %209 = vst.msk [vmem:[%s337_s4 + $0x8] sm:$0x3f] %vm208_vm2, %v260_v17 }
 0x19f   :  { %v197_v18 = vpop.f32.mrf.mxu1 }
 0x1a0   :  { %207 = vst.msk [vmem:[%s337_s4] sm:$0xff] %vm206_vm3, %v197_v18 }

// kernel: _lambda_.3
= control target key start
LH: loop header
LB: loop body
LE: loop exit
PB: predicated region body
PF: predicated region fallthrough
CT: control target
= control target key end

     0   :  { %s1405_s0 = inlined_call_operand.hbm [shape: f32[32,64], index: 0, kind: input, shape index: {}]   ;;  %s1406_s1 = inlined_call_operand.hbm [shape: f32[64,32], index: 1, kind: input, shape index: {}]   ;;  %s1407_s2 = inlined_call_operand.hbm [shape: f32[1,32], index: 2, kind: input, shape index: {}]   ;;  %s1408_s3 = inlined_call_operand.hbm [shape: f32[16,64], index: 3, kind: input, shape index: {}]   ;;  %s1409_s4 = inlined_call_operand.hbm [shape: f32[64,32], index: 4, kind: input, shape index: {}]   ;;  %s1410_s5 = inlined_call_operand.hbm [shape: f32[1,32], index: 5, kind: input, shape index: {}]   ;;  %s1411_s6 = inlined_call_operand.vmem [shape: f32[16,64], index: 6, kind: input, shape index: {}]   ;;  %s1412_s7 = inlined_call_operand.hbm [shape: f32[64,32], index: 7, kind: input, shape index: {}]   ;;  %s1413_s8 = inlined_call_operand.hbm [shape: f32[1,32], index: 8, kind: input, shape index: {}]   ;;  %s1414_s9 = inlined_call_operand.vmem [shape: f32[16,2], index: 9, kind: input, shape index: {}]   ;;  %s1415_s10 = inlined_call_operand.hbm [shape: f32[32,2], index: 10, kind: input, shape index: {}]   ;;  %s1416_s11 = inlined_call_operand.hbm [shape: f32[1,2], index: 11, kind: input, shape index: {}]   ;;  %s1417_s12 = inlined_call_operand.hbm [shape: f32[2,32], index: 12, kind: input, shape index: {}]   ;;  %s1418_s13 = inlined_call_operand.hbm [shape: f32[32,32], index: 13, kind: output, shape index: {0}]   ;;  %s1419_s14 = inlined_call_operand.vmem [shape: f32[16,32], index: 14, kind: output, shape index: {1}]   ;;  %s1420_s15 = inlined_call_operand.vmem [shape: f32[16,32], index: 15, kind: output, shape index: {2}]   ;;  %s1421_s16 = inlined_call_operand.vmem [shape: f32[16,2], index: 16, kind: output, shape index: {3}]   ;;  %s1422_s17 = inlined_call_operand.vmem [shape: f32[16,32], index: 17, kind: output, shape index: {4}]  }
   0x1   :  { %1423 = sst [smem:[#allocation28_spill]] %s1405_s0 }
   0x2   :  { %1424 = sst [smem:[#allocation29_spill]] %s1406_s1 }
   0x3   :  { %23 = vsyncpa [#allocation3], 0 }
   0x4   :  { %24 = vsyncpa [#allocation6], 0 }
   0x5   :  { %25 = vsyncpa [#allocation9], 0 }
   0x6   :  { %26 = vsyncpa [#allocation12], 0 }
   0x7   :  { %27 = vsyncpa [#allocation15], 0 }
   0x8   :  { %28 = vsyncpa [#allocation18], 0 }
   0x9   :  { %29 = vsyncpa [#allocation4], 0  ;;  %s1170_s24 = smov [#allocation5]   ;;  %s1171_s26 = smov [#allocation8]  }
   0xa   :  { %s47_s25 = sshll.u32 %s1170_s24, 4  ;;  %s69_s27 = sshll.u32 %s1171_s26, 4  ;;  %s48_s25 = int_to_ptr.vmem [resolvable:$true] %s47_s25  ;;  %s70_s27 = int_to_ptr.vmem [resolvable:$true] %s69_s27 }
   0xb   :  { %s924_s28 = scalar_lea.vmem %s48_s25, 1024  ;;  %p929_p1 = scmp.lt.s32.totalorder %s48_s25, %s48_s25 }
   0xc   :  { %p925_p0 = scmp.ne.s32.totalorder %s48_s25, %s924_s28  ;;  %p930_p2 = scmp.lt.s32.totalorder %s924_s28, %s924_s28 }
   0xe   :  { %p931_p3 = por %p930_p2, %p929_p1 }
  0x10   :  { %p932_p4 = pnand %p931_p3, %p925_p0 }
  0x12   :  { %935 = shalt.err (!%p932_p4)
}
  0x13   :  { %s1172_s29 = smov 128   ;;  %s1173_s0 = smov 8  }
  0x14   :  { %s1425_s19 = sld [smem:[#allocation29_spill]]  ;;  %s944_s1 = scalar_lea.vmem %s70_s27, 256 }
  0x15   :  { %p945_p5 = scmp.ne.s32.totalorder %s70_s27, %s944_s1  ;;  %p949_p6 = scmp.lt.s32.totalorder %s70_s27, %s70_s27 }
  0x16   :  { %p950_p7 = scmp.lt.s32.totalorder %s944_s1, %s944_s1 }
  0x18   :  { %p951_p8 = por %p950_p7, %p949_p6 }
  0x1a   :  { %53 = dma.hbm_to_vmem [thread:$0]  %s1425_s19, 1024, %s48_s25, [#allocation6], %s1172_s29, %s1172_s29, %s1173_s0  }
  0x1b   :  { %p952_p9 = pnand %p951_p8, %p945_p5 }
  0x1d   :  { %955 = shalt.err (!%p952_p9)
}
  0x1e   :  { %75 = dma.hbm_to_vmem [thread:$0]  %s1408_s3, 256, %s70_s27, [#allocation9], %s1172_s29, %s1172_s29, %s1173_s0  }
  0x1f   :  { %s1174_s22 = smov [#allocation11]   ;;  %s1175_s24 = smov [#allocation14]  }
  0x20   :  { %s94_s23 = sshll.u32 %s1174_s22, 4  ;;  %s118_s26 = sshll.u32 %s1175_s24, 4  ;;  %s95_s23 = int_to_ptr.vmem [resolvable:$true] %s94_s23  ;;  %s119_s26 = int_to_ptr.vmem [resolvable:$true] %s118_s26 }
  0x21   :  { %s964_s25 = scalar_lea.vmem %s95_s23, 16  ;;  %s968_s28 = scalar_lea.vmem %s95_s23, 32 }
  0x22   :  { %p965_p10 = scmp.ne.s32.totalorder %s95_s23, %s964_s25  ;;  %p969_p11 = scmp.lt.s32.totalorder %s95_s23, %s95_s23 }
  0x23   :  { %p970_p12 = scmp.lt.s32.totalorder %s968_s28, %s964_s25 }
  0x25   :  { %p971_p13 = por %p970_p12, %p969_p11 }
  0x27   :  { %p972_p0 = pnand %p971_p13, %p965_p10 }
  0x29   :  { %975 = shalt.err (!%p972_p0)
}
  0x2a   :  { %97 = dma.hbm_to_vmem [thread:$0]  %s1410_s5, 16, %s95_s23, [#allocation12]  }
  0x2b   :  { %s984_s19 = scalar_lea.vmem %s119_s26, 16  ;;  %s988_s3 = scalar_lea.vmem %s119_s26, 32 }
  0x2c   :  { %p985_p1 = scmp.ne.s32.totalorder %s119_s26, %s984_s19  ;;  %p989_p2 = scmp.lt.s32.totalorder %s119_s26, %s119_s26 }
  0x2d   :  { %p990_p3 = scmp.lt.s32.totalorder %s988_s3, %s984_s19 }
  0x2f   :  { %p991_p4 = por %p990_p3, %p989_p2 }
  0x31   :  { %p992_p5 = pnand %p991_p4, %p985_p1 }
  0x33   :  { %995 = shalt.err (!%p992_p5)
}
  0x34   :  { %121 = dma.hbm_to_vmem [thread:$0]  %s1413_s8, 16, %s119_s26, [#allocation15]  }
  0x35   :  { %s1176_s20 = smov [#allocation17]   ;;  %s1177_s22 = smov [#allocation2]  }
  0x36   :  { %s142_s21 = sshll.u32 %s1176_s20, 4  ;;  %s35_s24 = sshll.u32 %s1177_s22, 4  ;;  %s143_s21 = int_to_ptr.vmem [resolvable:$true] %s142_s21  ;;  %s36_s24 = int_to_ptr.vmem [resolvable:$true] %s35_s24 }
  0x37   :  { %s1004_s25 = scalar_lea.vmem %s143_s21, 16  ;;  %s1008_s5 = scalar_lea.vmem %s143_s21, 32 }
  0x38   :  { %p1005_p6 = scmp.ne.s32.totalorder %s143_s21, %s1004_s25  ;;  %p1009_p7 = scmp.lt.s32.totalorder %s143_s21, %s143_s21 }
  0x39   :  { %p1010_p8 = scmp.lt.s32.totalorder %s1008_s5, %s1004_s25 }
  0x3b   :  { %p1011_p9 = por %p1010_p8, %p1009_p7 }
  0x3d   :  { %p1012_p10 = pnand %p1011_p9, %p1005_p6 }
  0x3f   :  { %1015 = shalt.err (!%p1012_p10)
}
  0x40   :  { %145 = dma.hbm_to_vmem [thread:$0]  %s1416_s11, 16, %s143_s21, [#allocation18]  }
  0x41   :  { %s1024_s30 = scalar_lea.vmem %s36_s24, 512  ;;  %p1029_p12 = scmp.lt.s32.totalorder %s36_s24, %s36_s24 }
  0x42   :  { %p1025_p11 = scmp.ne.s32.totalorder %s36_s24, %s1024_s30  ;;  %p1030_p13 = scmp.lt.s32.totalorder %s1024_s30, %s1024_s30 }
  0x44   :  { %p1031_p0 = por %p1030_p13, %p1029_p12 }
  0x46   :  { %p1032_p1 = pnand %p1031_p0, %p1025_p11 }
  0x48   :  { %1035 = shalt.err (!%p1032_p1)
}
  0x49   :  { %s1426_s18 = sld [smem:[#allocation28_spill]]  ;;  %s1178_s19 = smov [#allocation7]  }
  0x4a   :  { %s60_s3 = sshll.u32 %s1178_s19, 4  ;;  %s1179_s27 = smov [#allocation10]   ;;  %s61_s3 = int_to_ptr.vmem [resolvable:$true] %s60_s3 }
  0x4b   :  { %s81_s1 = sshll.u32 %s1179_s27, 4  ;;  %s1044_s11 = scalar_lea.vmem %s61_s3, 16  ;;  %s82_s1 = int_to_ptr.vmem [resolvable:$true] %s81_s1 }
  0x4c   :  { %p1045_p2 = scmp.ne.s32.totalorder %s61_s3, %s1044_s11  ;;  %s1048_s20 = scalar_lea.vmem %s61_s3, 32 }
  0x4d   :  { %p1049_p3 = scmp.lt.s32.totalorder %s61_s3, %s61_s3  ;;  %p1050_p4 = scmp.lt.s32.totalorder %s1048_s20, %s1044_s11 }
  0x4f   :  { %41 = dma.hbm_to_vmem [thread:$0]  %s1426_s18, 512, %s36_s24, [#allocation3], %s1172_s29, %s1172_s29, %s1173_s0  }
  0x50   :  { %p1051_p5 = por %p1050_p4, %p1049_p3 }
  0x52   :  { %p1052_p6 = pnand %p1051_p5, %p1045_p2 }
  0x54   :  { %1055 = shalt.err (!%p1052_p6)
}
  0x55   :  { %63 = dma.hbm_to_vmem [thread:$0]  %s1407_s2, 16, %s61_s3, [#allocation6]  }
  0x56   :  { %s1064_s25 = scalar_lea.vmem %s82_s1, 1024  ;;  %p1069_p8 = scmp.lt.s32.totalorder %s82_s1, %s82_s1 }
  0x57   :  { %p1065_p7 = scmp.ne.s32.totalorder %s82_s1, %s1064_s25  ;;  %p1070_p9 = scmp.lt.s32.totalorder %s1064_s25, %s1064_s25 }
  0x59   :  { %p1071_p10 = por %p1070_p9, %p1069_p8 }
  0x5b   :  { %p1072_p11 = pnand %p1071_p10, %p1065_p7 }
  0x5d   :  { %1075 = shalt.err (!%p1072_p11)
}
  0x5e   :  { %87 = dma.hbm_to_vmem [thread:$0]  %s1409_s4, 1024, %s82_s1, [#allocation9], %s1172_s29, %s1172_s29, %s1173_s0  }
  0x5f   :  { %s1180_s23 = smov [#allocation13]   ;;  %s1181_s30 = smov [#allocation16]  }
  0x60   :  { %s105_s28 = sshll.u32 %s1180_s23, 4  ;;  %s129_s8 = sshll.u32 %s1181_s30, 4  ;;  %s106_s28 = int_to_ptr.vmem [resolvable:$true] %s105_s28  ;;  %s130_s8 = int_to_ptr.vmem [resolvable:$true] %s129_s8 }
  0x61   :  { %s1084_s2 = scalar_lea.vmem %s106_s28, 1024  ;;  %p1089_p13 = scmp.lt.s32.totalorder %s106_s28, %s106_s28 }
  0x62   :  { %p1085_p12 = scmp.ne.s32.totalorder %s106_s28, %s1084_s2  ;;  %p1090_p0 = scmp.lt.s32.totalorder %s1084_s2, %s1084_s2 }
  0x64   :  { %p1091_p1 = por %p1090_p0, %p1089_p13 }
  0x66   :  { %p1092_p2 = pnand %p1091_p1, %p1085_p12 }
  0x68   :  { %1095 = shalt.err (!%p1092_p2)
}
  0x69   :  { %111 = dma.hbm_to_vmem [thread:$0]  %s1412_s7, 1024, %s106_s28, [#allocation12], %s1172_s29, %s1172_s29, %s1173_s0  }
  0x6a   :  { %s1104_s4 = scalar_lea.vmem %s130_s8, 512  ;;  %p1109_p4 = scmp.lt.s32.totalorder %s130_s8, %s130_s8 }
  0x6b   :  { %p1105_p3 = scmp.ne.s32.totalorder %s130_s8, %s1104_s4  ;;  %p1110_p5 = scmp.lt.s32.totalorder %s1104_s4, %s1104_s4 }
  0x6d   :  { %p1111_p6 = por %p1110_p5, %p1109_p4 }
  0x6f   :  { %p1112_p7 = pnand %p1111_p6, %p1105_p3 }
  0x71   :  { %1115 = shalt.err (!%p1112_p7)
}
  0x72   :  { %135 = dma.hbm_to_vmem [thread:$0]  %s1415_s10, 512, %s130_s8, [#allocation15], %s1172_s29, %s1172_s29, %s1173_s0  }
  0x73   :  { %s1182_s27 = smov [#allocation19]  }
  0x74   :  { %s152_s1 = sshll.u32 %s1182_s27, 4  ;;  %s153_s1 = int_to_ptr.vmem [resolvable:$true] %s152_s1 }
  0x75   :  { %s1124_s11 = scalar_lea.vmem %s153_s1, 32  ;;  %p1129_p9 = scmp.lt.s32.totalorder %s153_s1, %s153_s1 }
  0x76   :  { %p1125_p8 = scmp.ne.s32.totalorder %s153_s1, %s1124_s11  ;;  %p1130_p10 = scmp.lt.s32.totalorder %s1124_s11, %s1124_s11 }
  0x78   :  { %p1131_p11 = por %p1130_p10, %p1129_p9 }
  0x7a   :  { %p1132_p12 = pnand %p1131_p11, %p1125_p8 }
  0x7c   :  { %1135 = shalt.err (!%p1132_p12)
}
  0x7d   :  { %155 = dma.hbm_to_vmem [thread:$0]  %s1417_s12, 32, %s153_s1, [#allocation18]  }
  0x7e   :  { %1156 = dma.done.wait [#allocation3], 512  }
  0x7f   :  { %1157 = vsyncadd [#allocation3], 4294966784 }
  0x80   :  { %1158 = dma.done.wait [#allocation6], 1040  }
  0x81   :  { %1159 = vsyncadd [#allocation6], 4294966256 }
  0x82   :  { %1160 = dma.done.wait [#allocation9], 1280  }
  0x83   :  { %1161 = vsyncadd [#allocation9], 4294966016 }
  0x84   :  { %1162 = dma.done.wait [#allocation12], 1040  }
  0x85   :  { %1163 = vsyncadd [#allocation12], 4294966256 }
  0x86   :  { %1164 = dma.done.wait [#allocation15], 528  }
  0x87   :  { %1165 = vsyncadd [#allocation15], 4294966768 }
  0x88   :  { %1166 = dma.done.wait [#allocation18], 48  }
  0x89   :  { %1167 = vsyncadd [#allocation18], 4294967248  ;;  %v200_v0 = vld [vmem:[#allocation5 + $0x38] sm:$0xff]  ;;  %v199_v1 = vld [vmem:[#allocation5 + $0x30] sm:$0xff]  ;;  %vm208_vm0 = vcmask 523264   ;;  %vm306_vm1 = vcmask 261120  }
  0x8a   :  { %818 = vmatprep.subr.mxu0 %v200_v0  ;;  %v198_v2 = vld [vmem:[#allocation5 + $0x28] sm:$0xff]  ;;  %v189_v3 = vld [vmem:[#allocation2] sm:$0xff]  ;;  %v196_v7 = vld [vmem:[#allocation5 + $0x18] sm:$0xff]  ;;  %vm607_vm2 = vcmask 15360   ;;  %vm639_vm3 = vcmask 1041408   ;;  %s1183_s3 = smov [#allocation20]  }
  0x8b   :  { %819 = vmatpush3.msra.mxu0 %v200_v0  ;;  %834 = vmatprep.mubr.msk.f32.mxu0 %vm208_vm0, %v189_v3  ;;  %v197_v4 = vld [vmem:[#allocation5 + $0x20] sm:$0xff]  ;;  %v320_v5 = vld [vmem:[#allocation10 + $0x38] sm:$0xff]  ;;  %v317_v10 = vld [vmem:[#allocation10 + $0x20] sm:$0xff]  ;;  %s727_s27 = sshll.u32 %s1183_s3, 4  ;;  %s728_s27 = int_to_ptr.vmem [resolvable:$true] %s727_s27 }
  0x8c   :  { %820 = vmatprep.subr.mxu0 %v199_v1  ;;  %v319_v6 = vld [vmem:[#allocation10 + $0x30] sm:$0xff]  ;;  %840 = vmatprep.subr.mxu1 %v320_v5  ;;  %v318_v8 = vld [vmem:[#allocation10 + $0x28] sm:$0xff]  ;;  %v195_v9 = vld [vmem:[#allocation5 + $0x10] sm:$0xff]  ;;  %s1136_s1 = scalar_lea.vmem %s728_s27, 512  ;;  %p1141_p0 = scmp.lt.s32.totalorder %s728_s27, %s728_s27 }
  0x8d   :  { %821 = vmatpush3.msra.mxu0 %v199_v1  ;;  %841 = vmatpush3.msra.mxu1 %v320_v5  ;;  %v194_v11 = vld [vmem:[#allocation5 + $0x8] sm:$0xff]  ;;  %v193_v13 = vld [vmem:[#allocation5] sm:$0xff]  ;;  %v191_v17 = vld [vmem:[#allocation2 + $0x10] sm:$0xff]  ;;  %p1137_p13 = scmp.ne.s32.totalorder %s728_s27, %s1136_s1  ;;  %p1142_p1 = scmp.lt.s32.totalorder %s1136_s1, %s1136_s1 }
  0x8e   :  { %822 = vmatprep.subr.mxu0 %v198_v2  ;;  %842 = vmatprep.subr.mxu1 %v319_v6  ;;  %v316_v12 = vld [vmem:[#allocation10 + $0x18] sm:$0xff]  ;;  %v315_v14 = vld [vmem:[#allocation10 + $0x10] sm:$0xff]  ;;  %v314_v16 = vld [vmem:[#allocation10 + $0x8] sm:$0xff] }
  0x8f   :  { %823 = vmatpush3.msra.mxu0 %v198_v2  ;;  %843 = vmatpush3.msra.mxu1 %v319_v6  ;;  %v190_v15 = vld [vmem:[#allocation2 + $0x8] sm:$0xff]  ;;  %v313_v18 = vld [vmem:[#allocation10] sm:$0xff]  ;;  %v512_v24 = vld [vmem:[#allocation16 + $0x8] sm:$0xff]  ;;  %p1143_p2 = por %p1142_p1, %p1141_p0 }
  0x90   :  { %824 = vmatprep.subr.mxu0 %v197_v4  ;;  %844 = vmatprep.subr.mxu1 %v318_v8  ;;  %v192_v19 = vld [vmem:[#allocation2 + $0x18] sm:$0xff]  ;;  %v311_v20 = vld [vmem:[#allocation8] sm:$0xff]  ;;  %v312_v21 = vld [vmem:[#allocation8 + $0x8] sm:$0xff] }
  0x91   :  { %825 = vmatpush3.msra.mxu0 %v197_v4  ;;  %845 = vmatpush3.msra.mxu1 %v318_v8  ;;  %v514_v22 = vld [vmem:[#allocation16 + $0x18] sm:$0xff]  ;;  %v513_v23 = vld [vmem:[#allocation16 + $0x10] sm:$0xff]  ;;  %v511_v25 = vld [vmem:[#allocation16] sm:$0xff]  ;;  %p1144_p3 = pnand %p1143_p2, %p1137_p13 }
  0x92   :  { %826 = vmatprep.subr.mxu0 %v196_v7  ;;  %846 = vmatprep.subr.mxu1 %v317_v10  ;;  %v760_v26 = vld [vmem:[#allocation7] ss:$0 sm:$0xff]  ;;  %v765_v35 = vld [vmem:[#allocation11] ss:$0 sm:$0xff]  ;;  %v771_v40 = vld [vmem:[#allocation17] ss:$0 sm:$0xff] }
  0x93   :  { %827 = vmatpush3.msra.mxu0 %v196_v7  ;;  %847 = vmatpush3.msra.mxu1 %v317_v10  ;;  %v604_v42 = vld [vmem:[%s1414_s9 + $0x8] sm:$0xff]  ;;  %v603_v45 = vld [vmem:[%s1414_s9] sm:$0xff]  ;;  %v417_v0 = vld [vmem:[#allocation13 + $0x20] sm:$0xff] }
  0x94   :  { %828 = vmatprep.subr.mxu0 %v195_v9  ;;  %848 = vmatprep.subr.mxu1 %v316_v12  ;;  %v420_v61 = vld [vmem:[#allocation13 + $0x38] sm:$0xff]  ;;  %v419_v62 = vld [vmem:[#allocation13 + $0x30] sm:$0xff]  ;;  %v418_v63 = vld [vmem:[#allocation13 + $0x28] sm:$0xff] }
  0x95   :  { %829 = vmatpush3.msra.mxu0 %v195_v9  ;;  %849 = vmatpush3.msra.mxu1 %v316_v12  ;;  %v632_v1 = vld [vmem:[#allocation19] sm:$0x3]  ;;  %v416_v2 = vld [vmem:[#allocation13 + $0x18] sm:$0xff]  ;;  %v415_v3 = vld [vmem:[#allocation13 + $0x10] sm:$0xff] }
  0x96   :  { %830 = vmatprep.subr.mxu0 %v194_v11  ;;  %850 = vmatprep.subr.mxu1 %v315_v14  ;;  %v414_v4 = vld [vmem:[#allocation13 + $0x8] sm:$0xff]  ;;  %v413_v5 = vld [vmem:[#allocation13] sm:$0xff]  ;;  %v412_v7 = vld [vmem:[%s1411_s6 + $0x8] sm:$0xff] }
  0x97   :  { %831 = vmatpush3.msra.mxu0 %v194_v11  ;;  %851 = vmatpush3.msra.mxu1 %v315_v14  ;;  %v411_v6 = vld [vmem:[%s1411_s6] sm:$0xff]  ;;  %v768_v14 = vld [vmem:[#allocation14] ss:$0 sm:$0xff] }
  0x98   :  { %832 = vmatprep.subr.mxu0 %v193_v13  ;;  %852 = vmatprep.subr.mxu1 %v314_v16 }
  0x99   :  { %833 = vmatpush3.msra.mxu0 %v193_v13  ;;  %853 = vmatpush3.msra.mxu1 %v314_v16 }
  0x9a   :  { %835 = vmatmul.mubr.msk.f32.vlgmr.msra.gmra.mxu0 %vm208_vm0, %v190_v15  ;;  %854 = vmatprep.subr.mxu1 %v313_v18 }
  0x9b   :  { %837 = vmatprep.mubr.msk.f32.mxu0 %vm208_vm0, %v191_v17  ;;  %855 = vmatpush3.msra.mxu1 %v313_v18 }
  0x9c   :  { %856 = vmatprep.mubr.msk.f32.mxu1 %vm208_vm0, %v311_v20  ;;  %878 = vmatprep.subr.mxu1 %v514_v22 }
  0x9d   :  { %857 = vmatmul.mubr.msk.f32.vlgmr.msra.gmra.mxu1 %vm208_vm0, %v312_v21  ;;  %859 = vmatprep.subr.mxu0 %v420_v61 }
  0x9e   :  { %838 = vmatmul.mubr.msk.f32.gmra.mxu0 %vm208_vm0, %v192_v19  ;;  %879 = vmatpush3.msra.mxu1 %v514_v22 }
  0x9f   :  { %880 = vmatprep.subr.mxu1 %v513_v23  ;;  %860 = vmatpush3.msra.mxu0 %v420_v61 }
  0xa0   :  { %881 = vmatpush3.msra.mxu1 %v513_v23  ;;  %861 = vmatprep.subr.mxu0 %v419_v62 }
  0xa1   :  { %882 = vmatprep.subr.mxu1 %v512_v24  ;;  %862 = vmatpush3.msra.mxu0 %v419_v62 }
  0xa2   :  { %883 = vmatpush3.msra.mxu1 %v512_v24  ;;  %863 = vmatprep.subr.mxu0 %v418_v63 }
  0xa3   :  { %884 = vmatprep.subr.mxu1 %v511_v25  ;;  %864 = vmatpush3.msra.mxu0 %v418_v63 }
  0xa4   :  { %885 = vmatpush3.msra.mxu1 %v511_v25  ;;  %865 = vmatprep.subr.mxu0 %v417_v0 }
  0xa5   :  { %889 = vmatprep.subr.msk.mxu1 %vm639_vm3, %v632_v1  ;;  %866 = vmatpush3.msra.mxu0 %v417_v0 }
  0xa6   :  { %867 = vmatprep.subr.mxu0 %v416_v2  ;;  %875 = vmatprep.mubr.msk.f32.mxu0 %vm208_vm0, %v411_v6 }
  0xa7   :  { %868 = vmatpush3.msra.mxu0 %v416_v2 }
  0xa8   :  { %869 = vmatprep.subr.mxu0 %v415_v3 }
  0xa9   :  { %870 = vmatpush3.msra.mxu0 %v415_v3 }
  0xaa   :  { %871 = vmatprep.subr.mxu0 %v414_v4 }
  0xab   :  { %872 = vmatpush3.msra.mxu0 %v414_v4 }
  0xac   :  { %873 = vmatprep.subr.mxu0 %v413_v5 }
  0xad   :  { %874 = vmatpush3.msra.mxu0 %v413_v5 }
  0xae   :  { %876 = vmatmul.mubr.msk.f32.vlgmr.msra.gmra.mxu0 %vm208_vm0, %v412_v7 }
 0x15a   :  { %v836_v27 = vpop.f32.mrf.mxu0 }
 0x15b   :  { %v293_v28 = vadd.f32 %v836_v27, %v760_v26 }
 0x15c   :  { %v287_v29 = vpop.f32.mrf.mxu0 }
 0x15d   :  { %308 = vst.msk [vmem:[#allocation20 + $0x8] sm:$0xff] %vm306_vm1, %v293_v28  ;;  %v288_v30 = vadd.f32 %v760_v26, %v287_v29  ;;  %v858_v36 = vpop.f32.mrf.mxu1 }
 0x15e   :  { %v839_v31 = vpop.f32.mrf.mxu0  ;;  %v406_v37 = vadd.f32 %v858_v36, %v765_v35 }
 0x15f   :  { %307 = vst.msk [vmem:[#allocation20] sm:$0xff] %vm306_vm1, %v288_v30  ;;  %v1333_v32 = vadd.f32 %v839_v31, %v760_v26  ;;  %v400_v38 = vpop.f32.mrf.mxu1 }
 0x160   :  { %v297_v33 = vpop.f32.mrf.mxu0  ;;  %410 = vst.msk [vmem:[%s1419_s14 + $0x8] sm:$0xff] %vm306_vm1, %v406_v37  ;;  %v401_v39 = vadd.f32 %v765_v35, %v400_v38 }
 0x161   :  { %310 = vst.msk [vmem:[#allocation20 + $0x18] sm:$0xff] %vm306_vm1, %v1333_v32  ;;  %v1337_v34 = vadd.f32 %v760_v26, %v297_v33 }
 0x162   :  { %409 = vst.msk [vmem:[%s1419_s14] sm:$0xff] %vm306_vm1, %v401_v39 }
 0x163   :  { %309 = vst.msk [vmem:[#allocation20 + $0x10] sm:$0xff] %vm306_vm1, %v1337_v34  ;;  %886 = vmatprep.mubr.msk.f32.mxu1 %vm306_vm1, %v1337_v34 }
 0x164   :  { %887 = vmatmul.mubr.msk.f32.vlgmr.msra.gmra.mxu1 %vm306_vm1, %v1333_v32 }
 0x165   :  { %890 = vmatpush3.msk.msra.mxu1 %vm639_vm3, %v632_v1 }
 0x16e   :  { %v877_v15 = vpop.f32.mrf.mxu0 }
 0x16f   :  { %v506_v16 = vadd.f32 %v877_v15, %v768_v14 }
 0x170   :  { %v500_v17 = vpop.f32.mrf.mxu0 }
 0x171   :  { %510 = vst.msk [vmem:[%s1420_s15 + $0x8] sm:$0xff] %vm306_vm1, %v506_v16  ;;  %v501_v18 = vadd.f32 %v768_v14, %v500_v17 }
 0x173   :  { %509 = vst.msk [vmem:[%s1420_s15] sm:$0xff] %vm306_vm1, %v501_v18 }
 0x224   :  { %v888_v41 = vpop.f32.mrf.mxu1 }
 0x225   :  { %v600_v43 = vadd.f32 %v888_v41, %v771_v40 }
 0x226   :  { %v594_v44 = vpop.f32.mrf.mxu1 }
 0x227   :  { %v606_v46 = vadd.f32 %v604_v42, %v600_v43  ;;  %v595_v47 = vadd.f32 %v771_v40, %v594_v44 }
 0x229   :  { %609 = vst.msk [vmem:[%s1421_s16 + $0x8] sm:$0xff] %vm607_vm2, %v606_v46  ;;  %v605_v48 = vadd.f32 %v603_v45, %v595_v47  ;;  %v613_v50 = vsel %vm607_vm2, %v606_v46, -inf }
 0x22b   :  { %608 = vst.msk [vmem:[%s1421_s16] sm:$0xff] %vm607_vm2, %v605_v48  ;;  %v610_v49 = vsel %vm607_vm2, %v605_v48, -inf }
 0x22c   :  { %611 = vmax.xlane.f32.xlu0 %v610_v49 }
 0x230   :  { %614 = vmax.xlane.f32.xlu0 %v613_v50 }
 0x2b5   :  { %v612_v51 = vpop.xlane.xlu0 %611 }
 0x2b6   :  { %v616_v52 = vsub.f32 %v605_v48, %v612_v51 }
 0x2b8   :  { %v618_v53 = vmul.f32 1.442695, %v616_v52 }
 0x2b9   :  { %v615_v54 = vpop.xlane.xlu0 %614 }
 0x2ba   :  { %908 = vpow2.f32 %v618_v53  ;;  %v617_v55 = vsub.f32 %v606_v46, %v615_v54 }
 0x2bc   :  { %v620_v56 = vmul.f32 1.442695, %v617_v55 }
 0x2be   :  { %910 = vpow2.f32 %v620_v56 }
 0x2c7   :  { %v909_v57 = vpop.eup %908 }
 0x2c8   :  { %v622_v58 = vsel %vm607_vm2, %v909_v57, 0.0 }
 0x2c9   :  { %623 = vadd.xlane.f32.xlu1 %v622_v58 }
 0x2cb   :  { %v911_v59 = vpop.eup %910 }
 0x2cc   :  { %v625_v60 = vsel %vm607_vm2, %v911_v59, 0.0 }
 0x2cd   :  { %626 = vadd.xlane.f32.xlu1 %v625_v60 }
 0x352   :  { %v624_v8 = vpop.xlane.xlu1 %623 }
 0x353   :  { %912 = vrcp.f32 %v624_v8 }
 0x356   :  { %v627_v9 = vpop.xlane.xlu1 %626 }
 0x357   :  { %914 = vrcp.f32 %v627_v9 }
 0x360   :  { %v913_v10 = vpop.eup %912 }
 0x361   :  { %v629_v11 = vmul.f32 %v913_v10, %v909_v57 }
 0x363   :  { %891 = vmatprep.mubr.msk.f32.mxu1 %vm607_vm2, %v629_v11 }
 0x364   :  { %v915_v12 = vpop.eup %914 }
 0x365   :  { %v631_v13 = vmul.f32 %v915_v12, %v911_v59 }
 0x367   :  { %892 = vmatmul.mubr.msk.f32.vlgmr.msra.gmra.mxu1 %vm607_vm2, %v631_v13 }
 0x368   :  { %1147 = shalt.err (!%p1144_p3)
}
 0x369   :  { %733 = dma.vmem_to_hbm [thread:$0]  %s728_s27, 512, %s1418_s13, [#allocation4], %s1172_s29, %s1172_s29, %s1173_s0  }
 0x427   :  { %v893_v19 = vpop.f32.mrf.mxu1 }
 0x428   :  { %v719_v20 = vadd.f32 %v893_v19, %v1333_v32 }
 0x429   :  { %v709_v21 = vpop.f32.mrf.mxu1 }
 0x42a   :  { %721 = vst.msk [vmem:[%s1422_s17 + $0x8] sm:$0xff] %vm306_vm1, %v719_v20  ;;  %v718_v22 = vadd.f32 %v709_v21, %v1337_v34 }
 0x42c   :  { %720 = vst.msk [vmem:[%s1422_s17] sm:$0xff] %vm306_vm1, %v718_v22 }
 0x42d   :  { %1168 = dma.done.wait [#allocation4], 512  }
 0x42e   :  { %1169 = vsyncadd [#allocation4], 4294966784 }
 0x42f   :  { %753 = vsyncpa [#allocation3], 1 }
 0x430   :  { %754 = vsyncpa [#allocation6], 1 }
 0x431   :  { %755 = vsyncpa [#allocation9], 1 }
 0x432   :  { %756 = vsyncpa [#allocation12], 1 }
 0x433   :  { %757 = vsyncpa [#allocation15], 1 }
 0x434   :  { %758 = vsyncpa [#allocation18], 1 }
 0x435   :  { %759 = vsyncpa [#allocation4], 1 }

// kernel: _lambda_.4
= control target key start
LH: loop header
LB: loop body
LE: loop exit
PB: predicated region body
PF: predicated region fallthrough
CT: control target
= control target key end

     0   :  { %s9558_s0 = inlined_call_operand.vmem [shape: f32[2,8,32], index: 0, kind: input, shape index: {}]   ;;  %s9559_s1 = inlined_call_operand.vmem [shape: f32[2,16,32], index: 1, kind: input, shape index: {}]   ;;  %s9560_s2 = inlined_call_operand.hbm [shape: f32[2,32,96], index: 2, kind: input, shape index: {}]   ;;  %s9561_s3 = inlined_call_operand.hbm [shape: f32[2,1,96], index: 3, kind: input, shape index: {}]   ;;  %s9562_s4 = inlined_call_operand.hbm [shape: f32[2,32,32], index: 4, kind: input, shape index: {}]   ;;  %s9563_s5 = inlined_call_operand.hbm [shape: f32[2,1,32], index: 5, kind: input, shape index: {}]   ;;  %s9564_s6 = inlined_call_operand.hbm [shape: f32[2,32,32], index: 6, kind: input, shape index: {}]   ;;  %s9565_s7 = inlined_call_operand.hbm [shape: f32[2,1,32], index: 7, kind: input, shape index: {}]   ;;  %s9566_s8 = inlined_call_operand.hbm [shape: f32[2,32,64], index: 8, kind: input, shape index: {}]   ;;  %s9567_s9 = inlined_call_operand.hbm [shape: f32[2,1,64], index: 9, kind: input, shape index: {}]   ;;  %s9568_s10 = inlined_call_operand.hbm [shape: f32[2,32,32], index: 10, kind: input, shape index: {}]   ;;  %s9569_s11 = inlined_call_operand.hbm [shape: f32[2,1,32], index: 11, kind: input, shape index: {}]   ;;  %s9570_s12 = inlined_call_operand.hbm [shape: f32[2,32,2048], index: 12, kind: input, shape index: {}]   ;;  %s9571_s13 = inlined_call_operand.hbm [shape: f32[2,1,2048], index: 13, kind: input, shape index: {}]   ;;  %s9572_s14 = inlined_call_operand.hbm [shape: f32[2,2048,32], index: 14, kind: input, shape index: {}]   ;;  %s9573_s15 = inlined_call_operand.hbm [shape: f32[2,1,32], index: 15, kind: input, shape index: {}]   ;;  %s9574_s16 = inlined_call_operand.vmem [shape: f32[2,3,1,32], index: 16, kind: input, shape index: {}]   ;;  %s9575_s17 = inlined_call_operand.vmem [shape: f32[2,3,1,32], index: 17, kind: input, shape index: {}]   ;;  %s9576_s18 = inlined_call_operand.vmem [shape: f32[2,8,32], index: 18, kind: output, shape index: {}]  }
   0x1   :  { %9600 = sst [smem:[#allocation38_spill]] %s9558_s0 }
   0x2   :  { %9601 = sst [smem:[#allocation39_spill]] %s9559_s1 }
   0x3   :  { %9602 = sst [smem:[#allocation40_spill]] %s9560_s2 }
   0x4   :  { %9603 = sst [smem:[#allocation41_spill]] %s9561_s3 }
   0x5   :  { %9604 = sst [smem:[#allocation42_spill]] %s9562_s4 }
   0x6   :  { %9605 = sst [smem:[#allocation43_spill]] %s9563_s5 }
   0x7   :  { %9606 = sst [smem:[#allocation44_spill]] %s9564_s6 }
   0x8   :  { %9607 = sst [smem:[#allocation45_spill]] %s9565_s7 }
   0x9   :  { %9608 = sst [smem:[#allocation46_spill]] %s9566_s8 }
   0xa   :  { %9609 = sst [smem:[#allocation47_spill]] %s9567_s9 }
   0xb   :  { %9610 = sst [smem:[#allocation48_spill]] %s9569_s11 }
   0xc   :  { %9611 = sst [smem:[#allocation49_spill]] %s9571_s13 }
   0xd   :  { %9612 = sst [smem:[#allocation50_spill]] %s9574_s16 }
   0xe   :  { %9613 = sst [smem:[#allocation51_spill]] %s9575_s17 }
   0xf   :  { %9614 = sst [smem:[#allocation52_spill]] %s9576_s18 }
  0x10   :  { %23 = vsyncpa [#allocation3], 0 }
  0x11   :  { %25 = vsyncpa [#allocation3 + $0x1], 0 }
  0x12   :  { %26 = vsyncpa [#allocation5], 0 }
  0x13   :  { %28 = vsyncpa [#allocation5 + $0x1], 0 }
  0x14   :  { %29 = vsyncpa [#allocation8], 0 }
  0x15   :  { %31 = vsyncpa [#allocation8 + $0x1], 0 }
  0x16   :  { %32 = vsyncpa [#allocation11], 0 }
  0x17   :  { %34 = vsyncpa [#allocation11 + $0x1], 0 }
  0x18   :  { %35 = vsyncpa [#allocation14], 0 }
  0x19   :  { %37 = vsyncpa [#allocation14 + $0x1], 0 }
  0x1a   :  { %38 = vsyncpa [#allocation17], 0 }
  0x1b   :  { %40 = vsyncpa [#allocation17 + $0x1], 0 }
  0x1c   :  { %41 = vsyncpa [#allocation20], 0 }
  0x1d   :  { %43 = vsyncpa [#allocation20 + $0x1], 0 }
  0x1e   :  { %44 = vsyncpa [#allocation23], 0 }
  0x1f   :  { %46 = vsyncpa [#allocation23 + $0x1], 0  ;;  %s8194_s27 = smov 0   ;;  %s8196_s28 = smov 0  }
  0x20   :  { %s8198_s29 = smov 0   ;;  %s8200_s30 = smov 0  }
  0x21   :  { %s8202_s0 = smov 0   ;;  %s8204_s19 = smov 0  }
  0x22 LB: > { %9615 = sst [smem:[#allocation32_spill]] %s8048_s28  ;;  %s9579_s1 = sadd.s32 4294967295, %s8064_s19   ;;  %s8064_s19 = sphi %s8204_s19, %s52_s19   ;;  %s8060_s0 = sphi %s8202_s0, %s9663_s0   ;;  %s8056_s30 = sphi %s8200_s30, %s9662_s30   ;;  %s8052_s29 = sphi %s8198_s29, %s9660_s29   ;;  %s8048_s28 = sphi %s8196_s28, %s9659_s28   ;;  %s8044_s27 = sphi %s8194_s27, %s9658_s27  }
  0x23   : > { %9616 = sst [smem:[#allocation33_spill]] %s8052_s29  ;;  %s61_s20 = sadd.s32 1, %s8060_s0 }
  0x24   : > { %9617 = sst [smem:[#allocation34_spill]] %s8056_s30  ;;  %p62_p0 = scmp.ge.s32.totalorder %s61_s20, 2 }
  0x25   : > { %s123_s21 = sadd.s32 1, %s8052_s29  ;;  %p130_p1 = scmp.ne.s32.totalorder %s8052_s29, %s8048_s28 }
  0x26   : > { %p131_p2 = scmp.eq.s32.totalorder %s8064_s19, 0  ;;  %s9665_s20 = smov (%p62_p0, %s61_s20), 0 }
  0x27   : > { %9618 = sst [smem:[#allocation35_spill]] %s9665_s20  ;;  %p136_p4 = scmp.ne.s32.totalorder %s8048_s28, %s8044_s27 }
  0x28   : > { %p8230_p3 = por %p131_p2, %p130_p1  ;;  %s120_s2 = ssub.s32 %s8060_s0, %s9665_s20 }
  0x29   : > { %p137_p5 = scmp.eq.s32.totalorder %s9579_s1, 0  ;;  %p121_p6 = scmp.eq.s32.totalorder %s120_s2, 0 }
  0x2a   : > { %p6631_p8 = scmp.ge.s32.totalorder %s8064_s19, 2 }
  0x2b   : > { %p8239_p7 = por %p137_p5, %p136_p4  ;;  %s8248_s25 = sand.u32 (!%p6631_p8), 1, %s8052_s29  }
  0x2c   : > { %s8244_s24 = scalar_select %p121_p6, %s8052_s29, %s123_s21  }
  0x2d   : > { %s9620_s23 = scalar_select %p8239_p7, 1, 0 }
  0x2e   : > { %9622 = sst [smem:[#allocation37_spill]] %s8244_s24  ;;  %591 = sbr.rel (%p6631_p8) target bundleno = 241 (0xf1), region = 24 }
  0x2f   : > { %9621 = sst [smem:[#allocation36_spill]] %s9620_s23  ;;  %s8251_s26 = sand.u32 (!%p6631_p8), 1, %s8064_s19  }
  0x30   : > { %s8254_s27 = sshll.u32 (!%p6631_p8), %s8060_s0, 4  ;;  %s619_s2 = scalar_lea.vmem (!%p6631_p8), [#allocation4], %s8248_s25 }
  0x31   : > { %s626_s1 = sshll.u32 (!%p6631_p8), %s619_s2, 4  ;;  %s9623_s3 = sld [smem:[#allocation41_spill]] (!%p6631_p8)  ;;  %s627_s1 = int_to_ptr.vmem [resolvable:$true] %s626_s1 }
  0x32   : > { %s9588_s18 = scalar_lea.sflag (!%p6631_p8), [#allocation5], %s8251_s26  ;;  %s7634_s17 = scalar_lea.vmem (!%p6631_p8), %s627_s1, 16 }
  0x33   : > { %p7635_p9 = scmp.ne.s32.totalorder %s627_s1, %s7634_s17  ;;  %s8066_s29 = smov [#allocation4]  }
  0x34   : > { %s7638_s16 = sshll.u32 %s8066_s29, 4  ;;  %s7639_s16 = int_to_ptr.vmem [resolvable:$false] %s7638_s16 }
  0x35   : > { %p7636_p10 = pnand %p7635_p9, %p8230_p3  ;;  %s7640_s30 = scalar_lea.vmem %s7639_s16, 32 }
  0x36   : > { %p7641_p12 = scmp.lt.s32.totalorder %s627_s1, %s7639_s16  ;;  %p7642_p13 = scmp.lt.s32.totalorder %s7640_s30, %s7634_s17 }
  0x37   : > { %s624_s24 = scalar_lea.hbm %s9623_s3, %s8254_s27  ;;  %p7637_p11 = pneg %p7636_p10 }
  0x38   : > { %p7643_p0 = por %p7642_p13, %p7641_p12 }
  0x3a   : > { %p7644_p1 = pnand %p7643_p0, %p7637_p11 }
  0x3c   : > { %7647 = shalt.err (!%p7644_p1)
}
  0x3d   : > { %7452 = dma.hbm_to_vmem [thread:$0]  (%p8230_p3), %s624_s24, 16, %s627_s1, %s9588_s18  }
  0x3e   : > { %s9624_s5 = sld [smem:[#allocation43_spill]]  ;;  %s657_s21 = scalar_lea.vmem [#allocation7], %s8248_s25 }
  0x3f   : > { %s664_s3 = sshll.u32 %s657_s21, 4  ;;  %s9589_s16 = scalar_lea.sflag [#allocation8], %s8251_s26  ;;  %s665_s3 = int_to_ptr.vmem [resolvable:$true] %s664_s3 }
  0x40   : > { %s7660_s17 = scalar_lea.vmem %s665_s3, 16  ;;  %s8067_s30 = smov [#allocation7]  }
  0x41   : > { %p7661_p2 = scmp.ne.s32.totalorder %s665_s3, %s7660_s17  ;;  %s7664_s23 = sshll.u32 %s8067_s30, 4  ;;  %s7665_s23 = int_to_ptr.vmem [resolvable:$false] %s7664_s23 }
  0x42   : > { %s7666_s28 = scalar_lea.vmem %s7665_s23, 32  ;;  %p7667_p6 = scmp.lt.s32.totalorder %s665_s3, %s7665_s23 }
  0x43   : > { %p7662_p4 = pnand %p7661_p2, %p8230_p3  ;;  %p7668_p8 = scmp.lt.s32.totalorder %s7666_s28, %s7660_s17 }
  0x44   : > { %s662_s29 = scalar_lea.hbm %s9624_s5, %s8254_s27 }
  0x45   : > { %p7663_p5 = pneg %p7662_p4  ;;  %p7669_p9 = por %p7668_p8, %p7667_p6 }
  0x47   : > { %p7670_p10 = pnand %p7669_p9, %p7663_p5 }
  0x49   : > { %7673 = shalt.err (!%p7670_p10)
}
  0x4a   : > { %7454 = dma.hbm_to_vmem [thread:$0]  (%p8230_p3), %s662_s29, 16, %s665_s3, %s9589_s16  }
  0x4b   : > { %s9625_s7 = sld [smem:[#allocation45_spill]]  ;;  %s695_s2 = scalar_lea.vmem [#allocation10], %s8248_s25 }
  0x4c   : > { %s702_s21 = sshll.u32 %s695_s2, 4  ;;  %s9590_s28 = scalar_lea.sflag [#allocation11], %s8251_s26  ;;  %s703_s21 = int_to_ptr.vmem [resolvable:$true] %s702_s21 }
  0x4d   : > { %s7686_s23 = scalar_lea.vmem %s703_s21, 16  ;;  %s8068_s17 = smov [#allocation10]  }
  0x4e   : > { %p7687_p11 = scmp.ne.s32.totalorder %s703_s21, %s7686_s23  ;;  %s7690_s30 = sshll.u32 %s8068_s17, 4  ;;  %s7691_s30 = int_to_ptr.vmem [resolvable:$false] %s7690_s30 }
  0x4f   : > { %s7692_s18 = scalar_lea.vmem %s7691_s30, 32  ;;  %p7693_p0 = scmp.lt.s32.totalorder %s703_s21, %s7691_s30 }
  0x50   : > { %p7688_p12 = pnand %p7687_p11, %p8230_p3  ;;  %p7694_p1 = scmp.lt.s32.totalorder %s7692_s18, %s7686_s23 }
  0x51   : > { %s700_s20 = scalar_lea.hbm %s9625_s7, %s8254_s27 }
  0x52   : > { %p7689_p13 = pneg %p7688_p12  ;;  %p7695_p2 = por %p7694_p1, %p7693_p0 }
  0x54   : > { %p7696_p4 = pnand %p7695_p2, %p7689_p13 }
  0x56   : > { %7699 = shalt.err (!%p7696_p4)
}
  0x57   : > { %7456 = dma.hbm_to_vmem [thread:$0]  (%p8230_p3), %s700_s20, 16, %s703_s21, %s9590_s28  }
  0x58   : > { %s9626_s9 = sld [smem:[#allocation47_spill]]  ;;  %s733_s24 = scalar_lea.vmem [#allocation13], %s8248_s25 }
  0x59   : > { %s740_s2 = sshll.u32 %s733_s24, 4  ;;  %s9591_s18 = scalar_lea.sflag [#allocation14], %s8251_s26  ;;  %s741_s2 = int_to_ptr.vmem [resolvable:$true] %s740_s2 }
  0x5a   : > { %s7712_s23 = scalar_lea.vmem %s741_s2, 16  ;;  %s8069_s17 = smov [#allocation13]  }
  0x5b   : > { %p7713_p5 = scmp.ne.s32.totalorder %s741_s2, %s7712_s23  ;;  %s7716_s30 = sshll.u32 %s8069_s17, 4  ;;  %s7717_s30 = int_to_ptr.vmem [resolvable:$false] %s7716_s30 }
  0x5c   : > { %s7718_s16 = scalar_lea.vmem %s7717_s30, 32  ;;  %p7719_p9 = scmp.lt.s32.totalorder %s741_s2, %s7717_s30 }
  0x5d   : > { %p7714_p6 = pnand %p7713_p5, %p8230_p3  ;;  %p7720_p10 = scmp.lt.s32.totalorder %s7718_s16, %s7712_s23 }
  0x5e   : > { %s738_s1 = scalar_lea.hbm %s9626_s9, %s8254_s27 }
  0x5f   : > { %p7715_p8 = pneg %p7714_p6  ;;  %p7721_p11 = por %p7720_p10, %p7719_p9 }
  0x61   : > { %p7722_p12 = pnand %p7721_p11, %p7715_p8 }
  0x63   : > { %7725 = shalt.err (!%p7722_p12)
}
  0x64   : > { %7458 = dma.hbm_to_vmem [thread:$0]  (%p8230_p3), %s738_s1, 16, %s741_s2, %s9591_s18  }
  0x65   : > { %s9627_s11 = sld [smem:[#allocation48_spill]]  ;;  %s771_s29 = scalar_lea.vmem [#allocation16], %s8248_s25 }
  0x66   : > { %s778_s24 = sshll.u32 %s771_s29, 4  ;;  %s6655_s16 = sshll.u32 %s8248_s25, 4  ;;  %s779_s24 = int_to_ptr.vmem [resolvable:$true] %s778_s24 }
  0x67   : > { %s9593_s23 = scalar_lea.sflag [#allocation17], %s8251_s26  ;;  %s7738_s17 = scalar_lea.vmem %s779_s24, 16 }
  0x68   : > { %p7739_p13 = scmp.ne.s32.totalorder %s779_s24, %s7738_s17  ;;  %s8070_s30 = smov [#allocation16]  }
  0x69   : > { %s7742_s28 = sshll.u32 %s8070_s30, 4  ;;  %s7743_s28 = int_to_ptr.vmem [resolvable:$false] %s7742_s28 }
  0x6a   : > { %p7740_p0 = pnand %p7739_p13, %p8230_p3  ;;  %s7744_s5 = scalar_lea.vmem %s7743_s28, 32 }
  0x6b   : > { %s776_s3 = scalar_lea.hbm %s9627_s11, %s8254_s27  ;;  %p7745_p2 = scmp.lt.s32.totalorder %s779_s24, %s7743_s28 }
  0x6c   : > { %p7741_p1 = pneg %p7740_p0  ;;  %p7746_p4 = scmp.lt.s32.totalorder %s7744_s5, %s7738_s17 }
  0x6e   : > { %p7747_p5 = por %p7746_p4, %p7745_p2 }
  0x70   : > { %p7748_p6 = pnand %p7747_p5, %p7741_p1 }
  0x72   : > { %7751 = shalt.err (!%p7748_p6)
}
  0x73   : > { %7460 = dma.hbm_to_vmem [thread:$0]  (%p8230_p3), %s776_s3, 16, %s779_s24, %s9593_s23  }
  0x74   : > { %s6782_s1 = sshll.u32 %s8060_s0, 8  ;;  %s9628_s13 = sld [smem:[#allocation49_spill]] }
  0x75   : > { %s810_s29 = scalar_lea.vmem [#allocation19], %s6655_s16  ;;  %s9592_s5 = scalar_lea.sflag [#allocation20], %s8251_s26 }
  0x76   : > { %s818_s30 = sshll.u32 %s810_s29, 4  ;;  %s8071_s17 = smov [#allocation19]   ;;  %s819_s30 = int_to_ptr.vmem [resolvable:$true] %s818_s30 }
  0x77   : > { %s7764_s28 = scalar_lea.vmem %s819_s30, 256  ;;  %s7768_s18 = sshll.u32 %s8071_s17, 4  ;;  %s7769_s18 = int_to_ptr.vmem [resolvable:$false] %s7768_s18 }
  0x78   : > { %p7765_p8 = scmp.ne.s32.totalorder %s819_s30, %s7764_s28  ;;  %s7770_s7 = scalar_lea.vmem %s7769_s18, 512 }
  0x79   : > { %p7771_p11 = scmp.lt.s32.totalorder %s819_s30, %s7769_s18  ;;  %p7772_p12 = scmp.lt.s32.totalorder %s7770_s7, %s7764_s28 }
  0x7a   : > { %s816_s21 = scalar_lea.hbm %s9628_s13, %s6782_s1  ;;  %p7766_p9 = pnand %p7765_p8, %p8230_p3 }
  0x7b   : > { %p7773_p13 = por %p7772_p12, %p7771_p11 }
  0x7c   : > { %p7767_p10 = pneg %p7766_p9 }
  0x7e   : > { %p7774_p0 = pnand %p7773_p13, %p7767_p10 }
  0x80   : > { %7777 = shalt.err (!%p7774_p0)
}
  0x81   : > { %7462 = dma.hbm_to_vmem [thread:$0]  (%p8230_p3), %s816_s21, 256, %s819_s30, %s9592_s5  }
  0x82   : > { %s8329_s3 = sshll.u32 %s8248_s25, 5  ;;  %s8332_s24 = sshll.u32 %s8060_s0, 9 }
  0x83   : > { %s9629_s16 = sld [smem:[#allocation40_spill]]  ;;  %s599_s2 = scalar_lea.vmem [#allocation2], %s8329_s3 }
  0x84   : > { %s606_s20 = sshll.u32 %s599_s2, 4  ;;  %s596_s29 = scalar_lea.sflag [#allocation3], %s8248_s25  ;;  %s607_s20 = int_to_ptr.vmem [resolvable:$true] %s606_s20 }
  0x85   : > { %s7790_s28 = scalar_lea.vmem %s607_s20, 512  ;;  %s8072_s21 = smov [#allocation2]  }
  0x86   : > { %p7791_p1 = scmp.ne.s32.totalorder %s607_s20, %s7790_s28  ;;  %s7794_s30 = sshll.u32 %s8072_s21, 4  ;;  %s7795_s30 = int_to_ptr.vmem [resolvable:$false] %s7794_s30 }
  0x87   : > { %s7796_s17 = scalar_lea.vmem %s7795_s30, 1024  ;;  %p7797_p5 = scmp.lt.s32.totalorder %s607_s20, %s7795_s30 }
  0x88   : > { %p7792_p2 = pnand %p7791_p1, %p8230_p3  ;;  %p7798_p6 = scmp.lt.s32.totalorder %s7796_s17, %s7790_s28 }
  0x89   : > { %s605_s1 = scalar_lea.hbm %s9629_s16, %s8332_s24 }
  0x8a   : > { %p7793_p4 = pneg %p7792_p2  ;;  %p7799_p8 = por %p7798_p6, %p7797_p5 }
  0x8c   : > { %p7800_p9 = pnand %p7799_p8, %p7793_p4 }
  0x8e   : > { %7803 = shalt.err (!%p7800_p9)
}
  0x8f   : > { %s8073_s18 = smov 128   ;;  %s8074_s7 = smov 8  }
  0x90   : > { %7451 = dma.hbm_to_vmem [thread:$0]  (%p8230_p3), %s605_s1, 512, %s607_s20, %s596_s29, %s8073_s18, %s8073_s18, %s8074_s7  }
  0x91   : > { %s9630_s4 = sld [smem:[#allocation42_spill]]  ;;  %s637_s28 = scalar_lea.vmem [#allocation6], %s8329_s3 }
  0x92   : > { %s644_s30 = sshll.u32 %s637_s28, 4  ;;  %s9631_s6 = sld [smem:[#allocation44_spill]]  ;;  %s645_s30 = int_to_ptr.vmem [resolvable:$true] %s644_s30 }
  0x93   : > { %s7816_s9 = scalar_lea.vmem %s645_s30, 512  ;;  %s8075_s11 = smov [#allocation6]  }
  0x94   : > { %p7817_p10 = scmp.ne.s32.totalorder %s645_s30, %s7816_s9  ;;  %s7820_s13 = sshll.u32 %s8075_s11, 4  ;;  %s7821_s13 = int_to_ptr.vmem [resolvable:$false] %s7820_s13 }
  0x95   : > { %s7822_s1 = scalar_lea.vmem %s7821_s13, 1024  ;;  %p7823_p13 = scmp.lt.s32.totalorder %s645_s30, %s7821_s13 }
  0x96   : > { %p7818_p11 = pnand %p7817_p10, %p8230_p3  ;;  %p7824_p0 = scmp.lt.s32.totalorder %s7822_s1, %s7816_s9 }
  0x97   : > { %s643_s21 = scalar_lea.hbm %s9630_s4, %s8332_s24 }
  0x98   : > { %s681_s23 = scalar_lea.hbm %s9631_s6, %s8332_s24  ;;  %p7819_p12 = pneg %p7818_p11 }
  0x99   : > { %p7825_p1 = por %p7824_p0, %p7823_p13 }
  0x9b   : > { %p7826_p2 = pnand %p7825_p1, %p7819_p12 }
  0x9d   : > { %7829 = shalt.err (!%p7826_p2)
}
  0x9e   : > { %s9632_s5 = scalar_lea.sflag [#allocation5], %s8251_s26  ;;  %s675_s20 = scalar_lea.vmem [#allocation9], %s8329_s3 }
  0x9f   : > { %7453 = dma.hbm_to_vmem [thread:$0]  (%p8230_p3), %s643_s21, 512, %s645_s30, %s9632_s5, %s8073_s18, %s8073_s18, %s8074_s7  }
  0xa0   : > { %s682_s11 = sshll.u32 %s675_s20, 4  ;;  %s9633_s8 = sld [smem:[#allocation46_spill]]  ;;  %s683_s11 = int_to_ptr.vmem [resolvable:$true] %s682_s11 }
  0xa1   : > { %s7842_s16 = scalar_lea.vmem %s683_s11, 512  ;;  %s8076_s2 = smov [#allocation9]  }
  0xa2   : > { %p7843_p4 = scmp.ne.s32.totalorder %s683_s11, %s7842_s16  ;;  %s7846_s28 = sshll.u32 %s8076_s2, 4  ;;  %s7847_s28 = int_to_ptr.vmem [resolvable:$false] %s7846_s28 }
  0xa3   : > { %s7848_s17 = scalar_lea.vmem %s7847_s28, 1024  ;;  %p7849_p8 = scmp.lt.s32.totalorder %s683_s11, %s7847_s28 }
  0xa4   : > { %p7844_p5 = pnand %p7843_p4, %p8230_p3  ;;  %p7850_p9 = scmp.lt.s32.totalorder %s7848_s17, %s7842_s16 }
  0xa6   : > { %s719_s9 = scalar_lea.hbm %s9633_s8, %s8332_s24  ;;  %p7845_p6 = pneg %p7844_p5 }
  0xa7   : > { %p7851_p10 = por %p7850_p9, %p7849_p8 }
  0xa9   : > { %p7852_p11 = pnand %p7851_p10, %p7845_p6 }
  0xab   : > { %7855 = shalt.err (!%p7852_p11)
}
  0xac   : > { %s9634_s21 = scalar_lea.sflag [#allocation8], %s8251_s26  ;;  %s713_s5 = scalar_lea.vmem [#allocation12], %s8329_s3 }
  0xad   : > { %7455 = dma.hbm_to_vmem [thread:$0]  (%p8230_p3), %s681_s23, 512, %s683_s11, %s9634_s21, %s8073_s18, %s8073_s18, %s8074_s7  }
  0xae   : > { %s720_s20 = sshll.u32 %s713_s5, 4  ;;  %s757_s16 = scalar_lea.hbm %s9568_s10, %s8332_s24  ;;  %s721_s20 = int_to_ptr.vmem [resolvable:$true] %s720_s20 }
  0xaf   : > { %s7868_s2 = scalar_lea.vmem %s721_s20, 512  ;;  %s8077_s28 = smov [#allocation12]  }
  0xb0   : > { %p7869_p12 = scmp.ne.s32.totalorder %s721_s20, %s7868_s2  ;;  %s7872_s17 = sshll.u32 %s8077_s28, 4  ;;  %s7873_s17 = int_to_ptr.vmem [resolvable:$false] %s7872_s17 }
  0xb1   : > { %s7874_s30 = scalar_lea.vmem %s7873_s17, 1024  ;;  %p7875_p1 = scmp.lt.s32.totalorder %s721_s20, %s7873_s17 }
  0xb2   : > { %p7870_p13 = pnand %p7869_p12, %p8230_p3  ;;  %p7876_p2 = scmp.lt.s32.totalorder %s7874_s30, %s7868_s2 }
  0xb4   : > { %p7871_p0 = pneg %p7870_p13  ;;  %p7877_p4 = por %p7876_p2, %p7875_p1 }
  0xb6   : > { %p7878_p5 = pnand %p7877_p4, %p7871_p0 }
  0xb8   : > { %7881 = shalt.err (!%p7878_p5)
}
  0xb9   : > { %s9635_s23 = scalar_lea.sflag [#allocation11], %s8251_s26  ;;  %s751_s1 = scalar_lea.vmem [#allocation15], %s8329_s3 }
  0xba   : > { %7457 = dma.hbm_to_vmem [thread:$0]  (%p8230_p3), %s719_s9, 512, %s721_s20, %s9635_s23, %s8073_s18, %s8073_s18, %s8074_s7  }
  0xbb   : > { %s758_s5 = sshll.u32 %s751_s1, 4  ;;  %s6652_s29 = sshll.u32 %s8248_s25, 9  ;;  %s759_s5 = int_to_ptr.vmem [resolvable:$true] %s758_s5 }
  0xbc   : > { %s7894_s13 = scalar_lea.vmem %s759_s5, 512  ;;  %s8078_s2 = smov [#allocation15]  }
  0xbd   : > { %p7895_p6 = scmp.ne.s32.totalorder %s759_s5, %s7894_s13  ;;  %s7898_s28 = sshll.u32 %s8078_s2, 4  ;;  %s7899_s28 = int_to_ptr.vmem [resolvable:$false] %s7898_s28 }
  0xbe   : > { %s7900_s17 = scalar_lea.vmem %s7899_s28, 1024  ;;  %p7901_p10 = scmp.lt.s32.totalorder %s759_s5, %s7899_s28 }
  0xbf   : > { %p7896_p8 = pnand %p7895_p6, %p8230_p3  ;;  %p7902_p11 = scmp.lt.s32.totalorder %s7900_s17, %s7894_s13 }
  0xc1   : > { %p7897_p9 = pneg %p7896_p8  ;;  %p7903_p12 = por %p7902_p11, %p7901_p10 }
  0xc3   : > { %p7904_p13 = pnand %p7903_p12, %p7897_p9 }
  0xc5   : > { %7907 = shalt.err (!%p7904_p13)
}
  0xc6   : > { %s9636_s3 = scalar_lea.sflag [#allocation14], %s8251_s26  ;;  %s6781_s30 = sshll.u32 %s8060_s0, 13 }
  0xc7   : > { %7459 = dma.hbm_to_vmem [thread:$0]  (%p8230_p3), %s757_s16, 512, %s759_s5, %s9636_s3, %s8073_s18, %s8073_s18, %s8074_s7  }
  0xc8   : > { %s789_s23 = scalar_lea.vmem [#allocation18], %s6652_s29  ;;  %s795_s13 = scalar_lea.hbm %s9570_s12, %s6781_s30 }
  0xc9   : > { %s796_s11 = sshll.u32 %s789_s23, 4  ;;  %s6658_s2 = sshll.u32 %s8248_s25, 11  ;;  %s797_s11 = int_to_ptr.vmem [resolvable:$true] %s796_s11 }
  0xca   : > { %s7920_s28 = scalar_lea.vmem %s797_s11, 8192  ;;  %s8079_s17 = smov [#allocation18]  }
  0xcb   : > { %p7921_p0 = scmp.ne.s32.totalorder %s797_s11, %s7920_s28  ;;  %s7924_s24 = sshll.u32 %s8079_s17, 4  ;;  %s7925_s24 = int_to_ptr.vmem [resolvable:$false] %s7924_s24 }
  0xcc   : > { %s7926_s9 = scalar_lea.vmem %s7925_s24, 16384  ;;  %p7927_p4 = scmp.lt.s32.totalorder %s797_s11, %s7925_s24 }
  0xcd   : > { %p7922_p1 = pnand %p7921_p0, %p8230_p3  ;;  %p7928_p5 = scmp.lt.s32.totalorder %s7926_s9, %s7920_s28 }
  0xcf   : > { %p7923_p2 = pneg %p7922_p1  ;;  %p7929_p6 = por %p7928_p5, %p7927_p4 }
  0xd1   : > { %p7930_p8 = pnand %p7929_p6, %p7923_p2 }
  0xd3   : > { %7933 = shalt.err (!%p7930_p8)
}
  0xd4   : > { %s8080_s16 = smov 2048   ;;  %s9637_s5 = scalar_lea.sflag [#allocation17], %s8251_s26 }
  0xd5   : > { %7461 = dma.hbm_to_vmem [thread:$0]  (%p8230_p3), %s795_s13, 8192, %s797_s11, %s9637_s5, %s8080_s16, %s8080_s16, %s8073_s18  }
  0xd6   : > { %s6783_s29 = sshll.u32 %s8060_s0, 15  ;;  %s829_s23 = scalar_lea.vmem [#allocation21], %s6658_s2 }
  0xd7   : > { %s835_s30 = scalar_lea.hbm %s9572_s14, %s6783_s29  ;;  %s836_s21 = sshll.u32 %s829_s23, 4  ;;  %s837_s21 = int_to_ptr.vmem [resolvable:$true] %s836_s21 }
  0xd8   : > { %s7946_s1 = scalar_lea.vmem %s837_s21, 32768  ;;  %s8081_s28 = smov [#allocation21]  }
  0xd9   : > { %p7947_p9 = scmp.ne.s32.totalorder %s837_s21, %s7946_s1  ;;  %s7950_s17 = sshll.u32 %s8081_s28, 4  ;;  %s7951_s17 = int_to_ptr.vmem [resolvable:$false] %s7950_s17 }
  0xda   : > { %s7952_s24 = scalar_lea.vmem %s7951_s17, 65536  ;;  %p7953_p12 = scmp.lt.s32.totalorder %s837_s21, %s7951_s17 }
  0xdb   : > { %p7948_p10 = pnand %p7947_p9, %p8230_p3  ;;  %p7954_p13 = scmp.lt.s32.totalorder %s7952_s24, %s7946_s1 }
  0xdd   : > { %p7949_p11 = pneg %p7948_p10  ;;  %p7955_p0 = por %p7954_p13, %p7953_p12 }
  0xdf   : > { %p7956_p1 = pnand %p7955_p0, %p7949_p11 }
  0xe1   : > { %7959 = shalt.err (!%p7956_p1)
}
  0xe2   : > { %s9638_s11 = scalar_lea.sflag [#allocation20], %s8251_s26  ;;  %s854_s9 = scalar_lea.hbm %s9573_s15, %s8254_s27 }
  0xe3   : > { %7463 = dma.hbm_to_vmem [thread:$0]  (%p8230_p3), %s835_s30, 32768, %s837_s21, %s9638_s11, %s8073_s18, %s8073_s18, %s8074_s7  }
  0xe4   : > { %s849_s16 = scalar_lea.vmem [#allocation22], %s8248_s25  ;;  %s847_s29 = scalar_lea.sflag [#allocation23], %s8248_s25 }
  0xe5   : > { %s856_s5 = sshll.u32 %s849_s16, 4  ;;  %s8082_s20 = smov [#allocation22]   ;;  %s857_s5 = int_to_ptr.vmem [resolvable:$true] %s856_s5 }
  0xe6   : > { %s7972_s3 = scalar_lea.vmem %s857_s5, 16  ;;  %s7976_s26 = sshll.u32 %s8082_s20, 4  ;;  %s7977_s26 = int_to_ptr.vmem [resolvable:$false] %s7976_s26 }
  0xe7   : > { %p7973_p2 = scmp.ne.s32.totalorder %s857_s5, %s7972_s3  ;;  %s7978_s23 = scalar_lea.vmem %s7977_s26, 32 }
  0xe8   : > { %p7979_p6 = scmp.lt.s32.totalorder %s857_s5, %s7977_s26  ;;  %p7980_p8 = scmp.lt.s32.totalorder %s7978_s23, %s7972_s3 }
  0xe9   : > { %p7974_p4 = pnand %p7973_p2, %p8230_p3 }
  0xea   : > { %p7981_p9 = por %p7980_p8, %p7979_p6 }
  0xeb   : > { %p7975_p5 = pneg %p7974_p4 }
  0xed   : > { %p7982_p10 = pnand %p7981_p9, %p7975_p5 }
  0xef   : > { %7985 = shalt.err (!%p7982_p10)
}
  0xf0   : > { %7464 = dma.hbm_to_vmem [thread:$0]  (%p8230_p3), %s854_s9, 16, %s857_s5, %s847_s29  }
  0xf1 PF: > { %p6662_p11 = scmp.ge.s32.totalorder %s8064_s19, 1  ;;  %p875_p12 = scmp.lt.s32.totalorder %s8064_s19, 3 }
  0xf3   : > { %p876_p13 = pnand %p6662_p11, %p875_p12 }
  0xf4   : > { %s9639_s25 = sld [smem:[#allocation32_spill]] (!%p876_p13) }
  0xf5   : > { %879 = sbr.rel (%p876_p13) target bundleno = 7494 (0x1d46), region = 92 }
  0xfa   : > { %s8457_s18 = sand.u32 1, %s9639_s25  }
  0xfb   : > { %s6663_s7 = sshll.u32 %s8457_s18, 5  ;;  %s882_s30 = scalar_lea.sflag [#allocation3], %s8457_s18 }
  0xfc   : > { %s8461_s21 = scalar_lea.vmem [#allocation2], %s6663_s7 }
  0xfd   : > { %8011 = dma.done.wait (%p8239_p7), %s882_s30, 512  }
  0xfe   : > { %8013 = vsyncadd (%p8239_p7), %s882_s30, 4294966784  ;;  %s9641_s22 = sadd.s32 4294967295, %s8064_s19  }
  0xff   : > { %s8469_s1 = sand.u32 1, %s9641_s22  }
 0x100   : > { %s891_s28 = scalar_lea.sflag [#allocation5], %s8469_s1 }
 0x101   : > { %8015 = dma.done.wait (%p8239_p7), %s891_s28, 528  }
 0x102   : > { %8017 = vsyncadd (%p8239_p7), %s891_s28, 4294966768  ;;  %s8477_s24 = scalar_lea.vmem [#allocation6], %s6663_s7  ;;  %s908_s11 = scalar_lea.sflag [#allocation8], %s8469_s1 }
 0x103   : > { %8019 = dma.done.wait (%p8239_p7), %s908_s11, 528  }
 0x104   : > { %8021 = vsyncadd (%p8239_p7), %s908_s11, 4294966768  ;;  %s8485_s2 = scalar_lea.vmem [#allocation9], %s6663_s7  ;;  %s925_s9 = scalar_lea.sflag [#allocation11], %s8469_s1 }
 0x105   : > { %8023 = dma.done.wait (%p8239_p7), %s925_s9, 528  }
 0x106   : > { %8025 = vsyncadd (%p8239_p7), %s925_s9, 4294966768  ;;  %s8493_s5 = scalar_lea.vmem [#allocation12], %s6663_s7  ;;  %s942_s29 = scalar_lea.sflag [#allocation14], %s8469_s1 }
 0x107   : > { %8027 = dma.done.wait (%p8239_p7), %s942_s29, 528  }
 0x108   : > { %8029 = vsyncadd (%p8239_p7), %s942_s29, 4294966768  ;;  %s8501_s20 = scalar_lea.vmem [#allocation15], %s6663_s7  ;;  %s959_s26 = scalar_lea.sflag [#allocation17], %s8469_s1 }
 0x109   : > { %8031 = dma.done.wait (%p8239_p7), %s959_s26, 8208  }
 0x10a   : > { %8033 = vsyncadd (%p8239_p7), %s959_s26, 4294959088  ;;  %s6668_s25 = sshll.u32 %s8457_s18, 9  ;;  %s6669_s30 = sshll.u32 %s8457_s18, 4 }
 0x10b   : > { %s8511_s22 = scalar_lea.vmem [#allocation18], %s6668_s25  ;;  %s976_s28 = scalar_lea.sflag [#allocation20], %s8469_s1 }
 0x10c   : > { %s8514_s11 = scalar_lea.vmem [#allocation19], %s6669_s30 }
 0x10d   : > { %8035 = dma.done.wait (%p8239_p7), %s976_s28, 33024  }
 0x10e   : > { %8037 = vsyncadd (%p8239_p7), %s976_s28, 4294934272  ;;  %s6670_s7 = sshll.u32 %s8457_s18, 11  ;;  %s994_s29 = scalar_lea.sflag [#allocation23], %s8457_s18 }
 0x10f   : > { %s8521_s9 = scalar_lea.vmem [#allocation21], %s6670_s7 }
 0x110   : > { %8039 = dma.done.wait (%p8239_p7), %s994_s29, 16  }
 0x111   : > { %8041 = vsyncadd (%p8239_p7), %s994_s29, 4294967280  ;;  %s9642_s1 = sld [smem:[#allocation34_spill]] }
 0x112   : > { %s9643_s16 = sld [smem:[#allocation50_spill]] }
 0x113   : > { %s9644_s17 = sld [smem:[#allocation51_spill]] }
 0x117   : > { %p1140_p3 = scmp.lt.s32.totalorder %s9642_s1, 1  ;;  %p6671_p0 = scmp.ne.s32.totalorder %s9642_s1, 0 }
 0x118   : > { %s9645_s26 = sld [smem:[#allocation38_spill]] (!%p6671_p0) }
 0x119   : > { %s1141_s25 = scalar_select %p1140_p3, %s9642_s1, 1 }
 0x11a   : > { %1157 = sbr.rel (%p6671_p0) target bundleno = 289 (0x121), region = 152  ;;  %s9646_s28 = sld [smem:[#allocation52_spill]] (!%p6671_p0) }
 0x11b   : > { %s7450_s30 = smul.u32 3, %s1141_s25 }
 0x11d   : > { %s8534_s3 = scalar_lea.vmem %s9643_s16, %s7450_s30  ;;  %s8539_s4 = scalar_lea.vmem %s9644_s17, %s7450_s30 }
 0x11f   : > { %v1158_v0 = vld [vmem:[%s9645_s26] sm:$0xff]  ;;  %vm1160_vm0 = vcmask 261120   ;;  %v1159_v1 = vld [vmem:[%s9645_s26 + $0x8] sm:$0xff] }
 0x120   : > { %1161 = vst.msk [vmem:[%s9646_s28] sm:$0xff] %vm1160_vm0, %v1158_v0  ;;  %1162 = vst.msk [vmem:[%s9646_s28 + $0x8] sm:$0xff] %vm1160_vm0, %v1159_v1 }
 0x121 PF: > { %v1178_v2 = vld [vmem:[%s8461_s21 + $0x18] sm:$0xff]  ;;  %v1177_v3 = vld [vmem:[%s8461_s21 + $0x10] sm:$0xff]  ;;  %vm1186_vm1 = vcmask 261120   ;;  %s9647_s1 = sld [smem:[#allocation52_spill]]  ;;  %v1176_v5 = vld [vmem:[%s8461_s21 + $0x8] sm:$0xff]  ;;  %v8083_v8 = vmov 0.0   ;;  %v1169_v16 = vlaneseq }
 0x122   : > { %7200 = vmatprep.subr.mxu0 %v1178_v2  ;;  %v1175_v6 = vld [vmem:[%s8461_s21] sm:$0xff]  ;;  %7211 = vmatprep.subr.mxu1 %v8083_v8  ;;  %vm8084_vm2 = vmmov 0   ;;  %s9648_s21 = scalar_lea.vmem [#allocation4], %s8457_s18  ;;  %s8085_s7 = smov 96   ;;  %vm1271_vm3 = vcmask 64512   ;;  %vm2632_vm5 = vcmask 195584  }
 0x123   : > { %7201 = vmatpush3.msra.mxu0 %v1178_v2  ;;  %7213 = vmatprep.mubr.msk.f32.mxu1 %vm8084_vm2, %v8083_v8  ;;  %v6672_v10 = vld [vmem:[%s9648_s21] ss:$0 sm:$0xff]  ;;  %v8600_v17 = vshrl.u32 %v1169_v16, 7  ;;  %v1172_v18 = vand.u32 127, %v1169_v16  ;;  %s8086_s27 = smov 64   ;;  %s8087_s29 = smov 88  }
 0x124   : > { %7202 = vmatprep.subr.mxu0 %v1177_v3  ;;  %s8088_s25 = smov 120   ;;  %s8089_s23 = smov 56   ;;  %vm2629_vm6 = vcmask 130048  }
 0x125   : > { %7203 = vmatpush3.msra.mxu0 %v1177_v3  ;;  %vm1173_vm4 = vcmp.gt.s32.totalorder %v1172_v18, %v8600_v17  ;;  %s8090_s16 = smov 112   ;;  %s8091_s28 = smov 80  }
 0x126   : > { %7204 = vmatprep.subr.mxu0 %v1176_v5  ;;  %v8604_v20 = vsel %vm1173_vm4, -1e+30, %v8083_v8  ;;  %s8092_s13 = smov 48   ;;  %s8093_s17 = smov 72  }
 0x127   : > { %v8559_v4 = vld [vmem:[%s9647_s1] sm:$0xff]  ;;  %7205 = vmatpush3.msra.mxu0 %v1176_v5  ;;  %v8568_v7 = vld [vmem:[%s9647_s1 + $0x8] sm:$0xff]  ;;  %s8094_s6 = smov 104   ;;  %s8095_s8 = smov 40  }
 0x128   : > { %7208 = vmatprep.mubr.msk.f32.mxu0 %vm1186_vm1, %v8559_v4  ;;  %7206 = vmatprep.subr.mxu0 %v1175_v6  ;;  %s9598_s30 = smov 8   ;;  %s9596_s21 = smov 16  }
 0x129   : > { %7207 = vmatpush3.msra.mxu0 %v1175_v6 }
 0x12a   : > { %7209 = vmatmul.mubr.msk.f32.vlgmr.msra.gmra.mxu0 %vm1186_vm1, %v8568_v7  ;;  %7231 = vmatprep.subr.mxu0 %v8083_v8 }
 0x12b   : > { %7233 = vmatprep.mubr.msk.f32.mxu0 %vm8084_vm2, %v8083_v8 }
 0x1ea   : > { %v7210_v9 = vpop.f32.mrf.mxu0 }
 0x1eb   : > { %v8584_v13 = vadd.f32 %v7210_v9, %v6672_v10 }
 0x1ec   : > { %v1259_v11 = vpop.f32.mrf.mxu0 }
 0x1ed   : > { %v8580_v12 = vadd.f32 %v6672_v10, %v1259_v11 }
 0x1ef   : > { %1269 = vrot.lane.b32.xlu0 %v8580_v12, %s8085_s7 }
 0x1f3   : > { %1347 = vrot.lane.b32.xlu0 %v8584_v13, %s8085_s7 }
 0x261   : > { %v1270_v14 = vpop.permute.xlu0 %1269 }
 0x262   : > { %7212 = vmatpush3.xpose.msk.msra.mxu1 %vm1271_vm3, %v1270_v14 }
 0x263   : > { %7216 = vmatprep.subr.mxu1 %v8083_v8 }
 0x265   : > { %7214 = vmatmul.mubr.msk.f32.vlgmr.msra.gmra.mxu1 %vm1271_vm3, %v8580_v12  ;;  %v1348_v15 = vpop.permute.xlu0 %1347 }
 0x266   : > { %7217 = vmatpush3.xpose.msk.msra.mxu1 %vm1271_vm3, %v1348_v15  ;;  %7218 = vmatprep.mubr.msk.f32.mxu1 %vm8084_vm2, %v8083_v8 }
 0x267   : > { %7221 = vmatprep.subr.mxu1 %v8083_v8 }
 0x269   : > { %7219 = vmatmul.mubr.msk.f32.vlgmr.msra.gmra.mxu1 %vm1271_vm3, %v8584_v13 }
 0x26a   : > { %7223 = vmatprep.mubr.msk.f32.mxu1 %vm8084_vm2, %v8083_v8 }
 0x325   : > { %v1342_v19 = vpop.f32.mrf.mxu1 }
 0x326   : > { %v1423_v21 = vmul.f32 0.35355338, %v1342_v19 }
 0x327   : > { %v7215_v22 = vpop.f32.mrf.mxu1 }
 0x328   : > { %v1425_v23 = vadd.f32 %v1423_v21, %v8604_v20 }
 0x329   : > { %v1419_v24 = vpop.f32.mrf.mxu1 }
 0x32a   : > { %v1424_v25 = vmul.f32 0.35355338, %v1419_v24  ;;  %v1427_v26 = vsel %vm1271_vm3, %v1425_v23, -inf }
 0x32b   : > { %1428 = vmax.xlane.f32.xlu1 %v1427_v26  ;;  %v7220_v27 = vpop.f32.mrf.mxu1 }
 0x32c   : > { %v1426_v28 = vadd.f32 %v1424_v25, %v8604_v20 }
 0x32e   : > { %v1430_v29 = vsel %vm1271_vm3, %v1426_v28, -inf }
 0x32f   : > { %1431 = vmax.xlane.f32.xlu1 %v1430_v29 }
 0x340   : > { %1449 = vrot.lane.b32.xlu1 %v8580_v12, %s8086_s27 }
 0x344   : > { %1525 = vrot.lane.b32.xlu1 %v8584_v13, %s8086_s27  ;;  %s9594_s27 = smov 24  }
 0x348   : > { %1603 = vrot.lane.b32.xlu1 %v8580_v12, %s8087_s29 }
 0x34c   : > { %1681 = vrot.lane.b32.xlu1 %v8584_v13, %s8087_s29 }
 0x3b4   : > { %v1429_v30 = vpop.xlane.xlu1 %1428 }
 0x3b5   : > { %v1433_v31 = vsub.f32 %v1425_v23, %v1429_v30 }
 0x3b7   : > { %v1435_v32 = vmul.f32 1.442695, %v1433_v31 }
 0x3b8   : > { %v1432_v33 = vpop.xlane.xlu1 %1431 }
 0x3b9   : > { %7546 = vpow2.f32 %v1435_v32  ;;  %v1434_v34 = vsub.f32 %v1426_v28, %v1432_v33 }
 0x3bb   : > { %v1437_v35 = vmul.f32 1.442695, %v1434_v34 }
 0x3bc   : > { %v1450_v36 = vpop.permute.xlu1 %1449 }
 0x3bd   : > { %7548 = vpow2.f32 %v1437_v35  ;;  %7222 = vmatpush3.msra.mxu1 %v1450_v36 }
 0x3be   : > { %7226 = vmatprep.subr.mxu1 %v8083_v8 }
 0x3c0   : > { %v1526_v37 = vpop.permute.xlu1 %1525 }
 0x3c4   : > { %v1604_v38 = vpop.permute.xlu1 %1603 }
 0x3c5   : > { %7232 = vmatpush3.xpose.msk.msra.mxu0 %vm1271_vm3, %v1604_v38 }
 0x3c6   : > { %v7547_v39 = vpop.eup %7546  ;;  %7241 = vmatprep.subr.mxu0 %v8083_v8 }
 0x3c7   : > { %v1439_v40 = vsel %vm1271_vm3, %v7547_v39, 0.0 }
 0x3c8   : > { %1440 = vadd.xlane.f32.xlu0 %v1439_v40  ;;  %v1682_v43 = vpop.permute.xlu1 %1681 }
 0x3ca   : > { %v7549_v41 = vpop.eup %7548 }
 0x3cb   : > { %v1442_v42 = vsel %vm1271_vm3, %v7549_v41, 0.0 }
 0x3cc   : > { %1443 = vadd.xlane.f32.xlu1 %v1442_v42 }
 0x3dd   : > { %1679 = vrot.lane.b32.xlu1 %v8584_v13, %s8088_s25 }
 0x3de   : > { %1601 = vrot.lane.b32.xlu0 %v8580_v12, %s8088_s25 }
 0x451   : > { %v1441_v44 = vpop.xlane.xlu0 %1440 }
 0x452   : > { %7550 = vrcp.f32 %v1441_v44 }
 0x455   : > { %v1444_v45 = vpop.xlane.xlu1 %1443  ;;  %v1602_v46 = vpop.permute.xlu0 %1601 }
 0x456   : > { %7552 = vrcp.f32 %v1444_v45  ;;  %7234 = vmatmul.mubr.msk.f32.vlgmr.msra.gmra.mxu0 %vm1271_vm3, %v1602_v46 }
 0x457   : > { %7243 = vmatprep.mubr.msk.f32.mxu0 %vm8084_vm2, %v8083_v8 }
 0x459   : > { %v1680_v51 = vpop.permute.xlu1 %1679 }
 0x45f   : > { %v7551_v47 = vpop.eup %7550 }
 0x460   : > { %v1447_v48 = vmul.f32 %v7551_v47, %v7547_v39 }
 0x462   : > { %7224 = vmatmul.mubr.msk.f32.vlgmr.msra.gmra.mxu1 %vm1271_vm3, %v1447_v48 }
 0x463   : > { %v7553_v49 = vpop.eup %7552  ;;  %7227 = vmatpush3.msra.mxu1 %v1526_v37  ;;  %7228 = vmatprep.mubr.msk.f32.mxu1 %vm8084_vm2, %v8083_v8 }
 0x464   : > { %7236 = vmatprep.subr.mxu1 %v8083_v8  ;;  %v1448_v50 = vmul.f32 %v7553_v49, %v7549_v41 }
 0x466   : > { %7229 = vmatmul.mubr.msk.f32.vlgmr.msra.gmra.mxu1 %vm1271_vm3, %v1448_v50 }
 0x467   : > { %7237 = vmatpush3.xpose.msk.msra.mxu1 %vm1271_vm3, %v1682_v43  ;;  %7238 = vmatprep.mubr.msk.f32.mxu1 %vm8084_vm2, %v8083_v8 }
 0x468   : > { %7246 = vmatprep.subr.mxu1 %v8083_v8 }
 0x46a   : > { %7239 = vmatmul.mubr.msk.f32.vlgmr.msra.gmra.mxu1 %vm1271_vm3, %v1680_v51 }
 0x46b   : > { %7248 = vmatprep.mubr.msk.f32.mxu1 %vm8084_vm2, %v8083_v8 }
 0x516   : > { %v1675_v52 = vpop.f32.mrf.mxu0 }
 0x517   : > { %v1757_v53 = vmul.f32 0.35355338, %v1675_v52 }
 0x518   : > { %v7235_v54 = vpop.f32.mrf.mxu0 }
 0x519   : > { %v1759_v55 = vadd.f32 %v1757_v53, %v8604_v20 }
 0x51b   : > { %v1761_v56 = vsel %vm1271_vm3, %v1759_v55, -inf }
 0x51c   : > { %1762 = vmax.xlane.f32.xlu1 %v1761_v56 }
 0x522   : > { %v8642_v57 = vpop.f32.mrf.mxu1 }
 0x524   : > { %v7225_v58 = vpop.f32.mrf.mxu1 }
 0x526   : > { %v8644_v59 = vpop.f32.mrf.mxu1 }
 0x528   : > { %v7230_v60 = vpop.f32.mrf.mxu1 }
 0x52a   : > { %v1753_v61 = vpop.f32.mrf.mxu1 }
 0x52b   : > { %v1758_v62 = vmul.f32 0.35355338, %v1753_v61 }
 0x52c   : > { %v7240_v63 = vpop.f32.mrf.mxu1 }
 0x52d   : > { %v1760_v0 = vadd.f32 %v1758_v62, %v8604_v20 }
 0x52f   : > { %v1764_v1 = vsel %vm1271_vm3, %v1760_v0, -inf }
 0x530   : > { %1765 = vmax.xlane.f32.xlu0 %v1764_v1 }
 0x546   : > { %1859 = vrot.lane.b32.xlu0 %v8584_v13, %s8089_s23 }
 0x54a   : > { %1935 = vrot.lane.b32.xlu0 %v8580_v12, %s8090_s16 }
 0x5a5   : > { %v1763_v2 = vpop.xlane.xlu1 %1762 }
 0x5a6   : > { %v1767_v3 = vsub.f32 %v1759_v55, %v1763_v2 }
 0x5a8   : > { %v1769_v5 = vmul.f32 1.442695, %v1767_v3 }
 0x5aa   : > { %7554 = vpow2.f32 %v1769_v5 }
 0x5b7   : > { %v7555_v6 = vpop.eup %7554 }
 0x5b8   : > { %v1773_v9 = vsel %vm1271_vm3, %v7555_v6, 0.0 }
 0x5b9   : > { %1774 = vadd.xlane.f32.xlu1 %v1773_v9  ;;  %v1766_v10 = vpop.xlane.xlu0 %1765 }
 0x5ba   : > { %v1768_v14 = vsub.f32 %v1760_v0, %v1766_v10 }
 0x5bc   : > { %v1771_v15 = vmul.f32 1.442695, %v1768_v14 }
 0x5bd   : > { %v1860_v11 = vpop.permute.xlu0 %1859 }
 0x5be   : > { %7247 = vmatpush3.msra.mxu1 %v1860_v11  ;;  %7556 = vpow2.f32 %v1771_v15 }
 0x5bf   : > { %7256 = vmatprep.subr.mxu1 %v8083_v8 }
 0x5c1   : > { %v1936_v25 = vpop.permute.xlu0 %1935 }
 0x5ca   : > { %1783 = vrot.lane.b32.xlu1 %v8580_v12, %s8089_s23 }
 0x5cb   : > { %v7557_v16 = vpop.eup %7556 }
 0x5cc   : > { %v1776_v18 = vsel %vm1271_vm3, %v7557_v16, 0.0 }
 0x5ce   : > { %1937 = vrot.lane.b32.xlu1 %v8580_v12, %s8091_s28 }
 0x5d2   : > { %2015 = vrot.lane.b32.xlu1 %v8584_v13, %s8091_s28 }
 0x5f6   : > { %1777 = vadd.xlane.f32.xlu1 %v1776_v18 }
 0x607   : > { %2013 = vrot.lane.b32.xlu1 %v8584_v13, %s8090_s16 }
 0x642   : > { %v1775_v19 = vpop.xlane.xlu1 %1774 }
 0x643   : > { %7558 = vrcp.f32 %v1775_v19 }
 0x646   : > { %v1784_v21 = vpop.permute.xlu1 %1783 }
 0x647   : > { %7242 = vmatpush3.msra.mxu0 %v1784_v21 }
 0x648   : > { %7251 = vmatprep.subr.mxu0 %v8083_v8 }
 0x64a   : > { %v1938_v24 = vpop.permute.xlu1 %1937 }
 0x64e   : > { %v2016_v26 = vpop.permute.xlu1 %2015 }
 0x650   : > { %v7559_v22 = vpop.eup %7558 }
 0x651   : > { %v1781_v23 = vmul.f32 %v7559_v22, %v7555_v6 }
 0x653   : > { %7244 = vmatmul.mubr.msk.f32.vlgmr.msra.gmra.mxu0 %vm1271_vm3, %v1781_v23 }
 0x654   : > { %7252 = vmatpush3.xpose.msk.msra.mxu0 %vm1271_vm3, %v1938_v24  ;;  %7253 = vmatprep.mubr.msk.f32.mxu0 %vm8084_vm2, %v8083_v8 }
 0x655   : > { %7261 = vmatprep.subr.mxu0 %v8083_v8 }
 0x657   : > { %7254 = vmatmul.mubr.msk.f32.vlgmr.msra.gmra.mxu0 %vm1271_vm3, %v1936_v25 }
 0x658   : > { %7263 = vmatprep.mubr.msk.f32.mxu0 %vm8084_vm2, %v8083_v8 }
 0x67f   : > { %v1778_v27 = vpop.xlane.xlu1 %1777 }
 0x680   : > { %7560 = vrcp.f32 %v1778_v27 }
 0x683   : > { %v2014_v30 = vpop.permute.xlu1 %2013 }
 0x68d   : > { %v7561_v28 = vpop.eup %7560 }
 0x68e   : > { %v1782_v29 = vmul.f32 %v7561_v28, %v7557_v16 }
 0x690   : > { %7249 = vmatmul.mubr.msk.f32.vlgmr.msra.gmra.mxu1 %vm1271_vm3, %v1782_v29 }
 0x691   : > { %7257 = vmatpush3.xpose.msk.msra.mxu1 %vm1271_vm3, %v2016_v26  ;;  %7258 = vmatprep.mubr.msk.f32.mxu1 %vm8084_vm2, %v8083_v8 }
 0x692   : > { %7266 = vmatprep.subr.mxu1 %v8083_v8 }
 0x694   : > { %7259 = vmatmul.mubr.msk.f32.vlgmr.msra.gmra.mxu1 %vm1271_vm3, %v2014_v30 }
 0x695   : > { %7268 = vmatprep.mubr.msk.f32.mxu1 %vm8084_vm2, %v8083_v8 }
 0x713   : > { %v8678_v31 = vpop.f32.mrf.mxu0 }
 0x715   : > { %v7245_v32 = vpop.f32.mrf.mxu0 }
 0x717   : > { %v2009_v33 = vpop.f32.mrf.mxu0 }
 0x718   : > { %v2091_v34 = vmul.f32 0.35355338, %v2009_v33 }
 0x719   : > { %v7255_v35 = vpop.f32.mrf.mxu0 }
 0x71a   : > { %v2093_v36 = vadd.f32 %v2091_v34, %v8604_v20 }
 0x71c   : > { %v2095_v37 = vsel %vm1271_vm3, %v2093_v36, -inf }
 0x71d   : > { %2096 = vmax.xlane.f32.xlu0 %v2095_v37 }
 0x750   : > { %v8682_v38 = vpop.f32.mrf.mxu1 }
 0x752   : > { %v7250_v39 = vpop.f32.mrf.mxu1 }
 0x754   : > { %v2087_v40 = vpop.f32.mrf.mxu1 }
 0x755   : > { %v2092_v41 = vmul.f32 0.35355338, %v2087_v40 }
 0x756   : > { %v7260_v42 = vpop.f32.mrf.mxu1 }
 0x757   : > { %v2094_v43 = vadd.f32 %v2092_v41, %v8604_v20  ;;  %v2638_v42 = vld [vmem:[%s8477_s24 + $0x18] sm:$0xff] }
 0x759   : > { %v2098_v44 = vsel %vm1271_vm3, %v2094_v43, -inf }
 0x75a   : > { %2099 = vmax.xlane.f32.xlu1 %v2098_v44  ;;  %v2635_v44 = vld [vmem:[%s8477_s24] sm:$0xff] }
 0x76b   : > { %2117 = vrot.lane.b32.xlu1 %v8580_v12, %s8092_s13 }
 0x76f   : > { %2271 = vrot.lane.b32.xlu1 %v8580_v12, %s8093_s17 }
 0x773   : > { %2349 = vrot.lane.b32.xlu1 %v8584_v13, %s8093_s17 }
 0x777   : > { %2347 = vrot.lane.b32.xlu1 %v8584_v13, %s8094_s6 }
 0x7a6   : > { %v2097_v45 = vpop.xlane.xlu0 %2096 }
 0x7a7   : > { %v2101_v46 = vsub.f32 %v2093_v36, %v2097_v45 }
 0x7a9   : > { %v2103_v47 = vmul.f32 1.442695, %v2101_v46 }
 0x7ab   : > { %7562 = vpow2.f32 %v2103_v47 }
 0x7b8   : > { %v7563_v48 = vpop.eup %7562 }
 0x7b9   : > { %v2107_v49 = vsel %vm1271_vm3, %v7563_v48, 0.0 }
 0x7ba   : > { %2108 = vadd.xlane.f32.xlu0 %v2107_v49 }
 0x7d0   : > { %2193 = vrot.lane.b32.xlu0 %v8584_v13, %s8092_s13 }
 0x7e3   : > { %v2100_v50 = vpop.xlane.xlu1 %2099 }
 0x7e4   : > { %v2102_v51 = vsub.f32 %v2094_v43, %v2100_v50  ;;  %v2636_v43 = vld [vmem:[%s8477_s24 + $0x8] sm:$0xff] }
 0x7e6   : > { %v2105_v52 = vmul.f32 1.442695, %v2102_v51 }
 0x7e7   : > { %v2118_v53 = vpop.permute.xlu1 %2117 }
 0x7e8   : > { %7564 = vpow2.f32 %v2105_v52  ;;  %7262 = vmatpush3.msra.mxu0 %v2118_v53 }
 0x7e9   : > { %7271 = vmatprep.subr.mxu0 %v8083_v8 }
 0x7eb   : > { %v2272_v62 = vpop.permute.xlu1 %2271 }
 0x7ef   : > { %v2350_v2 = vpop.permute.xlu1 %2349 }
 0x7f3   : > { %v2348_v5 = vpop.permute.xlu1 %2347 }
 0x7f5   : > { %v7565_v54 = vpop.eup %7564 }
 0x7f6   : > { %v2110_v55 = vsel %vm1271_vm3, %v7565_v54, 0.0 }
 0x7f7   : > { %2111 = vadd.xlane.f32.xlu0 %v2110_v55 }
 0x80d   : > { %2269 = vrot.lane.b32.xlu0 %v8580_v12, %s8094_s6 }
 0x843   : > { %v2109_v56 = vpop.xlane.xlu0 %2108 }
 0x844   : > { %7566 = vrcp.f32 %v2109_v56 }
 0x847   : > { %v2194_v58 = vpop.permute.xlu0 %2193 }
 0x848   : > { %7267 = vmatpush3.msra.mxu1 %v2194_v58 }
 0x849   : > { %7276 = vmatprep.subr.mxu1 %v8083_v8 }
 0x851   : > { %v7567_v60 = vpop.eup %7566 }
 0x852   : > { %v2115_v61 = vmul.f32 %v7567_v60, %v7563_v48 }
 0x854   : > { %7264 = vmatmul.mubr.msk.f32.vlgmr.msra.gmra.mxu0 %vm1271_vm3, %v2115_v61 }
 0x855   : > { %7272 = vmatpush3.xpose.msk.msra.mxu0 %vm1271_vm3, %v2272_v62  ;;  %7273 = vmatprep.mubr.msk.f32.mxu0 %vm8084_vm2, %v8083_v8 }
 0x856   : > { %7281 = vmatprep.subr.mxu0 %v8083_v8 }
 0x880   : > { %v2112_v63 = vpop.xlane.xlu0 %2111 }
 0x881   : > { %7568 = vrcp.f32 %v2112_v63 }
 0x884   : > { %v2270_v0 = vpop.permute.xlu0 %2269 }
 0x885   : > { %7274 = vmatmul.mubr.msk.f32.vlgmr.msra.gmra.mxu0 %vm1271_vm3, %v2270_v0 }
 0x886   : > { %7283 = vmatprep.mubr.msk.f32.mxu0 %vm8084_vm2, %v8083_v8 }
 0x88e   : > { %v7569_v1 = vpop.eup %7568 }
 0x88f   : > { %v2116_v3 = vmul.f32 %v7569_v1, %v7565_v54 }
 0x891   : > { %7269 = vmatmul.mubr.msk.f32.vlgmr.msra.gmra.mxu1 %vm1271_vm3, %v2116_v3 }
 0x892   : > { %7277 = vmatpush3.xpose.msk.msra.mxu1 %vm1271_vm3, %v2350_v2  ;;  %7278 = vmatprep.mubr.msk.f32.mxu1 %vm8084_vm2, %v8083_v8 }
 0x893   : > { %7286 = vmatprep.subr.mxu1 %v8083_v8 }
 0x895   : > { %7279 = vmatmul.mubr.msk.f32.vlgmr.msra.gmra.mxu1 %vm1271_vm3, %v2348_v5 }
 0x896   : > { %7288 = vmatprep.mubr.msk.f32.mxu1 %vm8084_vm2, %v8083_v8 }
 0x914   : > { %v2189_v6 = vpop.f32.mrf.mxu0 }
 0x916   : > { %v7265_v9 = vpop.f32.mrf.mxu0 }
 0x945   : > { %v2343_v10 = vpop.f32.mrf.mxu0 }
 0x946   : > { %v2425_v11 = vmul.f32 0.35355338, %v2343_v10 }
 0x947   : > { %v7275_v14 = vpop.f32.mrf.mxu0 }
 0x948   : > { %v2427_v15 = vadd.f32 %v2425_v11, %v8604_v20 }
 0x94a   : > { %v2429_v16 = vsel %vm1271_vm3, %v2427_v15, -inf }
 0x94b   : > { %2430 = vmax.xlane.f32.xlu0 %v2429_v16 }
 0x951   : > { %v2265_v18 = vpop.f32.mrf.mxu1 }
 0x953   : > { %v7270_v19 = vpop.f32.mrf.mxu1 }
 0x955   : > { %v2421_v21 = vpop.f32.mrf.mxu1 }
 0x956   : > { %v2426_v22 = vmul.f32 0.35355338, %v2421_v21  ;;  %v2869_v21 = vld [vmem:[%s8493_s5 + $0x18] sm:$0xff] }
 0x957   : > { %v7280_v23 = vpop.f32.mrf.mxu1 }
 0x958   : > { %v2428_v24 = vadd.f32 %v2426_v22, %v8604_v20  ;;  %v2868_v22 = vld [vmem:[%s8493_s5 + $0x10] sm:$0xff]  ;;  %v2867_v23 = vld [vmem:[%s8493_s5 + $0x8] sm:$0xff] }
 0x95a   : > { %v2432_v25 = vsel %vm1271_vm3, %v2428_v24, -inf }
 0x95b   : > { %2433 = vmax.xlane.f32.xlu1 %v2432_v25  ;;  %v2866_v25 = vld [vmem:[%s8493_s5] sm:$0xff] }
 0x96c   : > { %2451 = vrot.lane.b32.xlu1 %v8580_v12, %s8095_s8 }
 0x970   : > { %2605 = vrot.lane.b32.xlu1 %v8678_v31, %s9598_s30 }
 0x974   : > { %2607 = vrot.lane.b32.xlu1 %v8682_v38, %s9598_s30  ;;  %s9652_s30 = scalar_lea.vmem [#allocation10], %s8457_s18 }
 0x978   : > { %2615 = vrot.lane.b32.xlu1 %v2265_v18, %s9596_s21 }
 0x9d4   : > { %v2431_v26 = vpop.xlane.xlu0 %2430 }
 0x9d5   : > { %v2435_v27 = vsub.f32 %v2427_v15, %v2431_v26  ;;  %v2777_v26 = vld [vmem:[%s8485_s2 + $0x18] sm:$0xff] }
 0x9d7   : > { %v2437_v28 = vmul.f32 1.442695, %v2435_v27  ;;  %v2776_v27 = vld [vmem:[%s8485_s2 + $0x10] sm:$0xff] }
 0x9d9   : > { %7570 = vpow2.f32 %v2437_v28 }
 0x9e4   : > { %v2434_v20 = vpop.xlane.xlu1 %2433 }
 0x9e5   : > { %v2436_v29 = vsub.f32 %v2428_v24, %v2434_v20 }
 0x9e6   : > { %v7571_v30 = vpop.eup %7570 }
 0x9e7   : > { %v2439_v32 = vmul.f32 1.442695, %v2436_v29  ;;  %v2441_v12 = vsel %vm1271_vm3, %v7571_v30, 0.0  ;;  %v2775_v29 = vld [vmem:[%s8485_s2 + $0x8] sm:$0xff] }
 0x9e8   : > { %v2452_v33 = vpop.permute.xlu1 %2451  ;;  %2442 = vadd.xlane.f32.xlu0 %v2441_v12 }
 0x9e9   : > { %7572 = vpow2.f32 %v2439_v32  ;;  %7282 = vmatpush3.msra.mxu0 %v2452_v33  ;;  %v2774_v32 = vld [vmem:[%s8485_s2] sm:$0xff]  ;;  %s9651_s2 = scalar_lea.vmem [#allocation13], %s8457_s18 }
 0x9ea   : > { %7291 = vmatprep.subr.mxu0 %v2638_v42 }
 0x9ec   : > { %v2606_v49 = vpop.permute.xlu1 %2605 }
 0x9ed   : > { %v2627_v51 = vsel %vm1271_vm3, %v8642_v57, %v2606_v49 }
 0x9f0   : > { %v2608_v55 = vpop.permute.xlu1 %2607 }
 0x9f1   : > { %v2628_v58 = vsel %vm1271_vm3, %v8644_v59, %v2608_v55  ;;  %v6704_v55 = vld [vmem:[%s9652_s30] ss:$0 sm:$0xff] }
 0x9f4   : > { %v2616_v56 = vpop.permute.xlu1 %2615 }
 0x9f5   : > { %v2631_v60 = vsel %vm2629_vm6, %v2628_v58, %v2616_v56 }
 0x9f6   : > { %v7573_v31 = vpop.eup %7572 }
 0x9f7   : > { %v2444_v34 = vsel %vm1271_vm3, %v7573_v31, 0.0 }
 0x9f8   : > { %2445 = vadd.xlane.f32.xlu0 %v2444_v34 }
 0xa0e   : > { %2527 = vrot.lane.b32.xlu0 %v8584_v13, %s8095_s8  ;;  %v2637_v13 = vld [vmem:[%s8477_s24 + $0x10] sm:$0xff]  ;;  %s9649_s24 = scalar_lea.vmem [#allocation7], %s8457_s18  ;;  %s9650_s8 = sld [smem:[#allocation39_spill]] }
 0xa0f   : > { %v6699_v57 = vld [vmem:[%s9649_s24] ss:$0 sm:$0xff] }
 0xa12   : > { %2613 = vrot.lane.b32.xlu0 %v2189_v6, %s9596_s21 }
 0xa14   : > { %v1165_v24 = vld [vmem:[%s9650_s8] sm:$0xff]  ;;  %v1166_v28 = vld [vmem:[%s9650_s8 + $0x8] sm:$0xff]  ;;  %v1167_v20 = vld [vmem:[%s9650_s8 + $0x10] sm:$0xff] }
 0xa71   : > { %v2443_v35 = vpop.xlane.xlu0 %2442 }
 0xa72   : > { %7574 = vrcp.f32 %v2443_v35 }
 0xa7f   : > { %v7575_v36 = vpop.eup %7574 }
 0xa80   : > { %v2449_v37 = vmul.f32 %v7575_v36, %v7571_v30  ;;  %v1168_v30 = vld [vmem:[%s9650_s8 + $0x18] sm:$0xff] }
 0xa81   : > { %v2446_v38 = vpop.xlane.xlu0 %2445 }
 0xa82   : > { %7576 = vrcp.f32 %v2446_v38  ;;  %7284 = vmatmul.mubr.msk.f32.vlgmr.msra.gmra.mxu0 %vm1271_vm3, %v2449_v37  ;;  %v6702_v38 = vld [vmem:[%s8534_s3] ss:$0 sm:$0xff] }
 0xa83   : > { %7292 = vmatpush3.msra.mxu0 %v2638_v42 }
 0xa84   : > { %7293 = vmatprep.subr.mxu0 %v2637_v13 }
 0xa85   : > { %v2528_v39 = vpop.permute.xlu0 %2527  ;;  %7294 = vmatpush3.msra.mxu0 %v2637_v13 }
 0xa86   : > { %7287 = vmatpush3.msra.mxu1 %v2528_v39  ;;  %7295 = vmatprep.subr.mxu0 %v2636_v43 }
 0xa87   : > { %7296 = vmatpush3.msra.mxu0 %v2636_v43  ;;  %7302 = vmatprep.subr.mxu1 %v2777_v26 }
 0xa88   : > { %7297 = vmatprep.subr.mxu0 %v2635_v44 }
 0xa89   : > { %7298 = vmatpush3.msra.mxu0 %v2635_v44  ;;  %v2614_v50 = vpop.permute.xlu0 %2613 }
 0xa8a   : > { %v2630_v52 = vsel %vm2629_vm6, %v2627_v51, %v2614_v50  ;;  %7313 = vmatprep.subr.mxu0 %v2869_v21 }
 0xa8f   : > { %v7577_v40 = vpop.eup %7576 }
 0xa90   : > { %v2450_v41 = vmul.f32 %v7577_v40, %v7573_v31  ;;  %v6703_v40 = vld [vmem:[%s8539_s4] ss:$0 sm:$0xff] }
 0xa92   : > { %7289 = vmatmul.mubr.msk.f32.vlgmr.msra.gmra.mxu1 %vm1271_vm3, %v2450_v41 }
 0xa93   : > { %7303 = vmatpush3.msra.mxu1 %v2777_v26 }
 0xa94   : > { %7304 = vmatprep.subr.mxu1 %v2776_v27 }
 0xa95   : > { %7305 = vmatpush3.msra.mxu1 %v2776_v27 }
 0xa96   : > { %7306 = vmatprep.subr.mxu1 %v2775_v29 }
 0xa97   : > { %7307 = vmatpush3.msra.mxu1 %v2775_v29 }
 0xa98   : > { %7308 = vmatprep.subr.mxu1 %v2774_v32 }
 0xa99   : > { %7309 = vmatpush3.msra.mxu1 %v2774_v32 }
 0xa9a   : > { %7327 = vmatprep.subr.mxu1 %v8083_v8 }
 0xb42   : > { %v2523_v45 = vpop.f32.mrf.mxu0 }
 0xb43   : > { %2621 = vrot.lane.b32.xlu0 %v2523_v45, %s9594_s27 }
 0xb44   : > { %v7285_v46 = vpop.f32.mrf.mxu0 }
 0xb45   : > { %v6707_v46 = vld [vmem:[%s9651_s2] ss:$0 sm:$0xff] }
 0xb52   : > { %v2599_v47 = vpop.f32.mrf.mxu1 }
 0xb53   : > { %2623 = vrot.lane.b32.xlu1 %v2599_v47, %s9594_s27 }
 0xb54   : > { %v7290_v48 = vpop.f32.mrf.mxu1 }
 0xbb5   : > { %v2622_v53 = vpop.permute.xlu0 %2621 }
 0xbb6   : > { %v2633_v54 = vsel %vm2632_vm5, %v2630_v52, %v2622_v53 }
 0xbb7   : > { %7299 = vmatprep.mubr.msk.f32.mxu0 %vm1186_vm1, %v2633_v54 }
 0xbc5   : > { %v2624_v61 = vpop.permute.xlu1 %2623 }
 0xbc6   : > { %v2634_v62 = vsel %vm2632_vm5, %v2631_v60, %v2624_v61 }
 0xbc7   : > { %7300 = vmatmul.mubr.msk.f32.vlgmr.msra.gmra.mxu0 %vm1186_vm1, %v2634_v62 }
 0xbc8   : > { %7314 = vmatpush3.msra.mxu0 %v2869_v21  ;;  %7321 = vmatprep.mubr.msk.f32.mxu0 %vm1186_vm1, %v1165_v24 }
 0xbc9   : > { %7315 = vmatprep.subr.mxu0 %v2868_v22 }
 0xbca   : > { %7316 = vmatpush3.msra.mxu0 %v2868_v22 }
 0xbcb   : > { %7317 = vmatprep.subr.mxu0 %v2867_v23 }
 0xbcc   : > { %7318 = vmatpush3.msra.mxu0 %v2867_v23 }
 0xbcd   : > { %7319 = vmatprep.subr.mxu0 %v2866_v25 }
 0xbce   : > { %7320 = vmatpush3.msra.mxu0 %v2866_v25 }
 0xbcf   : > { %7322 = vmatmul.mubr.msk.f32.vlgmr.msra.gmra.mxu0 %vm1186_vm1, %v1166_v28  ;;  %7334 = vmatprep.subr.mxu0 %v8083_v8 }
 0xbd0   : > { %7324 = vmatprep.mubr.msk.f32.mxu0 %vm1186_vm1, %v1167_v20 }
 0xbd3   : > { %7325 = vmatmul.mubr.msk.f32.gmra.mxu0 %vm1186_vm1, %v1168_v30 }
 0xbd4   : > { %7338 = vmatprep.mubr.msk.f32.mxu0 %vm8084_vm2, %v8083_v8 }
 0xc87   : > { %v7301_v63 = vpop.f32.mrf.mxu0 }
 0xc88   : > { %v2724_v0 = vadd.f32 %v7301_v63, %v6699_v57 }
 0xc89   : > { %v2718_v1 = vpop.f32.mrf.mxu0 }
 0xc8a   : > { %v2719_v2 = vadd.f32 %v6699_v57, %v2718_v1  ;;  %v2728_v3 = vadd.f32 %v2724_v0, %v8568_v7 }
 0xc8c   : > { %v2732_v5 = vsel %vm1186_vm1, %v2728_v3, 0.0  ;;  %v2727_v6 = vadd.f32 %v2719_v2, %v8559_v4 }
 0xc8d   : > { %2733 = vadd.xlane.f32.xlu1 %v2732_v5 }
 0xc8e   : > { %v2729_v59 = vsel %vm1186_vm1, %v2727_v6, 0.0 }
 0xc8f   : > { %2730 = vadd.xlane.f32.xlu0 %v2729_v59  ;;  %v7323_v47 = vpop.f32.mrf.mxu0 }
 0xc90   : > { %v8798_v48 = vadd.f32 %v7323_v47, %v6707_v46 }
 0xc91   : > { %v2955_v49 = vpop.f32.mrf.mxu0 }
 0xc92   : > { %v8800_v50 = vadd.f32 %v6707_v46, %v2955_v49 }
 0xc93   : > { %v7326_v51 = vpop.f32.mrf.mxu0 }
 0xc94   : > { %v8805_v52 = vadd.f32 %v7326_v51, %v6707_v46 }
 0xc95   : > { %v2965_v53 = vpop.f32.mrf.mxu0 }
 0xc96   : > { %7335 = vmatpush3.xpose.msk.msra.mxu0 %vm1271_vm3, %v8805_v52  ;;  %v8811_v54 = vadd.f32 %v6707_v46, %v2965_v53 }
 0xc97   : > { %7336 = vmatprep.subr.mxu0 %v8083_v8 }
 0xc9a   : > { %7337 = vmatpush3.xpose.msk.msra.mxu0 %vm1271_vm3, %v8811_v54 }
 0xc9b   : > { %7355 = vmatprep.subr.mxu0 %v8083_v8 }
 0xd16   : > { %v2734_v9 = vpop.xlane.xlu1 %2733 }
 0xd17   : > { %v2737_v10 = vmul.f32 0.03125, %v2734_v9 }
 0xd18   : > { %v2731_v11 = vpop.xlane.xlu0 %2730 }
 0xd19   : > { %v2736_v14 = vmul.f32 0.03125, %v2731_v11  ;;  %v2739_v15 = vsub.f32 %v2728_v3, %v2737_v10 }
 0xd1b   : > { %v2738_v16 = vsub.f32 %v2727_v6, %v2736_v14  ;;  %v2741_v19 = vmul.f32 %v2739_v15, %v2739_v15 }
 0xd1d   : > { %v2740_v18 = vmul.f32 %v2738_v16, %v2738_v16  ;;  %v2745_v4 = vsel %vm1186_vm1, %v2741_v19, 0.0 }
 0xd1f   : > { %v2742_v7 = vsel %vm1186_vm1, %v2740_v18, 0.0 }
 0xd20   : > { %2743 = vadd.xlane.f32.xlu0 %v2742_v7 }
 0xd24   : > { %2746 = vadd.xlane.f32.xlu0 %v2745_v4 }
 0xda9   : > { %v2744_v12 = vpop.xlane.xlu0 %2743 }
 0xdaa   : > { %v2748_v33 = vmul.f32 0.03125, %v2744_v12 }
 0xdac   : > { %v2750_v31 = vadd.f32 1e-05, %v2748_v33 }
 0xdad   : > { %v2747_v34 = vpop.xlane.xlu0 %2746 }
 0xdae   : > { %7578 = vrsqrt.f32 %v2750_v31  ;;  %v2749_v35 = vmul.f32 0.03125, %v2747_v34 }
 0xdb0   : > { %v2751_v36 = vadd.f32 1e-05, %v2749_v35 }
 0xdb2   : > { %7580 = vrsqrt.f32 %v2751_v36 }
 0xdbb   : > { %v7579_v37 = vpop.eup %7578 }
 0xdbc   : > { %v2754_v39 = vmul.f32 %v7579_v37, %v2738_v16 }
 0xdbe   : > { %v2763_v41 = vmul.f32 %v6702_v38, %v2754_v39 }
 0xdbf   : > { %v7581_v42 = vpop.eup %7580 }
 0xdc0   : > { %v2755_v13 = vmul.f32 %v7581_v42, %v2739_v15  ;;  %v8786_v43 = vadd.f32 %v6703_v40, %v2763_v41 }
 0xdc2   : > { %v2764_v44 = vmul.f32 %v6702_v38, %v2755_v13  ;;  %7310 = vmatprep.mubr.msk.f32.mxu1 %vm1186_vm1, %v8786_v43 }
 0xdc4   : > { %v8790_v45 = vadd.f32 %v6703_v40, %v2764_v44 }
 0xdc6   : > { %7311 = vmatmul.mubr.msk.f32.vlgmr.msra.gmra.mxu1 %vm1186_vm1, %v8790_v45 }
 0xdc7   : > { %7331 = vmatprep.mubr.msk.f32.mxu1 %vm8084_vm2, %v8083_v8  ;;  %7328 = vmatpush3.xpose.msk.msra.mxu1 %vm1271_vm3, %v8798_v48 }
 0xdc8   : > { %7329 = vmatprep.subr.mxu1 %v8083_v8 }
 0xdcb   : > { %7330 = vmatpush3.xpose.msk.msra.mxu1 %vm1271_vm3, %v8800_v50 }
 0xdcc   : > { %7341 = vmatprep.subr.mxu1 %v8083_v8 }
 0xe86   : > { %v7312_v56 = vpop.f32.mrf.mxu1 }
 0xe87   : > { %v8820_v58 = vadd.f32 %v7312_v56, %v6704_v55 }
 0xe88   : > { %v2857_v60 = vpop.f32.mrf.mxu1 }
 0xe89   : > { %v8822_v61 = vadd.f32 %v6704_v55, %v2857_v60  ;;  %7339 = vmatmul.mubr.msk.f32.vlgmr.msra.gmra.mxu0 %vm1271_vm3, %v8820_v58 }
 0xe8a   : > { %7359 = vmatprep.mubr.msk.f32.mxu0 %vm8084_vm2, %v8083_v8 }
 0xe8b   : > { %7332 = vmatmul.mubr.msk.f32.vlgmr.msra.gmra.mxu1 %vm1271_vm3, %v8822_v61 }
 0xe8c   : > { %7345 = vmatprep.mubr.msk.f32.mxu1 %vm8084_vm2, %v8083_v8 }
 0xf49   : > { %v3128_v62 = vpop.f32.mrf.mxu0 }
 0xf4a   : > { %v3133_v57 = vmul.f32 0.35355338, %v3128_v62 }
 0xf4b   : > { %v3049_v63 = vpop.f32.mrf.mxu1  ;;  %v7340_v0 = vpop.f32.mrf.mxu0 }
 0xf4c   : > { %v3132_v1 = vmul.f32 0.35355338, %v3049_v63  ;;  %v3137_v2 = vsel %vm2629_vm6, %v3133_v57, -inf }
 0xf4d   : > { %3138 = vmax.xlane.f32.xlu0 %v3137_v2  ;;  %v7333_v3 = vpop.f32.mrf.mxu1 }
 0xf4e   : > { %v3134_v5 = vsel %vm2629_vm6, %v3132_v1, -inf }
 0xf4f   : > { %3135 = vmax.xlane.f32.xlu1 %v3134_v5 }
 0xf60   : > { %3158 = vrot.lane.b32.xlu1 %v8798_v48, %s8085_s7 }
 0xf63   : > { %3156 = vrot.lane.b32.xlu0 %v8800_v50, %s8085_s7 }
 0xf64   : > { %3237 = vrot.lane.b32.xlu1 %v8805_v52, %s8085_s7 }
 0xf67   : > { %3318 = vrot.lane.b32.xlu0 %v8798_v48, %s8088_s25 }
 0xf68   : > { %3235 = vrot.lane.b32.xlu1 %v8811_v54, %s8085_s7  ;;  %s9653_s7 = smov 8  }
 0xf6c   : > { %3400 = vrot.lane.b32.xlu1 %v8805_v52, %s8088_s25 }
 0xfd6   : > { %v3139_v6 = vpop.xlane.xlu0 %3138 }
 0xfd7   : > { %v3141_v59 = vsub.f32 %v3133_v57, %v3139_v6 }
 0xfd8   : > { %v3136_v9 = vpop.xlane.xlu1 %3135 }
 0xfd9   : > { %v3144_v10 = vmul.f32 1.442695, %v3141_v59  ;;  %v3140_v11 = vsub.f32 %v3132_v1, %v3136_v9 }
 0xfda   : > { %v3157_v14 = vpop.permute.xlu0 %3156 }
 0xfdb   : > { %7582 = vpow2.f32 %v3144_v10  ;;  %v3142_v15 = vmul.f32 1.442695, %v3140_v11 }
 0xfdc   : > { %v3159_v16 = vpop.permute.xlu1 %3158 }
 0xfdd   : > { %7584 = vpow2.f32 %v3142_v15  ;;  %7342 = vmatpush3.msra.mxu1 %v3159_v16 }
 0xfde   : > { %v3319_v18 = vpop.permute.xlu0 %3318  ;;  %7343 = vmatprep.subr.mxu1 %v8083_v8 }
 0xfdf   : > { %7344 = vmatpush3.msra.mxu1 %v3157_v14  ;;  %7356 = vmatpush3.xpose.msk.msra.mxu0 %vm1271_vm3, %v3319_v18 }
 0xfe0   : > { %7357 = vmatprep.subr.mxu0 %v8083_v8  ;;  %7348 = vmatprep.subr.mxu1 %v8083_v8  ;;  %v3238_v22 = vpop.permute.xlu1 %3237 }
 0xfe4   : > { %v3236_v23 = vpop.permute.xlu1 %3235 }
 0xfe8   : > { %v7583_v7 = vpop.eup %7582  ;;  %v3401_v24 = vpop.permute.xlu1 %3400 }
 0xfe9   : > { %v3149_v19 = vsel %vm2629_vm6, %v7583_v7, 0.0 }
 0xfea   : > { %v7585_v4 = vpop.eup %7584  ;;  %3150 = vadd.xlane.f32.xlu0 %v3149_v19 }
 0xfeb   : > { %v3146_v21 = vsel %vm2629_vm6, %v7585_v4, 0.0 }
 0xfec   : > { %3147 = vadd.xlane.f32.xlu1 %v3146_v21 }
 0xffd   : > { %3398 = vrot.lane.b32.xlu1 %v8811_v54, %s8088_s25 }
0x1000   : > { %3316 = vrot.lane.b32.xlu0 %v8800_v50, %s8088_s25 }
0x1001   : > { %3396 = vrot.lane.b32.xlu1 %v8820_v58, %s8088_s25 }
0x1004   : > { %3314 = vrot.lane.b32.xlu0 %v8822_v61, %s8088_s25  ;;  %s9655_s25 = smov 24  }
0x1073   : > { %v3151_v25 = vpop.xlane.xlu0 %3150 }
0x1075   : > { %v3148_v26 = vpop.xlane.xlu1 %3147 }
0x1076   : > { %7586 = vrcp.f32 %v3148_v26 }
0x1077   : > { %v3317_v27 = vpop.permute.xlu0 %3316  ;;  %7588 = vrcp.f32 %v3151_v25 }
0x1078   : > { %7358 = vmatpush3.xpose.msk.msra.mxu0 %vm1271_vm3, %v3317_v27 }
0x1079   : > { %7369 = vmatprep.subr.mxu0 %v8083_v8  ;;  %v3399_v12 = vpop.permute.xlu1 %3398 }
0x107b   : > { %v3315_v28 = vpop.permute.xlu0 %3314 }
0x107c   : > { %7360 = vmatmul.mubr.msk.f32.vlgmr.msra.gmra.mxu0 %vm1271_vm3, %v3315_v28 }
0x107d   : > { %7373 = vmatprep.mubr.msk.f32.mxu0 %vm8084_vm2, %v8083_v8  ;;  %v3397_v33 = vpop.permute.xlu1 %3396 }
0x1083   : > { %v7587_v20 = vpop.eup %7586 }
0x1084   : > { %v3154_v29 = vmul.f32 %v7587_v20, %v7585_v4  ;;  %v7589_v30 = vpop.eup %7588 }
0x1085   : > { %v3155_v32 = vmul.f32 %v7589_v30, %v7583_v7 }
0x1086   : > { %7346 = vmatmul.mubr.msk.f32.vlgmr.msra.gmra.mxu1 %vm2629_vm6, %v3154_v29 }
0x1087   : > { %7349 = vmatpush3.msra.mxu1 %v3238_v22  ;;  %7352 = vmatprep.mubr.msk.f32.mxu1 %vm8084_vm2, %v8083_v8 }
0x1088   : > { %7350 = vmatprep.subr.mxu1 %v8083_v8 }
0x1089   : > { %7351 = vmatpush3.msra.mxu1 %v3236_v23 }
0x108a   : > { %7362 = vmatprep.subr.mxu1 %v8083_v8  ;;  %7353 = vmatmul.mubr.msk.f32.vlgmr.msra.gmra.mxu1 %vm2629_vm6, %v3155_v32 }
0x108b   : > { %7363 = vmatpush3.xpose.msk.msra.mxu1 %vm1271_vm3, %v3401_v24  ;;  %7366 = vmatprep.mubr.msk.f32.mxu1 %vm8084_vm2, %v8083_v8 }
0x108c   : > { %7364 = vmatprep.subr.mxu1 %v8083_v8 }
0x108f   : > { %7365 = vmatpush3.xpose.msk.msra.mxu1 %vm1271_vm3, %v3399_v12 }
0x1090   : > { %7376 = vmatprep.subr.mxu1 %v8083_v8 }
0x1092   : > { %7367 = vmatmul.mubr.msk.f32.vlgmr.msra.gmra.mxu1 %vm1271_vm3, %v3397_v33 }
0x1093   : > { %7380 = vmatprep.mubr.msk.f32.mxu1 %vm8084_vm2, %v8083_v8 }
0x113c   : > { %v3392_v31 = vpop.f32.mrf.mxu0 }
0x113d   : > { %v3478_v34 = vmul.f32 0.35355338, %v3392_v31 }
0x113e   : > { %v7361_v35 = vpop.f32.mrf.mxu0 }
0x113f   : > { %v3480_v36 = vsel %vm2629_vm6, %v3478_v34, -inf }
0x1140   : > { %3481 = vmax.xlane.f32.xlu0 %v3480_v36 }
0x1146   : > { %v8881_v37 = vpop.f32.mrf.mxu1 }
0x1148   : > { %v7347_v38 = vpop.f32.mrf.mxu1 }
0x114a   : > { %v8883_v39 = vpop.f32.mrf.mxu1 }
0x114c   : > { %v7354_v40 = vpop.f32.mrf.mxu1 }
0x1152   : > { %v3474_v41 = vpop.f32.mrf.mxu1 }
0x1153   : > { %v3479_v42 = vmul.f32 0.35355338, %v3474_v41 }
0x1154   : > { %v7368_v13 = vpop.f32.mrf.mxu1 }
0x1155   : > { %v3483_v44 = vsel %vm2629_vm6, %v3479_v42, -inf }
0x1156   : > { %3484 = vmax.xlane.f32.xlu1 %v3483_v44 }
0x1167   : > { %3504 = vrot.lane.b32.xlu1 %v8798_v48, %s8087_s29 }
0x116b   : > { %3502 = vrot.lane.b32.xlu1 %v8800_v50, %s8087_s29 }
0x116f   : > { %3581 = vrot.lane.b32.xlu1 %v8811_v54, %s8087_s29 }
0x1173   : > { %3746 = vrot.lane.b32.xlu1 %v8805_v52, %s8090_s16 }
0x1177   : > { %3744 = vrot.lane.b32.xlu1 %v8811_v54, %s8090_s16 }
0x117b   : > { %3742 = vrot.lane.b32.xlu1 %v8820_v58, %s8090_s16 }
0x11c9   : > { %v3482_v46 = vpop.xlane.xlu0 %3481 }
0x11ca   : > { %v3486_v47 = vsub.f32 %v3478_v34, %v3482_v46 }
0x11cc   : > { %v3488_v49 = vmul.f32 1.442695, %v3486_v47 }
0x11ce   : > { %7590 = vpow2.f32 %v3488_v49 }
0x11db   : > { %v7591_v51 = vpop.eup %7590 }
0x11dc   : > { %v3492_v53 = vsel %vm2629_vm6, %v7591_v51, 0.0 }
0x11dd   : > { %3493 = vadd.xlane.f32.xlu0 %v3492_v53 }
0x11df   : > { %v3485_v55 = vpop.xlane.xlu1 %3484 }
0x11e0   : > { %v3487_v62 = vsub.f32 %v3479_v42, %v3485_v55 }
0x11e2   : > { %v3490_v57 = vmul.f32 1.442695, %v3487_v62 }
0x11e3   : > { %v3505_v56 = vpop.permute.xlu1 %3504 }
0x11e4   : > { %7370 = vmatpush3.msra.mxu0 %v3505_v56  ;;  %7592 = vpow2.f32 %v3490_v57 }
0x11e5   : > { %7371 = vmatprep.subr.mxu0 %v8083_v8 }
0x11e7   : > { %v3503_v60 = vpop.permute.xlu1 %3502 }
0x11e8   : > { %7372 = vmatpush3.msra.mxu0 %v3503_v60 }
0x11e9   : > { %7383 = vmatprep.subr.mxu0 %v8083_v8 }
0x11eb   : > { %v3582_v3 = vpop.permute.xlu1 %3581 }
0x11ef   : > { %v3747_v14 = vpop.permute.xlu1 %3746 }
0x11f1   : > { %v7593_v63 = vpop.eup %7592 }
0x11f2   : > { %v3495_v0 = vsel %vm2629_vm6, %v7593_v63, 0.0 }
0x11f3   : > { %3583 = vrot.lane.b32.xlu0 %v8805_v52, %s8087_s29  ;;  %v3745_v18 = vpop.permute.xlu1 %3744  ;;  %s9654_s29 = smov 16  }
0x11f7   : > { %3664 = vrot.lane.b32.xlu0 %v8798_v48, %s8090_s16  ;;  %v3743_v7 = vpop.permute.xlu1 %3742 }
0x1216   : > { %3496 = vadd.xlane.f32.xlu0 %v3495_v0 }
0x122c   : > { %3662 = vrot.lane.b32.xlu0 %v8800_v50, %s8090_s16 }
0x1230   : > { %3660 = vrot.lane.b32.xlu0 %v8822_v61, %s8090_s16 }
0x1266   : > { %v3494_v1 = vpop.xlane.xlu0 %3493 }
0x1267   : > { %7594 = vrcp.f32 %v3494_v1 }
0x126a   : > { %v3584_v2 = vpop.permute.xlu0 %3583 }
0x126b   : > { %7377 = vmatpush3.msra.mxu1 %v3584_v2 }
0x126c   : > { %7378 = vmatprep.subr.mxu1 %v8083_v8 }
0x126d   : > { %7379 = vmatpush3.msra.mxu1 %v3582_v3 }
0x126e   : > { %7390 = vmatprep.subr.mxu1 %v8083_v8  ;;  %v3665_v59 = vpop.permute.xlu0 %3664 }
0x1274   : > { %v7595_v5 = vpop.eup %7594 }
0x1275   : > { %v3500_v6 = vmul.f32 %v7595_v5, %v7591_v51 }
0x1277   : > { %7374 = vmatmul.mubr.msk.f32.vlgmr.msra.gmra.mxu0 %vm2629_vm6, %v3500_v6 }
0x1278   : > { %7384 = vmatpush3.xpose.msk.msra.mxu0 %vm1271_vm3, %v3665_v59  ;;  %7387 = vmatprep.mubr.msk.f32.mxu0 %vm8084_vm2, %v8083_v8 }
0x1279   : > { %7385 = vmatprep.subr.mxu0 %v8083_v8 }
0x129f   : > { %v3497_v9 = vpop.xlane.xlu0 %3496 }
0x12a0   : > { %7596 = vrcp.f32 %v3497_v9 }
0x12a3   : > { %v3663_v10 = vpop.permute.xlu0 %3662 }
0x12a4   : > { %7386 = vmatpush3.xpose.msk.msra.mxu0 %vm1271_vm3, %v3663_v10 }
0x12a5   : > { %7397 = vmatprep.subr.mxu0 %v8083_v8 }
0x12a7   : > { %v3661_v11 = vpop.permute.xlu0 %3660 }
0x12a8   : > { %7388 = vmatmul.mubr.msk.f32.vlgmr.msra.gmra.mxu0 %vm1271_vm3, %v3661_v11 }
0x12a9   : > { %7401 = vmatprep.mubr.msk.f32.mxu0 %vm8084_vm2, %v8083_v8 }
0x12ad   : > { %v7597_v15 = vpop.eup %7596 }
0x12ae   : > { %v3501_v16 = vmul.f32 %v7597_v15, %v7593_v63 }
0x12b0   : > { %7381 = vmatmul.mubr.msk.f32.vlgmr.msra.gmra.mxu1 %vm2629_vm6, %v3501_v16 }
0x12b1   : > { %7391 = vmatpush3.xpose.msk.msra.mxu1 %vm1271_vm3, %v3747_v14  ;;  %7394 = vmatprep.mubr.msk.f32.mxu1 %vm8084_vm2, %v8083_v8 }
0x12b2   : > { %7392 = vmatprep.subr.mxu1 %v8083_v8 }
0x12b5   : > { %7393 = vmatpush3.xpose.msk.msra.mxu1 %vm1271_vm3, %v3745_v18 }
0x12b6   : > { %7404 = vmatprep.subr.mxu1 %v8083_v8 }
0x12b8   : > { %7395 = vmatmul.mubr.msk.f32.vlgmr.msra.gmra.mxu1 %vm1271_vm3, %v3743_v7 }
0x12b9   : > { %7408 = vmatprep.mubr.msk.f32.mxu1 %vm8084_vm2, %v8083_v8 }
0x1337   : > { %v8932_v19 = vpop.f32.mrf.mxu0 }
0x1339   : > { %v7375_v4 = vpop.f32.mrf.mxu0 }
0x1368   : > { %v3738_v21 = vpop.f32.mrf.mxu0 }
0x1369   : > { %v3824_v22 = vmul.f32 0.35355338, %v3738_v21 }
0x136a   : > { %v7389_v23 = vpop.f32.mrf.mxu0 }
0x136b   : > { %v3826_v24 = vsel %vm2629_vm6, %v3824_v22, -inf }
0x136c   : > { %3827 = vmax.xlane.f32.xlu0 %v3826_v24 }
0x1370   : > { %v8935_v25 = vpop.f32.mrf.mxu1 }
0x1372   : > { %v7382_v26 = vpop.f32.mrf.mxu1 }
0x1378   : > { %v3820_v27 = vpop.f32.mrf.mxu1 }
0x1379   : > { %v3825_v28 = vmul.f32 0.35355338, %v3820_v27 }
0x137a   : > { %v7396_v20 = vpop.f32.mrf.mxu1 }
0x137b   : > { %v3829_v29 = vsel %vm2629_vm6, %v3825_v28, -inf }
0x137c   : > { %3830 = vmax.xlane.f32.xlu1 %v3829_v29 }
0x138d   : > { %3850 = vrot.lane.b32.xlu1 %v8798_v48, %s8091_s28 }
0x1391   : > { %3848 = vrot.lane.b32.xlu1 %v8800_v50, %s8091_s28 }
0x1395   : > { %3927 = vrot.lane.b32.xlu1 %v8811_v54, %s8091_s28 }
0x1399   : > { %4092 = vrot.lane.b32.xlu1 %v8805_v52, %s8094_s6 }
0x139d   : > { %4090 = vrot.lane.b32.xlu1 %v8811_v54, %s8094_s6 }
0x13a1   : > { %4088 = vrot.lane.b32.xlu1 %v8820_v58, %s8094_s6 }
0x13f5   : > { %v3828_v30 = vpop.xlane.xlu0 %3827 }
0x13f6   : > { %v3832_v32 = vsub.f32 %v3824_v22, %v3828_v30  ;;  %v4385_v30 = vld [vmem:[%s8501_s20 + $0x18] sm:$0xff] }
0x13f8   : > { %v3834_v12 = vmul.f32 1.442695, %v3832_v32  ;;  %v4384_v32 = vld [vmem:[%s8501_s20 + $0x10] sm:$0xff] }
0x13fa   : > { %7598 = vpow2.f32 %v3834_v12  ;;  %v4383_v12 = vld [vmem:[%s8501_s20 + $0x8] sm:$0xff] }
0x1405   : > { %v3831_v33 = vpop.xlane.xlu1 %3830 }
0x1406   : > { %v3833_v58 = vsub.f32 %v3825_v28, %v3831_v33  ;;  %v4382_v33 = vld [vmem:[%s8501_s20] sm:$0xff]  ;;  %s9656_s20 = scalar_lea.vmem [#allocation16], %s8457_s18 }
0x1407   : > { %v7599_v31 = vpop.eup %7598 }
0x1408   : > { %v3838_v34 = vsel %vm2629_vm6, %v7599_v31, 0.0  ;;  %v3836_v38 = vmul.f32 1.442695, %v3833_v58 }
0x1409   : > { %v3851_v35 = vpop.permute.xlu1 %3850  ;;  %3839 = vadd.xlane.f32.xlu0 %v3838_v34 }
0x140a   : > { %7398 = vmatpush3.msra.mxu0 %v3851_v35  ;;  %7600 = vpow2.f32 %v3836_v38 }
0x140b   : > { %7399 = vmatprep.subr.mxu0 %v8083_v8 }
0x140d   : > { %v3849_v36 = vpop.permute.xlu1 %3848 }
0x140e   : > { %7400 = vmatpush3.msra.mxu0 %v3849_v36 }
0x140f   : > { %7411 = vmatprep.subr.mxu0 %v8083_v8 }
0x1411   : > { %v3928_v44 = vpop.permute.xlu1 %3927 }
0x1415   : > { %v4093_v55 = vpop.permute.xlu1 %4092 }
0x1417   : > { %v7601_v40 = vpop.eup %7600 }
0x1418   : > { %v3841_v41 = vsel %vm2629_vm6, %v7601_v40, 0.0 }
0x1419   : > { %v4091_v62 = vpop.permute.xlu1 %4090 }
0x141d   : > { %v4089_v57 = vpop.permute.xlu1 %4088 }
0x141f   : > { %3929 = vrot.lane.b32.xlu0 %v8805_v52, %s8091_s28 }
0x1423   : > { %4010 = vrot.lane.b32.xlu0 %v8798_v48, %s8094_s6 }
0x1442   : > { %3842 = vadd.xlane.f32.xlu0 %v3841_v41 }
0x1458   : > { %4008 = vrot.lane.b32.xlu0 %v8800_v50, %s8094_s6 }
0x145c   : > { %4006 = vrot.lane.b32.xlu0 %v8822_v61, %s8094_s6 }
0x1492   : > { %v3840_v42 = vpop.xlane.xlu0 %3839 }
0x1493   : > { %7602 = vrcp.f32 %v3840_v42 }
0x1496   : > { %v3930_v13 = vpop.permute.xlu0 %3929 }
0x1497   : > { %7405 = vmatpush3.msra.mxu1 %v3930_v13 }
0x1498   : > { %7406 = vmatprep.subr.mxu1 %v8083_v8 }
0x1499   : > { %7407 = vmatpush3.msra.mxu1 %v3928_v44 }
0x149a   : > { %7418 = vmatprep.subr.mxu1 %v8083_v8  ;;  %v4011_v49 = vpop.permute.xlu0 %4010 }
0x14a0   : > { %v7603_v46 = vpop.eup %7602 }
0x14a1   : > { %v3846_v47 = vmul.f32 %v7603_v46, %v7599_v31 }
0x14a3   : > { %7402 = vmatmul.mubr.msk.f32.vlgmr.msra.gmra.mxu0 %vm2629_vm6, %v3846_v47 }
0x14a4   : > { %7412 = vmatpush3.xpose.msk.msra.mxu0 %vm1271_vm3, %v4011_v49  ;;  %7415 = vmatprep.mubr.msk.f32.mxu0 %vm8084_vm2, %v8083_v8 }
0x14a5   : > { %7413 = vmatprep.subr.mxu0 %v8083_v8 }
0x14cb   : > { %v3843_v61 = vpop.xlane.xlu0 %3842 }
0x14cc   : > { %7604 = vrcp.f32 %v3843_v61 }
0x14cf   : > { %v4009_v51 = vpop.permute.xlu0 %4008 }
0x14d0   : > { %7414 = vmatpush3.xpose.msk.msra.mxu0 %vm1271_vm3, %v4009_v51 }
0x14d1   : > { %7425 = vmatprep.subr.mxu0 %v8083_v8 }
0x14d3   : > { %v4007_v53 = vpop.permute.xlu0 %4006 }
0x14d4   : > { %7416 = vmatmul.mubr.msk.f32.vlgmr.msra.gmra.mxu0 %vm1271_vm3, %v4007_v53 }
0x14d5   : > { %7429 = vmatprep.mubr.msk.f32.mxu0 %vm8084_vm2, %v8083_v8 }
0x14d9   : > { %v7605_v56 = vpop.eup %7604 }
0x14da   : > { %v3847_v60 = vmul.f32 %v7605_v56, %v7601_v40 }
0x14dc   : > { %7409 = vmatmul.mubr.msk.f32.vlgmr.msra.gmra.mxu1 %vm2629_vm6, %v3847_v60 }
0x14dd   : > { %7419 = vmatpush3.xpose.msk.msra.mxu1 %vm1271_vm3, %v4093_v55  ;;  %7422 = vmatprep.mubr.msk.f32.mxu1 %vm8084_vm2, %v8083_v8 }
0x14de   : > { %7420 = vmatprep.subr.mxu1 %v8083_v8 }
0x14e1   : > { %7421 = vmatpush3.xpose.msk.msra.mxu1 %vm1271_vm3, %v4091_v62 }
0x14e2   : > { %7432 = vmatprep.subr.mxu1 %v8083_v8 }
0x14e4   : > { %7423 = vmatmul.mubr.msk.f32.vlgmr.msra.gmra.mxu1 %vm1271_vm3, %v4089_v57 }
0x14e5   : > { %7436 = vmatprep.mubr.msk.f32.mxu1 %vm8084_vm2, %v8083_v8 }
0x1563   : > { %v3923_v63 = vpop.f32.mrf.mxu0 }
0x1565   : > { %v7403_v0 = vpop.f32.mrf.mxu0 }
0x1594   : > { %v4084_v1 = vpop.f32.mrf.mxu0 }
0x1595   : > { %v4170_v2 = vmul.f32 0.35355338, %v4084_v1 }
0x1596   : > { %v7417_v3 = vpop.f32.mrf.mxu0 }
0x1597   : > { %v4172_v5 = vsel %vm2629_vm6, %v4170_v2, -inf }
0x1598   : > { %4173 = vmax.xlane.f32.xlu0 %v4172_v5 }
0x159c   : > { %v4002_v6 = vpop.f32.mrf.mxu1 }
0x159e   : > { %v7410_v59 = vpop.f32.mrf.mxu1 }
0x15a4   : > { %v4166_v9 = vpop.f32.mrf.mxu1 }
0x15a5   : > { %v4171_v10 = vmul.f32 0.35355338, %v4166_v9 }
0x15a6   : > { %v7424_v11 = vpop.f32.mrf.mxu1 }
0x15a7   : > { %v4175_v14 = vsel %vm2629_vm6, %v4171_v10, -inf  ;;  %v4573_v11 = vld [vmem:[%s8511_s22 + $0x198] sm:$0xff] }
0x15a8   : > { %4176 = vmax.xlane.f32.xlu1 %v4175_v14  ;;  %v4570_v14 = vld [vmem:[%s8511_s22 + $0x180] sm:$0xff] }
0x15b9   : > { %4196 = vrot.lane.b32.xlu1 %v8798_v48, %s8093_s17 }
0x15bd   : > { %4194 = vrot.lane.b32.xlu1 %v8800_v50, %s8093_s17 }
0x15c1   : > { %4273 = vrot.lane.b32.xlu1 %v8811_v54, %s8093_s17 }
0x15c5   : > { %4356 = vrot.lane.b32.xlu1 %v8935_v25, %s9653_s7 }
0x15c9   : > { %4364 = vrot.lane.b32.xlu1 %v4002_v6, %s9654_s29 }
0x1621   : > { %v4174_v15 = vpop.xlane.xlu0 %4173 }
0x1622   : > { %v4178_v16 = vsub.f32 %v4170_v2, %v4174_v15  ;;  %v4572_v15 = vld [vmem:[%s8511_s22 + $0x190] sm:$0xff] }
0x1624   : > { %v4180_v18 = vmul.f32 1.442695, %v4178_v16  ;;  %v4555_v16 = vld [vmem:[%s8511_s22 + $0x108] sm:$0xff] }
0x1626   : > { %7606 = vpow2.f32 %v4180_v18  ;;  %v4557_v18 = vld [vmem:[%s8511_s22 + $0x118] sm:$0xff] }
0x1631   : > { %v4177_v7 = vpop.xlane.xlu1 %4176 }
0x1632   : > { %v4179_v4 = vsub.f32 %v4171_v10, %v4177_v7  ;;  %v4571_v10 = vld [vmem:[%s8511_s22 + $0x188] sm:$0xff]  ;;  %v4554_v7 = vld [vmem:[%s8511_s22 + $0x100] sm:$0xff] }
0x1633   : > { %v7607_v21 = vpop.eup %7606 }
0x1634   : > { %v4182_v22 = vmul.f32 1.442695, %v4179_v4  ;;  %v4184_v48 = vsel %vm2629_vm6, %v7607_v21, 0.0  ;;  %v4556_v4 = vld [vmem:[%s8511_s22 + $0x110] sm:$0xff] }
0x1635   : > { %v4197_v23 = vpop.permute.xlu1 %4196  ;;  %4185 = vadd.xlane.f32.xlu0 %v4184_v48  ;;  %v4538_v48 = vld [vmem:[%s8511_s22 + $0x80] sm:$0xff] }
0x1636   : > { %7608 = vpow2.f32 %v4182_v22  ;;  %7426 = vmatpush3.msra.mxu0 %v4197_v23  ;;  %v4541_v22 = vld [vmem:[%s8511_s22 + $0x98] sm:$0xff]  ;;  %v4540_v23 = vld [vmem:[%s8511_s22 + $0x90] sm:$0xff] }
0x1637   : > { %7427 = vmatprep.subr.mxu0 %v8083_v8 }
0x1639   : > { %v4195_v50 = vpop.permute.xlu1 %4194 }
0x163a   : > { %7428 = vmatpush3.msra.mxu0 %v4195_v50  ;;  %v4523_v50 = vld [vmem:[%s8511_s22 + $0x8] sm:$0xff] }
0x163b   : > { %7439 = vmatprep.subr.mxu0 %v4385_v30 }
0x1643   : > { %v7609_v54 = vpop.eup %7608 }
0x1644   : > { %v4187_v24 = vsel %vm2629_vm6, %v7609_v54, 0.0 }
0x1645   : > { %4188 = vadd.xlane.f32.xlu0 %v4187_v24  ;;  %v4522_v24 = vld [vmem:[%s8511_s22] sm:$0xff] }
0x165b   : > { %4275 = vrot.lane.b32.xlu0 %v8805_v52, %s8093_s17  ;;  %v4274_v52 = vpop.permute.xlu1 %4273 }
0x165f   : > { %4354 = vrot.lane.b32.xlu0 %v8932_v19, %s9653_s7  ;;  %v4357_v44 = vpop.permute.xlu1 %4356 }
0x1660   : > { %v4377_v47 = vsel %vm1271_vm3, %v8883_v39, %v4357_v44  ;;  %v4558_v44 = vld [vmem:[%s8511_s22 + $0x120] sm:$0xff] }
0x1663   : > { %4362 = vrot.lane.b32.xlu0 %v3923_v63, %s9654_s29  ;;  %v4365_v46 = vpop.permute.xlu1 %4364 }
0x1664   : > { %v4379_v49 = vsel %vm2629_vm6, %v4377_v47, %v4365_v46  ;;  %v4560_v46 = vld [vmem:[%s8511_s22 + $0x130] sm:$0xff] }
0x16be   : > { %v4186_v25 = vpop.xlane.xlu0 %4185 }
0x16bf   : > { %7610 = vrcp.f32 %v4186_v25  ;;  %v4524_v25 = vld [vmem:[%s8511_s22 + $0x10] sm:$0xff] }
0x16cc   : > { %v7611_v26 = vpop.eup %7610 }
0x16cd   : > { %v4192_v27 = vmul.f32 %v7611_v26, %v7607_v21  ;;  %v4539_v21 = vld [vmem:[%s8511_s22 + $0x88] sm:$0xff] }
0x16ce   : > { %v4189_v28 = vpop.xlane.xlu0 %4188  ;;  %v4575_v26 = vld [vmem:[%s8511_s22 + $0x1a8] sm:$0xff] }
0x16cf   : > { %7612 = vrcp.f32 %v4189_v28  ;;  %7430 = vmatmul.mubr.msk.f32.vlgmr.msra.gmra.mxu0 %vm2629_vm6, %v4192_v27  ;;  %v4577_v27 = vld [vmem:[%s8511_s22 + $0x1b8] sm:$0xff] }
0x16d0   : > { %7440 = vmatpush3.msra.mxu0 %v4385_v30 }
0x16d1   : > { %7441 = vmatprep.subr.mxu0 %v4384_v32 }
0x16d2   : > { %v4276_v20 = vpop.permute.xlu0 %4275  ;;  %7442 = vmatpush3.msra.mxu0 %v4384_v32 }
0x16d3   : > { %7433 = vmatpush3.msra.mxu1 %v4276_v20  ;;  %7443 = vmatprep.subr.mxu0 %v4383_v12 }
0x16d4   : > { %7434 = vmatprep.subr.mxu1 %v8083_v8  ;;  %7444 = vmatpush3.msra.mxu0 %v4383_v12  ;;  %v6748_v12 = vld [vmem:[%s8534_s3 + $0x1] ss:$0 sm:$0xff] }
0x16d5   : > { %7435 = vmatpush3.msra.mxu1 %v4274_v52  ;;  %7445 = vmatprep.subr.mxu0 %v4382_v33 }
0x16d6   : > { %7446 = vmatpush3.msra.mxu0 %v4382_v33  ;;  %v4355_v58 = vpop.permute.xlu0 %4354  ;;  %4700 = vmatprep.subr.mxu1 %v4571_v10  ;;  %v4530_v10 = vld [vmem:[%s8511_s22 + $0x40] sm:$0xff] }
0x16d7   : > { %v4376_v40 = vsel %vm1271_vm3, %v8881_v37, %v4355_v58  ;;  %v6744_v37 = vld [vmem:[%s9656_s20] ss:$0 sm:$0xff]  ;;  %4777 = vmatprep.subr.mxu0 %v4573_v11 }
0x16d8   : > { %v4532_v11 = vld [vmem:[%s8511_s22 + $0x50] sm:$0xff] }
0x16da   : > { %v4363_v38 = vpop.permute.xlu0 %4362 }
0x16db   : > { %v4378_v41 = vsel %vm2629_vm6, %v4376_v40, %v4363_v38  ;;  %v4574_v38 = vld [vmem:[%s8511_s22 + $0x1a0] sm:$0xff]  ;;  %v4576_v40 = vld [vmem:[%s8511_s22 + $0x1b0] sm:$0xff] }
0x16dc   : > { %v7613_v19 = vpop.eup %7612 }
0x16dd   : > { %v4193_v29 = vmul.f32 %v7613_v19, %v7609_v54  ;;  %v4525_v54 = vld [vmem:[%s8511_s22 + $0x18] sm:$0xff] }
0x16df   : > { %7437 = vmatmul.mubr.msk.f32.vlgmr.msra.gmra.mxu1 %vm2629_vm6, %v4193_v29 }
0x16e0   : > { %4740 = vmatprep.mubr.f32.mxu1 %v8083_v8  ;;  %4701 = vmatpush1.msra.mxu1 %v4570_v14  ;;  %v4583_v14 = vld [vmem:[%s8511_s22 + $0x1e8] sm:$0xff] }
0x16e1   : > { %4702 = vmatprep.subr.mxu1 %v4555_v16  ;;  %v4582_v16 = vld [vmem:[%s8511_s22 + $0x1e0] sm:$0xff] }
0x16e2   : > { %4703 = vmatpush1.msra.mxu1 %v4554_v7  ;;  %v4567_v7 = vld [vmem:[%s8511_s22 + $0x168] sm:$0xff] }
0x16e3   : > { %4704 = vmatprep.subr.mxu1 %v4539_v21  ;;  %v4566_v21 = vld [vmem:[%s8511_s22 + $0x160] sm:$0xff] }
0x16e4   : > { %4705 = vmatpush1.msra.mxu1 %v4538_v48  ;;  %v4551_v48 = vld [vmem:[%s8511_s22 + $0xe8] sm:$0xff] }
0x16e5   : > { %4706 = vmatprep.subr.mxu1 %v4523_v50  ;;  %v4550_v50 = vld [vmem:[%s8511_s22 + $0xe0] sm:$0xff] }
0x16e6   : > { %4707 = vmatpush1.msra.mxu1 %v4522_v24  ;;  %v4535_v24 = vld [vmem:[%s8511_s22 + $0x68] sm:$0xff] }
0x16e7   : > { %4854 = vmatprep.subr.mxu1 %v4575_v26  ;;  %v4534_v26 = vld [vmem:[%s8511_s22 + $0x60] sm:$0xff] }
0x178f   : > { %v4269_v31 = vpop.f32.mrf.mxu0 }
0x1790   : > { %4370 = vrot.lane.b32.xlu0 %v4269_v31, %s9655_s25  ;;  %v6750_v31 = vld [vmem:[%s8539_s4 + $0x1] ss:$0 sm:$0xff] }
0x1791   : > { %v7431_v34 = vpop.f32.mrf.mxu0 }
0x179f   : > { %v4348_v35 = vpop.f32.mrf.mxu1 }
0x17a0   : > { %4372 = vrot.lane.b32.xlu1 %v4348_v35, %s9655_s25 }
0x17a1   : > { %v7438_v36 = vpop.f32.mrf.mxu1 }
0x1802   : > { %v4371_v42 = vpop.permute.xlu0 %4370 }
0x1803   : > { %v4380_v13 = vsel %vm2632_vm5, %v4378_v41, %v4371_v42  ;;  %v4559_v41 = vld [vmem:[%s8511_s22 + $0x128] sm:$0xff]  ;;  %v4561_v42 = vld [vmem:[%s8511_s22 + $0x138] sm:$0xff] }
0x1804   : > { %7447 = vmatprep.mubr.msk.f32.mxu0 %vm1186_vm1, %v4380_v13 }
0x1812   : > { %v4373_v61 = vpop.permute.xlu1 %4372 }
0x1813   : > { %v4381_v51 = vsel %vm2632_vm5, %v4379_v49, %v4373_v61  ;;  %v4543_v49 = vld [vmem:[%s8511_s22 + $0xa8] sm:$0xff]  ;;  %v4545_v61 = vld [vmem:[%s8511_s22 + $0xb8] sm:$0xff] }
0x1814   : > { %7448 = vmatmul.mubr.msk.f32.vlgmr.msra.gmra.mxu0 %vm1186_vm1, %v4381_v51  ;;  %v4542_v51 = vld [vmem:[%s8511_s22 + $0xa0] sm:$0xff] }
0x1815   : > { %4817 = vmatprep.mubr.f32.mxu0 %v8083_v8  ;;  %4778 = vmatpush1.msra.mxu0 %v4572_v15  ;;  %v4585_v15 = vld [vmem:[%s8511_s22 + $0x1f8] sm:$0xff] }
0x1816   : > { %4779 = vmatprep.subr.mxu0 %v4557_v18  ;;  %v4584_v18 = vld [vmem:[%s8511_s22 + $0x1f0] sm:$0xff] }
0x1817   : > { %4780 = vmatpush1.msra.mxu0 %v4556_v4  ;;  %v4569_v4 = vld [vmem:[%s8511_s22 + $0x178] sm:$0xff] }
0x1818   : > { %4781 = vmatprep.subr.mxu0 %v4541_v22  ;;  %v4568_v22 = vld [vmem:[%s8511_s22 + $0x170] sm:$0xff] }
0x1819   : > { %4782 = vmatpush1.msra.mxu0 %v4540_v23  ;;  %v4553_v23 = vld [vmem:[%s8511_s22 + $0xf8] sm:$0xff] }
0x181a   : > { %4783 = vmatprep.subr.mxu0 %v4525_v54  ;;  %v4552_v54 = vld [vmem:[%s8511_s22 + $0xf0] sm:$0xff] }
0x181b   : > { %4784 = vmatpush1.msra.mxu0 %v4524_v25  ;;  %v4537_v25 = vld [vmem:[%s8511_s22 + $0x78] sm:$0xff] }
0x181c   : > { %4931 = vmatprep.subr.mxu0 %v4577_v27  ;;  %v4536_v27 = vld [vmem:[%s8511_s22 + $0x70] sm:$0xff] }
0x18d4   : > { %v7449_v53 = vpop.f32.mrf.mxu0 }
0x18d5   : > { %v4471_v55 = vadd.f32 %v7449_v53, %v6744_v37  ;;  %v4527_v53 = vld [vmem:[%s8511_s22 + $0x28] sm:$0xff] }
0x18d6   : > { %v4465_v56 = vpop.f32.mrf.mxu0 }
0x18d7   : > { %v4475_v60 = vadd.f32 %v4471_v55, %v8790_v45  ;;  %v4466_v62 = vadd.f32 %v6744_v37, %v4465_v56  ;;  %v4544_v37 = vld [vmem:[%s8511_s22 + $0xb0] sm:$0xff]  ;;  %v4529_v55 = vld [vmem:[%s8511_s22 + $0x38] sm:$0xff]  ;;  %v4526_v56 = vld [vmem:[%s8511_s22 + $0x20] sm:$0xff] }
0x18d9   : > { %v4479_v57 = vsel %vm1186_vm1, %v4475_v60, 0.0  ;;  %v4474_v39 = vadd.f32 %v4466_v62, %v8786_v43  ;;  %v4579_v62 = vld [vmem:[%s8511_s22 + $0x1c8] sm:$0xff] }
0x18da   : > { %4480 = vadd.xlane.f32.xlu1 %v4479_v57  ;;  %v4581_v57 = vld [vmem:[%s8511_s22 + $0x1d8] sm:$0xff] }
0x18db   : > { %v4476_v63 = vsel %vm1186_vm1, %v4474_v39, 0.0 }
0x18dc   : > { %4477 = vadd.xlane.f32.xlu0 %v4476_v63  ;;  %v4580_v63 = vld [vmem:[%s8511_s22 + $0x1d0] sm:$0xff] }
0x1963   : > { %v4481_v0 = vpop.xlane.xlu1 %4480 }
0x1964   : > { %v4483_v1 = vmul.f32 0.03125, %v4481_v0  ;;  %v4563_v0 = vld [vmem:[%s8511_s22 + $0x148] sm:$0xff] }
0x1965   : > { %v4478_v2 = vpop.xlane.xlu0 %4477 }
0x1966   : > { %v4482_v3 = vmul.f32 0.03125, %v4478_v2  ;;  %v4485_v5 = vsub.f32 %v4475_v60, %v4483_v1  ;;  %v4528_v60 = vld [vmem:[%s8511_s22 + $0x30] sm:$0xff]  ;;  %v4565_v1 = vld [vmem:[%s8511_s22 + $0x158] sm:$0xff]  ;;  %v4562_v2 = vld [vmem:[%s8511_s22 + $0x140] sm:$0xff] }
0x1968   : > { %v4484_v45 = vsub.f32 %v4474_v39, %v4482_v3  ;;  %v4487_v43 = vmul.f32 %v4485_v5, %v4485_v5  ;;  %v4578_v39 = vld [vmem:[%s8511_s22 + $0x1c0] sm:$0xff]  ;;  %v4564_v3 = vld [vmem:[%s8511_s22 + $0x150] sm:$0xff] }
0x196a   : > { %v4486_v6 = vmul.f32 %v4484_v45, %v4484_v45  ;;  %v4491_v9 = vsel %vm1186_vm1, %v4487_v43, 0.0  ;;  %v4531_v43 = vld [vmem:[%s8511_s22 + $0x48] sm:$0xff] }
0x196c   : > { %v4488_v59 = vsel %vm1186_vm1, %v4486_v6, 0.0  ;;  %v4546_v6 = vld [vmem:[%s8511_s22 + $0xc0] sm:$0xff] }
0x196d   : > { %4489 = vadd.xlane.f32.xlu0 %v4488_v59  ;;  %v4548_v59 = vld [vmem:[%s8511_s22 + $0xd0] sm:$0xff] }
0x1971   : > { %4492 = vadd.xlane.f32.xlu0 %v4491_v9  ;;  %v4533_v9 = vld [vmem:[%s8511_s22 + $0x58] sm:$0xff] }
0x19f6   : > { %v4490_v28 = vpop.xlane.xlu0 %4489 }
0x19f7   : > { %v4494_v20 = vmul.f32 0.03125, %v4490_v28  ;;  %v5355_v28 = vld [vmem:[%s8521_s9 + $0xf8] sm:$0xff] }
0x19f9   : > { %v4496_v52 = vadd.f32 1e-05, %v4494_v20  ;;  %v5387_v20 = vld [vmem:[%s8521_s9 + $0x1f8] sm:$0xff] }
0x19fa   : > { %v4493_v19 = vpop.xlane.xlu0 %4492 }
0x19fb   : > { %7614 = vrsqrt.f32 %v4496_v52  ;;  %v4495_v29 = vmul.f32 0.03125, %v4493_v19  ;;  %v5339_v52 = vld [vmem:[%s8521_s9 + $0x78] sm:$0xff] }
0x19fc   : > { %v5371_v19 = vld [vmem:[%s8521_s9 + $0x178] sm:$0xff] }
0x19fd   : > { %v4497_v30 = vadd.f32 1e-05, %v4495_v29  ;;  %v5354_v29 = vld [vmem:[%s8521_s9 + $0xf0] sm:$0xff] }
0x19ff   : > { %7616 = vrsqrt.f32 %v4497_v30  ;;  %v5386_v30 = vld [vmem:[%s8521_s9 + $0x1f0] sm:$0xff] }
0x1a08   : > { %v7615_v32 = vpop.eup %7614 }
0x1a09   : > { %v4500_v33 = vmul.f32 %v7615_v32, %v4484_v45  ;;  %v4549_v45 = vld [vmem:[%s8511_s22 + $0xd8] sm:$0xff]  ;;  %v5338_v32 = vld [vmem:[%s8521_s9 + $0x70] sm:$0xff] }
0x1a0b   : > { %v4510_v34 = vmul.f32 %v6748_v12, %v4500_v33  ;;  %v5385_v33 = vld [vmem:[%s8521_s9 + $0x1e8] sm:$0xff] }
0x1a0c   : > { %v7617_v35 = vpop.eup %7616 }
0x1a0d   : > { %v9052_v36 = vadd.f32 %v6750_v31, %v4510_v34  ;;  %v4501_v58 = vmul.f32 %v7617_v35, %v4485_v5  ;;  %v4547_v5 = vld [vmem:[%s8511_s22 + $0xc8] sm:$0xff]  ;;  %v5352_v35 = vld [vmem:[%s8521_s9 + $0xe0] sm:$0xff]  ;;  %s9657_s22 = scalar_lea.vmem [#allocation22], %s8457_s18 }
0x1a0e   : > { %v5369_v34 = vld [vmem:[%s8521_s9 + $0x168] sm:$0xff] }
0x1a0f   : > { %v4511_v13 = vmul.f32 %v6748_v12, %v4501_v58  ;;  %6751 = vmatmul.mubr.msk.f32.vlgmr.msra.gmra.mxu1 %vm1186_vm1, %v9052_v36  ;;  %6753 = vmatmul.mubr.msk.f32.vlgmr.msra.gmra.mxu0 %vm1186_vm1, %v9052_v36  ;;  %v5370_v12 = vld [vmem:[%s8521_s9 + $0x170] sm:$0xff]  ;;  %v5384_v58 = vld [vmem:[%s8521_s9 + $0x1e0] sm:$0xff] }
0x1a10   : > { %4855 = vmatpush1.msra.mxu1 %v4574_v38  ;;  %4932 = vmatpush1.msra.mxu0 %v4576_v40  ;;  %v5336_v38 = vld [vmem:[%s8521_s9 + $0x60] sm:$0xff] }
0x1a11   : > { %v9064_v47 = vadd.f32 %v6750_v31, %v4511_v13  ;;  %4856 = vmatprep.subr.mxu1 %v4559_v41  ;;  %4933 = vmatprep.subr.mxu0 %v4561_v42  ;;  %v5337_v31 = vld [vmem:[%s8521_s9 + $0x68] sm:$0xff]  ;;  %v5368_v40 = vld [vmem:[%s8521_s9 + $0x160] sm:$0xff]  ;;  %v5351_v41 = vld [vmem:[%s8521_s9 + $0xd8] sm:$0xff] }
0x1a12   : > { %4746 = vmatprep.mubr.f32.mxu1 %v8083_v8  ;;  %4823 = vmatprep.mubr.f32.mxu0 %v8083_v8  ;;  %v5383_v42 = vld [vmem:[%s8521_s9 + $0x1d8] sm:$0xff] }
0x1a13   : > { %4857 = vmatpush1.msra.mxu1 %v4558_v44  ;;  %4934 = vmatpush1.msra.mxu0 %v4560_v46  ;;  %v5335_v13 = vld [vmem:[%s8521_s9 + $0x58] sm:$0xff]  ;;  %v5350_v46 = vld [vmem:[%s8521_s9 + $0xd0] sm:$0xff] }
0x1a14   : > { %6752 = vmatmul.mubr.msk.f32.gmra.mxu1 %vm1186_vm1, %v9064_v47  ;;  %6754 = vmatmul.mubr.msk.f32.gmra.mxu0 %vm1186_vm1, %v9064_v47  ;;  %v5367_v44 = vld [vmem:[%s8521_s9 + $0x158] sm:$0xff] }
0x1a15   : > { %4858 = vmatprep.subr.mxu1 %v4543_v49  ;;  %4935 = vmatprep.subr.mxu0 %v4545_v61  ;;  %v5382_v49 = vld [vmem:[%s8521_s9 + $0x1d0] sm:$0xff] }
0x1a16   : > { %4859 = vmatpush1.msra.mxu1 %v4542_v51  ;;  %4936 = vmatpush1.msra.mxu0 %v4544_v37  ;;  %v5334_v61 = vld [vmem:[%s8521_s9 + $0x50] sm:$0xff]  ;;  %v5349_v37 = vld [vmem:[%s8521_s9 + $0xc8] sm:$0xff] }
0x1a17   : > { %4860 = vmatprep.subr.mxu1 %v4527_v53  ;;  %4937 = vmatprep.subr.mxu0 %v4529_v55  ;;  %v5366_v51 = vld [vmem:[%s8521_s9 + $0x150] sm:$0xff]  ;;  %v5381_v53 = vld [vmem:[%s8521_s9 + $0x1c8] sm:$0xff] }
0x1a18   : > { %4861 = vmatpush1.msra.mxu1 %v4526_v56  ;;  %4894 = vmatprep.mubr.f32.mxu1 %v8083_v8  ;;  %v5333_v55 = vld [vmem:[%s8521_s9 + $0x48] sm:$0xff] }
0x1a19   : > { %4938 = vmatpush1.msra.mxu0 %v4528_v60  ;;  %4971 = vmatprep.mubr.f32.mxu0 %v8083_v8  ;;  %v5365_v56 = vld [vmem:[%s8521_s9 + $0x148] sm:$0xff]  ;;  %v5348_v60 = vld [vmem:[%s8521_s9 + $0xc0] sm:$0xff] }
0x1a1a   : > { %6755 = vmatmul.mubr.msk.f32.vlgmr.msra.gmra.mxu1 %vm1186_vm1, %v9052_v36  ;;  %6757 = vmatmul.mubr.msk.f32.vlgmr.msra.gmra.mxu0 %vm1186_vm1, %v9052_v36 }
0x1a1b   : > { %5008 = vmatprep.subr.mxu1 %v4579_v62  ;;  %5085 = vmatprep.subr.mxu0 %v4581_v57  ;;  %v5380_v62 = vld [vmem:[%s8521_s9 + $0x1c0] sm:$0xff] }
0x1a1c   : > { %5009 = vmatpush1.msra.mxu1 %v4578_v39  ;;  %5086 = vmatpush1.msra.mxu0 %v4580_v63  ;;  %v5332_v57 = vld [vmem:[%s8521_s9 + $0x40] sm:$0xff]  ;;  %v5347_v63 = vld [vmem:[%s8521_s9 + $0xb8] sm:$0xff] }
0x1a1d   : > { %5010 = vmatprep.subr.mxu1 %v4563_v0  ;;  %5087 = vmatprep.subr.mxu0 %v4565_v1  ;;  %v5364_v39 = vld [vmem:[%s8521_s9 + $0x140] sm:$0xff]  ;;  %v5379_v0 = vld [vmem:[%s8521_s9 + $0x1b8] sm:$0xff] }
0x1a1e   : > { %4900 = vmatprep.mubr.f32.mxu1 %v8083_v8  ;;  %4977 = vmatprep.mubr.f32.mxu0 %v8083_v8  ;;  %v5331_v1 = vld [vmem:[%s8521_s9 + $0x38] sm:$0xff] }
0x1a1f   : > { %5011 = vmatpush1.msra.mxu1 %v4562_v2  ;;  %5088 = vmatpush1.msra.mxu0 %v4564_v3  ;;  %v5363_v2 = vld [vmem:[%s8521_s9 + $0x138] sm:$0xff]  ;;  %v5346_v3 = vld [vmem:[%s8521_s9 + $0xb0] sm:$0xff] }
0x1a20   : > { %6756 = vmatmul.mubr.msk.f32.gmra.mxu1 %vm1186_vm1, %v9064_v47  ;;  %6758 = vmatmul.mubr.msk.f32.gmra.mxu0 %vm1186_vm1, %v9064_v47 }
0x1a21   : > { %5012 = vmatprep.subr.mxu1 %v4547_v5  ;;  %5089 = vmatprep.subr.mxu0 %v4549_v45  ;;  %v5378_v5 = vld [vmem:[%s8521_s9 + $0x1b0] sm:$0xff] }
0x1a22   : > { %5013 = vmatpush1.msra.mxu1 %v4546_v6  ;;  %5090 = vmatpush1.msra.mxu0 %v4548_v59  ;;  %v5330_v45 = vld [vmem:[%s8521_s9 + $0x30] sm:$0xff]  ;;  %v5345_v59 = vld [vmem:[%s8521_s9 + $0xa8] sm:$0xff] }
0x1a23   : > { %5014 = vmatprep.subr.mxu1 %v4531_v43  ;;  %5091 = vmatprep.subr.mxu0 %v4533_v9  ;;  %v5362_v6 = vld [vmem:[%s8521_s9 + $0x130] sm:$0xff]  ;;  %v5377_v43 = vld [vmem:[%s8521_s9 + $0x1a8] sm:$0xff] }
0x1a24   : > { %5015 = vmatpush1.msra.mxu1 %v4530_v10  ;;  %5048 = vmatprep.mubr.f32.mxu1 %v8083_v8  ;;  %v5329_v9 = vld [vmem:[%s8521_s9 + $0x28] sm:$0xff] }
0x1a25   : > { %5092 = vmatpush1.msra.mxu0 %v4532_v11  ;;  %5125 = vmatprep.mubr.f32.mxu0 %v8083_v8  ;;  %v5361_v10 = vld [vmem:[%s8521_s9 + $0x128] sm:$0xff]  ;;  %v5344_v11 = vld [vmem:[%s8521_s9 + $0xa0] sm:$0xff] }
0x1a26   : > { %6759 = vmatmul.mubr.msk.f32.vlgmr.msra.gmra.mxu1 %vm1186_vm1, %v9052_v36  ;;  %6761 = vmatmul.mubr.msk.f32.vlgmr.msra.gmra.mxu0 %vm1186_vm1, %v9052_v36 }
0x1a27   : > { %5162 = vmatprep.subr.mxu1 %v4583_v14  ;;  %5239 = vmatprep.subr.mxu0 %v4585_v15  ;;  %v5376_v14 = vld [vmem:[%s8521_s9 + $0x1a0] sm:$0xff] }
0x1a28   : > { %5163 = vmatpush1.msra.mxu1 %v4582_v16  ;;  %5240 = vmatpush1.msra.mxu0 %v4584_v18  ;;  %v5328_v15 = vld [vmem:[%s8521_s9 + $0x20] sm:$0xff]  ;;  %v5343_v18 = vld [vmem:[%s8521_s9 + $0x98] sm:$0xff] }
0x1a29   : > { %5164 = vmatprep.subr.mxu1 %v4567_v7  ;;  %5241 = vmatprep.subr.mxu0 %v4569_v4  ;;  %v5360_v16 = vld [vmem:[%s8521_s9 + $0x120] sm:$0xff]  ;;  %v5375_v7 = vld [vmem:[%s8521_s9 + $0x198] sm:$0xff] }
0x1a2a   : > { %5054 = vmatprep.mubr.f32.mxu1 %v8083_v8  ;;  %5131 = vmatprep.mubr.f32.mxu0 %v8083_v8  ;;  %v5327_v4 = vld [vmem:[%s8521_s9 + $0x18] sm:$0xff] }
0x1a2b   : > { %5165 = vmatpush1.msra.mxu1 %v4566_v21  ;;  %5242 = vmatpush1.msra.mxu0 %v4568_v22  ;;  %v5359_v21 = vld [vmem:[%s8521_s9 + $0x118] sm:$0xff]  ;;  %v5342_v22 = vld [vmem:[%s8521_s9 + $0x90] sm:$0xff] }
0x1a2c   : > { %6760 = vmatmul.mubr.msk.f32.gmra.mxu1 %vm1186_vm1, %v9064_v47  ;;  %6762 = vmatmul.mubr.msk.f32.gmra.mxu0 %vm1186_vm1, %v9064_v47 }
0x1a2d   : > { %5166 = vmatprep.subr.mxu1 %v4551_v48  ;;  %5243 = vmatprep.subr.mxu0 %v4553_v23  ;;  %v5374_v48 = vld [vmem:[%s8521_s9 + $0x190] sm:$0xff] }
0x1a2e   : > { %5167 = vmatpush1.msra.mxu1 %v4550_v50  ;;  %5244 = vmatpush1.msra.mxu0 %v4552_v54  ;;  %v5326_v23 = vld [vmem:[%s8521_s9 + $0x10] sm:$0xff]  ;;  %v5341_v54 = vld [vmem:[%s8521_s9 + $0x88] sm:$0xff] }
0x1a2f   : > { %5168 = vmatprep.subr.mxu1 %v4535_v24  ;;  %5245 = vmatprep.subr.mxu0 %v4537_v25  ;;  %v5358_v50 = vld [vmem:[%s8521_s9 + $0x110] sm:$0xff]  ;;  %v5373_v24 = vld [vmem:[%s8521_s9 + $0x188] sm:$0xff] }
0x1a30   : > { %5169 = vmatpush1.msra.mxu1 %v4534_v26  ;;  %5202 = vmatprep.mubr.f32.mxu1 %v8083_v8  ;;  %v5325_v25 = vld [vmem:[%s8521_s9 + $0x8] sm:$0xff] }
0x1a31   : > { %5246 = vmatpush1.msra.mxu0 %v4536_v27  ;;  %5279 = vmatprep.mubr.f32.mxu0 %v8083_v8  ;;  %v5357_v26 = vld [vmem:[%s8521_s9 + $0x108] sm:$0xff]  ;;  %v5340_v27 = vld [vmem:[%s8521_s9 + $0x80] sm:$0xff] }
0x1a32   : > { %6763 = vmatmul.mubr.msk.f32.vlgmr.msra.gmra.mxu1 %vm1186_vm1, %v9052_v36  ;;  %6765 = vmatmul.mubr.msk.f32.vlgmr.msra.gmra.mxu0 %vm1186_vm1, %v9052_v36 }
0x1a33   : > { %5208 = vmatprep.mubr.f32.mxu1 %v8083_v8  ;;  %5285 = vmatprep.mubr.f32.mxu0 %v8083_v8  ;;  %v5353_v8 = vld [vmem:[%s8521_s9 + $0xe8] sm:$0xff] }
0x1a34   : > { %6896 = vmatprep.subr.mxu1 %v5355_v28  ;;  %6934 = vmatprep.subr.mxu0 %v5387_v20  ;;  %v5372_v28 = vld [vmem:[%s8521_s9 + $0x180] sm:$0xff] }
0x1a35   : > { %6897 = vmatpush3.msra.mxu1 %v5339_v52  ;;  %6935 = vmatpush3.msra.mxu0 %v5371_v19  ;;  %v5324_v20 = vld [vmem:[%s8521_s9] sm:$0xff]  ;;  %v5419_v19 = vld [vmem:[%s8521_s9 + $0x2f8] sm:$0xff] }
0x1a36   : > { %6764 = vmatmul.mubr.msk.f32.gmra.mxu1 %vm1186_vm1, %v9064_v47  ;;  %6766 = vmatmul.mubr.msk.f32.gmra.mxu0 %vm1186_vm1, %v9064_v47  ;;  %v5356_v52 = vld [vmem:[%s8521_s9 + $0x100] sm:$0xff] }
0x1a37   : > { %6898 = vmatprep.subr.mxu1 %v5354_v29  ;;  %6936 = vmatprep.subr.mxu0 %v5386_v30  ;;  %v5451_v29 = vld [vmem:[%s8521_s9 + $0x3f8] sm:$0xff]  ;;  %v4608_v30 = vsub.s32 4, %v8600_v17 }
0x1a38   : > { %6899 = vmatpush3.msra.mxu1 %v5338_v32  ;;  %6937 = vmatpush3.msra.mxu0 %v5370_v12  ;;  %v4616_v32 = vsub.s32 6, %v8600_v17  ;;  %v9217_v12 = vld [vmem:[%s8514_s11 + $0x8] sm:$0xff] }
0x1a39   : > { %6900 = vmatprep.subr.mxu1 %v5353_v8  ;;  %6938 = vmatprep.subr.mxu0 %v5385_v33  ;;  %v9222_v8 = vrot.slane %v9217_v12, %v4608_v30 }
0x1a3a   : > { %6901 = vmatpush3.msra.mxu1 %v5337_v31  ;;  %6939 = vmatpush3.msra.mxu0 %v5369_v34  ;;  %v9227_v33 = vrot.slane %v9217_v12, %v4616_v32  ;;  %v4592_v31 = vsub.s32 0, %v8600_v17  ;;  %v4600_v34 = vsub.s32 2, %v8600_v17 }
0x1a3b   : > { %6902 = vmatprep.subr.mxu1 %v5352_v35  ;;  %6940 = vmatprep.subr.mxu0 %v5384_v58  ;;  %v9232_v35 = vld [vmem:[%s8514_s11] sm:$0xff]  ;;  %v4596_v58 = vsub.s32 1, %v8600_v17 }
0x1a3c   : > { %6903 = vmatpush3.msra.mxu1 %v5336_v38  ;;  %6941 = vmatpush3.msra.mxu0 %v5368_v40  ;;  %v4604_v38 = vsub.s32 3, %v8600_v17  ;;  %v4593_v40 = vrot.slane %v9232_v35, %v4592_v31 }
0x1a3d   : > { %6904 = vmatprep.subr.mxu1 %v5351_v41  ;;  %6942 = vmatprep.subr.mxu0 %v5383_v42  ;;  %v4601_v41 = vrot.slane %v9232_v35, %v4600_v34  ;;  %v4597_v42 = vrot.slane %v9232_v35, %v4596_v58 }
0x1a3e   : > { %6905 = vmatpush3.msra.mxu1 %v5335_v13  ;;  %6943 = vmatpush3.msra.mxu0 %v5367_v44  ;;  %v4605_v13 = vrot.slane %v9232_v35, %v4604_v38 }
0x1a3f   : > { %6906 = vmatprep.subr.mxu1 %v5350_v46  ;;  %6944 = vmatprep.subr.mxu0 %v5382_v49 }
0x1a40   : > { %6907 = vmatpush3.msra.mxu1 %v5334_v61  ;;  %6945 = vmatpush3.msra.mxu0 %v5366_v51 }
0x1a41   : > { %6908 = vmatprep.subr.mxu1 %v5349_v37  ;;  %6946 = vmatprep.subr.mxu0 %v5381_v53 }
0x1a42   : > { %6909 = vmatpush3.msra.mxu1 %v5333_v55  ;;  %6947 = vmatpush3.msra.mxu0 %v5365_v56 }
0x1a43   : > { %6910 = vmatprep.subr.mxu1 %v5348_v60  ;;  %6948 = vmatprep.subr.mxu0 %v5380_v62 }
0x1a44   : > { %6911 = vmatpush3.msra.mxu1 %v5332_v57  ;;  %6949 = vmatpush3.msra.mxu0 %v5364_v39 }
0x1a45   : > { %6912 = vmatprep.subr.mxu1 %v5347_v63  ;;  %6950 = vmatprep.subr.mxu0 %v5379_v0  ;;  %v5403_v0 = vld [vmem:[%s8521_s9 + $0x278] sm:$0xff] }
0x1a46   : > { %6913 = vmatpush3.msra.mxu1 %v5331_v1  ;;  %6951 = vmatpush3.msra.mxu0 %v5363_v2  ;;  %v5435_v1 = vld [vmem:[%s8521_s9 + $0x378] sm:$0xff]  ;;  %v4612_v2 = vsub.s32 5, %v8600_v17 }
0x1a47   : > { %6914 = vmatprep.subr.mxu1 %v5346_v3  ;;  %6952 = vmatprep.subr.mxu0 %v5378_v5  ;;  %v4620_v3 = vsub.s32 7, %v8600_v17  ;;  %v5546_v17 = vld [vmem:[%s8521_s9 + $0x6f0] sm:$0xff] }
0x1a48   : > { %6915 = vmatpush3.msra.mxu1 %v5330_v45  ;;  %6953 = vmatpush3.msra.mxu0 %v5362_v6 }
0x1a49   : > { %6916 = vmatprep.subr.mxu1 %v5345_v59  ;;  %6954 = vmatprep.subr.mxu0 %v5377_v43  ;;  %v5418_v59 = vld [vmem:[%s8521_s9 + $0x2f0] sm:$0xff] }
0x1a4a   : > { %6917 = vmatpush3.msra.mxu1 %v5329_v9  ;;  %6955 = vmatpush3.msra.mxu0 %v5361_v10  ;;  %v5450_v43 = vld [vmem:[%s8521_s9 + $0x3f0] sm:$0xff] }
0x1a4b   : > { %6918 = vmatprep.subr.mxu1 %v5344_v11  ;;  %6956 = vmatprep.subr.mxu0 %v5376_v14  ;;  %v5402_v14 = vld [vmem:[%s8521_s9 + $0x270] sm:$0xff] }
0x1a4c   : > { %6919 = vmatpush3.msra.mxu1 %v5328_v15  ;;  %6957 = vmatpush3.msra.mxu0 %v5360_v16  ;;  %v5434_v15 = vld [vmem:[%s8521_s9 + $0x370] sm:$0xff] }
0x1a4d   : > { %6920 = vmatprep.subr.mxu1 %v5343_v18  ;;  %6958 = vmatprep.subr.mxu0 %v5375_v7  ;;  %v9259_v7 = vrot.slane %v9232_v35, %v4612_v2 }
0x1a4e   : > { %6921 = vmatpush3.msra.mxu1 %v5327_v4  ;;  %6959 = vmatpush3.msra.mxu0 %v5359_v21  ;;  %v9264_v4 = vrot.slane %v9232_v35, %v4620_v3  ;;  %v5417_v21 = vld [vmem:[%s8521_s9 + $0x2e8] sm:$0xff] }
0x1a4f   : > { %6922 = vmatprep.subr.mxu1 %v5342_v22  ;;  %6960 = vmatprep.subr.mxu0 %v5374_v48  ;;  %v5449_v22 = vld [vmem:[%s8521_s9 + $0x3e8] sm:$0xff] }
0x1a50   : > { %6923 = vmatpush3.msra.mxu1 %v5326_v23  ;;  %6961 = vmatpush3.msra.mxu0 %v5358_v50 }
0x1a51   : > { %6924 = vmatprep.subr.mxu1 %v5341_v54  ;;  %6962 = vmatprep.subr.mxu0 %v5373_v24  ;;  %v5401_v24 = vld [vmem:[%s8521_s9 + $0x268] sm:$0xff] }
0x1a52   : > { %6925 = vmatpush3.msra.mxu1 %v5325_v25  ;;  %6963 = vmatpush3.msra.mxu0 %v5357_v26  ;;  %v5433_v25 = vld [vmem:[%s8521_s9 + $0x368] sm:$0xff] }
0x1a53   : > { %6926 = vmatprep.subr.mxu1 %v5340_v27  ;;  %6964 = vmatprep.subr.mxu0 %v5372_v28  ;;  %v5416_v28 = vld [vmem:[%s8521_s9 + $0x2e0] sm:$0xff] }
0x1a54   : > { %6927 = vmatpush3.msra.mxu1 %v5324_v20  ;;  %6965 = vmatpush3.msra.mxu0 %v5356_v52  ;;  %v5448_v20 = vld [vmem:[%s8521_s9 + $0x3e0] sm:$0xff] }
0x1a55   : > { %6972 = vmatprep.subr.mxu1 %v5419_v19  ;;  %7010 = vmatprep.subr.mxu0 %v5451_v29  ;;  %v5400_v29 = vld [vmem:[%s8521_s9 + $0x260] sm:$0xff] }
0x1acf   : > { %v4742_v44 = vpop.f32.mrf.mxu1  ;;  %v4819_v46 = vpop.f32.mrf.mxu0 }
0x1ad0   : > { %v4743_v49 = vadd.f32 %v4742_v44, %v4593_v40  ;;  %v4820_v61 = vadd.f32 %v4819_v46, %v4601_v41  ;;  %v5447_v44 = vld [vmem:[%s8521_s9 + $0x3d8] sm:$0xff] }
0x1ad1   : > { %v4744_v51 = vpop.f32.mrf.mxu1  ;;  %v4821_v37 = vpop.f32.mrf.mxu0  ;;  %v5399_v46 = vld [vmem:[%s8521_s9 + $0x258] sm:$0xff] }
0x1ad2   : > { %v4745_v53 = vadd.f32 %v4744_v51, %v4597_v42  ;;  %v4822_v55 = vadd.f32 %v4821_v37, %v4605_v13  ;;  %v5292_v39 = vmax.f32 %v4743_v49, 0.0  ;;  %v5294_v63 = vmax.f32 %v4820_v61, 0.0  ;;  %v5431_v49 = vld [vmem:[%s8521_s9 + $0x358] sm:$0xff]  ;;  %v5414_v61 = vld [vmem:[%s8521_s9 + $0x2d0] sm:$0xff] }
0x1ad3   : > { %v5446_v51 = vld [vmem:[%s8521_s9 + $0x3d0] sm:$0xff] }
0x1ad4   : > { %v5293_v56 = vmax.f32 %v4745_v53, 0.0  ;;  %v5295_v60 = vmax.f32 %v4822_v55, 0.0  ;;  %v4748_v62 = vpop.f32.mrf.mxu1  ;;  %v4825_v57 = vpop.f32.mrf.mxu0  ;;  %v5398_v37 = vld [vmem:[%s8521_s9 + $0x250] sm:$0xff]  ;;  %v5413_v55 = vld [vmem:[%s8521_s9 + $0x2c8] sm:$0xff] }
0x1ad5   : > { %v4749_v5 = vadd.f32 %v4748_v62, %v4593_v40  ;;  %v4826_v9 = vadd.f32 %v4825_v57, %v4601_v41  ;;  %v5432_v40 = vld [vmem:[%s8521_s9 + $0x360] sm:$0xff]  ;;  %v5415_v41 = vld [vmem:[%s8521_s9 + $0x2d8] sm:$0xff]  ;;  %v5430_v53 = vld [vmem:[%s8521_s9 + $0x350] sm:$0xff] }
0x1ad6   : > { %v4750_v45 = vpop.f32.mrf.mxu1  ;;  %v4827_v6 = vpop.f32.mrf.mxu0  ;;  %5651 = vmatprep.mubr.f32.mxu1 %v5293_v56  ;;  %5726 = vmatprep.mubr.f32.mxu0 %v5295_v60  ;;  %v5445_v56 = vld [vmem:[%s8521_s9 + $0x3c8] sm:$0xff]  ;;  %v5412_v57 = vld [vmem:[%s8521_s9 + $0x2c0] sm:$0xff] }
0x1ad7   : > { %v4751_v10 = vadd.f32 %v4750_v45, %v4597_v42  ;;  %v4828_v11 = vadd.f32 %v4827_v6, %v4605_v13  ;;  %5652 = vmatmul.mubr.f32.vlgmr.msra.gmra.mxu1 %v5292_v39  ;;  %5727 = vmatmul.mubr.f32.vlgmr.msra.gmra.mxu0 %v5294_v63  ;;  %v5308_v50 = vmax.f32 %v4749_v5, 0.0  ;;  %v5310_v54 = vmax.f32 %v4826_v9, 0.0  ;;  %v5397_v60 = vld [vmem:[%s8521_s9 + $0x248] sm:$0xff]  ;;  %v5444_v39 = vld [vmem:[%s8521_s9 + $0x3c0] sm:$0xff]  ;;  %v5443_v5 = vld [vmem:[%s8521_s9 + $0x3b8] sm:$0xff] }
0x1ad8   : > { %6973 = vmatpush3.msra.mxu1 %v5403_v0  ;;  %7011 = vmatpush3.msra.mxu0 %v5435_v1  ;;  %v5429_v62 = vld [vmem:[%s8521_s9 + $0x348] sm:$0xff]  ;;  %v5396_v63 = vld [vmem:[%s8521_s9 + $0x240] sm:$0xff]  ;;  %v5411_v1 = vld [vmem:[%s8521_s9 + $0x2b8] sm:$0xff] }
0x1ad9   : > { %v5309_v16 = vmax.f32 %v4751_v10, 0.0  ;;  %v5311_v18 = vmax.f32 %v4828_v11, 0.0  ;;  %6974 = vmatprep.subr.mxu1 %v5418_v59  ;;  %7012 = vmatprep.subr.mxu0 %v5450_v43  ;;  %v5428_v0 = vld [vmem:[%s8521_s9 + $0x340] sm:$0xff]  ;;  %v5395_v45 = vld [vmem:[%s8521_s9 + $0x238] sm:$0xff]  ;;  %v5410_v59 = vld [vmem:[%s8521_s9 + $0x2b0] sm:$0xff] }
0x1ada   : > { %v9268_v48 = vpop.f32.mrf.mxu1  ;;  %v9270_v23 = vpop.f32.mrf.mxu0  ;;  %6975 = vmatpush3.msra.mxu1 %v5402_v14  ;;  %7013 = vmatpush3.msra.mxu0 %v5434_v15  ;;  %v5427_v6 = vld [vmem:[%s8521_s9 + $0x338] sm:$0xff]  ;;  %v5442_v43 = vld [vmem:[%s8521_s9 + $0x3b0] sm:$0xff]  ;;  %v5409_v11 = vld [vmem:[%s8521_s9 + $0x2a8] sm:$0xff] }
0x1adb   : > { %5656 = vmatprep.mubr.f32.mxu1 %v5309_v16  ;;  %5731 = vmatprep.mubr.f32.mxu0 %v5311_v18  ;;  %v5394_v9 = vld [vmem:[%s8521_s9 + $0x230] sm:$0xff]  ;;  %v5441_v14 = vld [vmem:[%s8521_s9 + $0x3a8] sm:$0xff] }
0x1adc   : > { %v4898_v26 = vpop.f32.mrf.mxu1  ;;  %v4975_v27 = vpop.f32.mrf.mxu0  ;;  %6976 = vmatprep.subr.mxu1 %v5417_v21  ;;  %7014 = vmatprep.subr.mxu0 %v5449_v22  ;;  %v5426_v10 = vld [vmem:[%s8521_s9 + $0x330] sm:$0xff]  ;;  %v5393_v15 = vld [vmem:[%s8521_s9 + $0x228] sm:$0xff]  ;;  %v5408_v21 = vld [vmem:[%s8521_s9 + $0x2a0] sm:$0xff] }
0x1add   : > { %v4899_v52 = vadd.f32 %v4898_v26, %v9259_v7  ;;  %v4976_v19 = vadd.f32 %v4975_v27, %v9264_v4  ;;  %5657 = vmatmul.mubr.f32.gmra.mxu1 %v5308_v50  ;;  %5732 = vmatmul.mubr.f32.gmra.mxu0 %v5310_v54  ;;  %v5425_v16 = vld [vmem:[%s8521_s9 + $0x328] sm:$0xff]  ;;  %v5440_v22 = vld [vmem:[%s8521_s9 + $0x3a0] sm:$0xff]  ;;  %v5439_v26 = vld [vmem:[%s8521_s9 + $0x398] sm:$0xff]  ;;  %v4609_v27 = vrot.slane %v9232_v35, %v4608_v30 }
0x1ade   : > { %6977 = vmatpush3.msra.mxu1 %v5401_v24  ;;  %7015 = vmatpush3.msra.mxu0 %v5433_v25  ;;  %v5392_v54 = vld [vmem:[%s8521_s9 + $0x220] sm:$0xff]  ;;  %v5407_v25 = vld [vmem:[%s8521_s9 + $0x298] sm:$0xff]  ;;  %v5390_v30 = vld [vmem:[%s8521_s9 + $0x210] sm:$0xff] }
0x1adf   : > { %v5297_v42 = vmax.f32 %v4899_v52, 0.0  ;;  %v5299_v13 = vmax.f32 %v4976_v19, 0.0  ;;  %6978 = vmatprep.subr.mxu1 %v5416_v28  ;;  %7016 = vmatprep.subr.mxu0 %v5448_v20  ;;  %v5424_v24 = vld [vmem:[%s8521_s9 + $0x320] sm:$0xff]  ;;  %v4617_v28 = vrot.slane %v9232_v35, %v4616_v32  ;;  %v5391_v20 = vld [vmem:[%s8521_s9 + $0x218] sm:$0xff]  ;;  %v5422_v32 = vld [vmem:[%s8521_s9 + $0x310] sm:$0xff] }
0x1ae0   : > { %6979 = vmatpush3.msra.mxu1 %v5400_v29  ;;  %7017 = vmatpush3.msra.mxu0 %v5432_v40  ;;  %v9308_v18 = vpop.f32.mrf.mxu1  ;;  %v4979_v50 = vpop.f32.mrf.mxu0  ;;  %v5423_v52 = vld [vmem:[%s8521_s9 + $0x318] sm:$0xff]  ;;  %v5406_v29 = vld [vmem:[%s8521_s9 + $0x290] sm:$0xff]  ;;  %v5405_v35 = vld [vmem:[%s8521_s9 + $0x288] sm:$0xff] }
0x1ae1   : > { %6980 = vmatprep.subr.mxu1 %v5415_v41  ;;  %5801 = vmatprep.mubr.f32.mxu1 %v5297_v42  ;;  %v5438_v40 = vld [vmem:[%s8521_s9 + $0x390] sm:$0xff]  ;;  %v5437_v42 = vld [vmem:[%s8521_s9 + $0x388] sm:$0xff] }
0x1ae2   : > { %7018 = vmatprep.subr.mxu0 %v5447_v44  ;;  %5876 = vmatprep.mubr.f32.mxu0 %v5299_v13  ;;  %v4904_v19 = vpop.f32.mrf.mxu1  ;;  %v4981_v41 = vpop.f32.mrf.mxu0  ;;  %v4897_v13 = vadd.f32 %v9268_v48, %v4609_v27  ;;  %v4974_v44 = vadd.f32 %v9270_v23, %v4617_v28  ;;  %v5388_v23 = vld [vmem:[%s8521_s9 + $0x200] sm:$0xff] }
0x1ae3   : > { %6981 = vmatpush3.msra.mxu1 %v5399_v46  ;;  %7019 = vmatpush3.msra.mxu0 %v5431_v49  ;;  %v5389_v46 = vld [vmem:[%s8521_s9 + $0x208] sm:$0xff]  ;;  %v4982_v48 = vadd.f32 %v4981_v41, %v9264_v4  ;;  %v5515_v4 = vld [vmem:[%s8521_s9 + $0x5f8] sm:$0xff]  ;;  %v5510_v41 = vld [vmem:[%s8521_s9 + $0x5d0] sm:$0xff] }
0x1ae4   : > { %6982 = vmatprep.subr.mxu1 %v5414_v61  ;;  %7020 = vmatprep.subr.mxu0 %v5446_v51  ;;  %v5421_v49 = vld [vmem:[%s8521_s9 + $0x308] sm:$0xff]  ;;  %v5404_v51 = vld [vmem:[%s8521_s9 + $0x280] sm:$0xff] }
0x1ae5   : > { %6983 = vmatpush3.msra.mxu1 %v5398_v37  ;;  %7021 = vmatpush3.msra.mxu0 %v5430_v53  ;;  %v5436_v37 = vld [vmem:[%s8521_s9 + $0x380] sm:$0xff]  ;;  %v4905_v53 = vadd.f32 %v4904_v19, %v9259_v7  ;;  %v5483_v7 = vld [vmem:[%s8521_s9 + $0x4f8] sm:$0xff] }
0x1ae6   : > { %6984 = vmatprep.subr.mxu1 %v5413_v55  ;;  %7022 = vmatprep.subr.mxu0 %v5445_v56  ;;  %v9334_v61 = vpop.f32.mrf.mxu1  ;;  %v9340_v55 = vpop.f32.mrf.mxu0  ;;  %v5420_v56 = vld [vmem:[%s8521_s9 + $0x300] sm:$0xff]  ;;  %v5463_v19 = vld [vmem:[%s8521_s9 + $0x458] sm:$0xff] }
0x1ae7   : > { %6985 = vmatpush3.msra.mxu1 %v5397_v60  ;;  %7023 = vmatpush3.msra.mxu0 %v5429_v62  ;;  %v5296_v60 = vmax.f32 %v4897_v13, 0.0  ;;  %v5298_v62 = vmax.f32 %v4974_v44, 0.0  ;;  %v5461_v13 = vld [vmem:[%s8521_s9 + $0x448] sm:$0xff] }
0x1ae8   : > { %6986 = vmatprep.subr.mxu1 %v5412_v57  ;;  %7024 = vmatprep.subr.mxu0 %v5444_v39  ;;  %v9347_v57 = vrot.slane %v9217_v12, %v4596_v58  ;;  %v5052_v39 = vpop.f32.mrf.mxu1  ;;  %v4980_v58 = vadd.f32 %v4979_v50, %v4617_v28  ;;  %v5496_v28 = vld [vmem:[%s8521_s9 + $0x560] sm:$0xff]  ;;  %v5493_v44 = vld [vmem:[%s8521_s9 + $0x548] sm:$0xff] }
0x1ae9   : > { %6987 = vmatpush3.msra.mxu1 %v5396_v63  ;;  %7025 = vmatpush3.msra.mxu0 %v5428_v0  ;;  %v9354_v63 = vrot.slane %v9217_v12, %v4604_v38  ;;  %v4903_v0 = vadd.f32 %v9308_v18, %v4609_v27  ;;  %v5482_v38 = vld [vmem:[%s8521_s9 + $0x4f0] sm:$0xff]  ;;  %v5481_v18 = vld [vmem:[%s8521_s9 + $0x4e8] sm:$0xff]  ;;  %v5464_v27 = vld [vmem:[%s8521_s9 + $0x460] sm:$0xff] }
0x1aea   : > { %6988 = vmatprep.subr.mxu1 %v5411_v1  ;;  %7026 = vmatprep.subr.mxu0 %v5443_v5  ;;  %v5313_v1 = vmax.f32 %v4905_v53, 0.0  ;;  %v5315_v5 = vmax.f32 %v4982_v48, 0.0  ;;  %v5475_v53 = vld [vmem:[%s8521_s9 + $0x4b8] sm:$0xff] }
0x1aeb   : > { %6989 = vmatpush3.msra.mxu1 %v5395_v45  ;;  %7027 = vmatpush3.msra.mxu0 %v5427_v6  ;;  %v5129_v45 = vpop.f32.mrf.mxu0  ;;  %v5467_v6 = vld [vmem:[%s8521_s9 + $0x478] sm:$0xff] }
0x1aec   : > { %6990 = vmatprep.subr.mxu1 %v5410_v59  ;;  %7028 = vmatprep.subr.mxu0 %v5442_v43  ;;  %v5499_v59 = vld [vmem:[%s8521_s9 + $0x578] sm:$0xff]  ;;  %v5514_v43 = vld [vmem:[%s8521_s9 + $0x5f0] sm:$0xff] }
0x1aed   : > { %6991 = vmatpush3.msra.mxu1 %v5394_v9  ;;  %7029 = vmatpush3.msra.mxu0 %v5426_v10  ;;  %v5053_v9 = vadd.f32 %v5052_v39, %v9347_v57  ;;  %v5466_v10 = vld [vmem:[%s8521_s9 + $0x470] sm:$0xff]  ;;  %v5507_v48 = vld [vmem:[%s8521_s9 + $0x5b8] sm:$0xff]  ;;  %v5473_v39 = vld [vmem:[%s8521_s9 + $0x4a8] sm:$0xff] }
0x1aee   : > { %6992 = vmatprep.subr.mxu1 %v5409_v11  ;;  %7030 = vmatprep.subr.mxu0 %v5441_v14  ;;  %v5498_v11 = vld [vmem:[%s8521_s9 + $0x570] sm:$0xff]  ;;  %v5130_v14 = vadd.f32 %v5129_v45, %v9354_v63  ;;  %v5472_v45 = vld [vmem:[%s8521_s9 + $0x4a0] sm:$0xff] }
0x1aef   : > { %6993 = vmatpush3.msra.mxu1 %v5393_v15  ;;  %7031 = vmatpush3.msra.mxu0 %v5425_v16  ;;  %v5312_v15 = vmax.f32 %v4903_v0, 0.0  ;;  %v5314_v16 = vmax.f32 %v4980_v58, 0.0  ;;  %v5301_v50 = vmax.f32 %v5053_v9, 0.0  ;;  %v5505_v0 = vld [vmem:[%s8521_s9 + $0x5a8] sm:$0xff]  ;;  %v5471_v9 = vld [vmem:[%s8521_s9 + $0x498] sm:$0xff] }
0x1af0   : > { %6994 = vmatprep.subr.mxu1 %v5408_v21  ;;  %7032 = vmatprep.subr.mxu0 %v5440_v22  ;;  %v5513_v21 = vld [vmem:[%s8521_s9 + $0x5e8] sm:$0xff] }
0x1af1   : > { %6995 = vmatpush3.msra.mxu1 %v5392_v54  ;;  %7033 = vmatpush3.msra.mxu0 %v5424_v24  ;;  %v5465_v22 = vld [vmem:[%s8521_s9 + $0x468] sm:$0xff]  ;;  %v5303_v24 = vmax.f32 %v5130_v14, 0.0  ;;  %v4633_v14 = vrot.slane %v9217_v12, %v4600_v34  ;;  %v5486_v34 = vld [vmem:[%s8521_s9 + $0x510] sm:$0xff] }
0x1af2   : > { %6996 = vmatprep.subr.mxu1 %v5407_v25  ;;  %7034 = vmatprep.subr.mxu0 %v5439_v26  ;;  %v5497_v54 = vld [vmem:[%s8521_s9 + $0x568] sm:$0xff]  ;;  %v5480_v25 = vld [vmem:[%s8521_s9 + $0x4e0] sm:$0xff] }
0x1af3   : > { %6997 = vmatpush3.msra.mxu1 %v5391_v20  ;;  %7035 = vmatpush3.msra.mxu0 %v5423_v52  ;;  %v5512_v26 = vld [vmem:[%s8521_s9 + $0x5e0] sm:$0xff]  ;;  %v5479_v20 = vld [vmem:[%s8521_s9 + $0x4d8] sm:$0xff]  ;;  %v5457_v58 = vld [vmem:[%s8521_s9 + $0x428] sm:$0xff] }
0x1af4   : > { %6998 = vmatprep.subr.mxu1 %v5406_v29  ;;  %7036 = vmatprep.subr.mxu0 %v5438_v40  ;;  %v5511_v52 = vld [vmem:[%s8521_s9 + $0x5d8] sm:$0xff]  ;;  %v5478_v40 = vld [vmem:[%s8521_s9 + $0x4d0] sm:$0xff] }
0x1af5   : > { %6999 = vmatpush3.msra.mxu1 %v5390_v30  ;;  %7037 = vmatpush3.msra.mxu0 %v5422_v32  ;;  %v5495_v29 = vld [vmem:[%s8521_s9 + $0x558] sm:$0xff]  ;;  %v5462_v30 = vld [vmem:[%s8521_s9 + $0x450] sm:$0xff] }
0x1af6   : > { %7000 = vmatprep.subr.mxu1 %v5405_v35  ;;  %7038 = vmatprep.subr.mxu0 %v5437_v42  ;;  %v5494_v32 = vld [vmem:[%s8521_s9 + $0x550] sm:$0xff]  ;;  %v5477_v35 = vld [vmem:[%s8521_s9 + $0x4c8] sm:$0xff] }
0x1af7   : > { %7001 = vmatpush3.msra.mxu1 %v5389_v46  ;;  %7039 = vmatpush3.msra.mxu0 %v5421_v49  ;;  %v5509_v42 = vld [vmem:[%s8521_s9 + $0x5c8] sm:$0xff]  ;;  %v5476_v46 = vld [vmem:[%s8521_s9 + $0x4c0] sm:$0xff] }
0x1af8   : > { %7002 = vmatprep.subr.mxu1 %v5404_v51  ;;  %7040 = vmatprep.subr.mxu0 %v5436_v37  ;;  %v5508_v49 = vld [vmem:[%s8521_s9 + $0x5c0] sm:$0xff] }
0x1af9   : > { %7003 = vmatpush3.msra.mxu1 %v5388_v23  ;;  %7041 = vmatpush3.msra.mxu0 %v5420_v56  ;;  %v5460_v51 = vld [vmem:[%s8521_s9 + $0x440] sm:$0xff]  ;;  %v5459_v23 = vld [vmem:[%s8521_s9 + $0x438] sm:$0xff] }
0x1afa   : > { %5802 = vmatmul.mubr.f32.vlgmr.msra.gmra.mxu1 %v5296_v60  ;;  %5877 = vmatmul.mubr.f32.vlgmr.msra.gmra.mxu0 %v5298_v62  ;;  %v5492_v37 = vld [vmem:[%s8521_s9 + $0x540] sm:$0xff]  ;;  %v5491_v56 = vld [vmem:[%s8521_s9 + $0x538] sm:$0xff]  ;;  %v5474_v60 = vld [vmem:[%s8521_s9 + $0x4b0] sm:$0xff] }
0x1afb   : > { %7048 = vmatprep.subr.mxu1 %v5483_v7  ;;  %7086 = vmatprep.subr.mxu0 %v5515_v4  ;;  %v5506_v62 = vld [vmem:[%s8521_s9 + $0x5b0] sm:$0xff] }
0x1afc   : > { %5806 = vmatprep.mubr.f32.mxu1 %v5313_v1  ;;  %5881 = vmatprep.mubr.f32.mxu0 %v5315_v5  ;;  %v5458_v7 = vld [vmem:[%s8521_s9 + $0x430] sm:$0xff]  ;;  %v5489_v1 = vld [vmem:[%s8521_s9 + $0x528] sm:$0xff]  ;;  %v9401_v5 = vpop.f32.mrf.mxu1 }
0x1afd   : > { %7049 = vmatpush3.msra.mxu1 %v5467_v6  ;;  %7087 = vmatpush3.msra.mxu0 %v5499_v59  ;;  %v5490_v4 = vld [vmem:[%s8521_s9 + $0x530] sm:$0xff]  ;;  %v5504_v6 = vld [vmem:[%s8521_s9 + $0x5a0] sm:$0xff]  ;;  %v5133_v59 = vpop.f32.mrf.mxu0 }
0x1afe   : > { %7050 = vmatprep.subr.mxu1 %v5482_v38  ;;  %7088 = vmatprep.subr.mxu0 %v5514_v43  ;;  %v5456_v38 = vld [vmem:[%s8521_s9 + $0x420] sm:$0xff] }
0x1aff   : > { %7051 = vmatpush3.msra.mxu1 %v5466_v10  ;;  %7089 = vmatpush3.msra.mxu0 %v5498_v11  ;;  %v5488_v43 = vld [vmem:[%s8521_s9 + $0x520] sm:$0xff]  ;;  %v5503_v10 = vld [vmem:[%s8521_s9 + $0x598] sm:$0xff]  ;;  %v4625_v11 = vrot.slane %v9217_v12, %v4592_v31  ;;  %v5454_v31 = vld [vmem:[%s8521_s9 + $0x410] sm:$0xff] }
0x1b00   : > { %5807 = vmatmul.mubr.f32.gmra.mxu1 %v5312_v15  ;;  %5882 = vmatmul.mubr.f32.gmra.mxu0 %v5314_v16  ;;  %v5455_v15 = vld [vmem:[%s8521_s9 + $0x418] sm:$0xff] }
0x1b01   : > { %7052 = vmatprep.subr.mxu1 %v5481_v18  ;;  %7090 = vmatprep.subr.mxu0 %v5513_v21  ;;  %v5487_v16 = vld [vmem:[%s8521_s9 + $0x518] sm:$0xff]  ;;  %v5058_v18 = vpop.f32.mrf.mxu1  ;;  %v5470_v21 = vld [vmem:[%s8521_s9 + $0x490] sm:$0xff] }
0x1b02   : > { %7053 = vmatpush3.msra.mxu1 %v5465_v22  ;;  %5951 = vmatprep.mubr.f32.mxu1 %v5301_v50  ;;  %v5502_v22 = vld [vmem:[%s8521_s9 + $0x590] sm:$0xff]  ;;  %v5135_v50 = vpop.f32.mrf.mxu0 }
0x1b03   : > { %7091 = vmatpush3.msra.mxu0 %v5497_v54  ;;  %6026 = vmatprep.mubr.f32.mxu0 %v5303_v24  ;;  %v5469_v54 = vld [vmem:[%s8521_s9 + $0x488] sm:$0xff] }
0x1b04   : > { %7054 = vmatprep.subr.mxu1 %v5480_v25  ;;  %7092 = vmatprep.subr.mxu0 %v5512_v26  ;;  %v5501_v24 = vld [vmem:[%s8521_s9 + $0x588] sm:$0xff]  ;;  %v5051_v25 = vadd.f32 %v9334_v61, %v4625_v11  ;;  %v5128_v26 = vadd.f32 %v9340_v55, %v4633_v14  ;;  %v5136_v61 = vadd.f32 %v5135_v50, %v9354_v63  ;;  %v5452_v55 = vld [vmem:[%s8521_s9 + $0x400] sm:$0xff]  ;;  %v5579_v63 = vld [vmem:[%s8521_s9 + $0x7f8] sm:$0xff] }
0x1b05   : > { %7055 = vmatpush3.msra.mxu1 %v5464_v27  ;;  %7093 = vmatpush3.msra.mxu0 %v5496_v28  ;;  %v5453_v27 = vld [vmem:[%s8521_s9 + $0x408] sm:$0xff] }
0x1b06   : > { %7056 = vmatprep.subr.mxu1 %v5479_v20  ;;  %7094 = vmatprep.subr.mxu0 %v5511_v52  ;;  %v5485_v28 = vld [vmem:[%s8521_s9 + $0x508] sm:$0xff]  ;;  %v9427_v20 = vpop.f32.mrf.mxu1  ;;  %v5468_v52 = vld [vmem:[%s8521_s9 + $0x480] sm:$0xff] }
0x1b07   : > { %7057 = vmatpush3.msra.mxu1 %v5463_v19  ;;  %7095 = vmatpush3.msra.mxu0 %v5495_v29  ;;  %v5500_v19 = vld [vmem:[%s8521_s9 + $0x580] sm:$0xff]  ;;  %v5059_v29 = vadd.f32 %v5058_v18, %v9347_v57  ;;  %v5547_v57 = vld [vmem:[%s8521_s9 + $0x6f8] sm:$0xff]  ;;  %v5541_v18 = vld [vmem:[%s8521_s9 + $0x6c8] sm:$0xff] }
0x1b08   : > { %7058 = vmatprep.subr.mxu1 %v5478_v40  ;;  %7096 = vmatprep.subr.mxu0 %v5510_v41  ;;  %v9433_v40 = vpop.f32.mrf.mxu0  ;;  %v5484_v41 = vld [vmem:[%s8521_s9 + $0x500] sm:$0xff]  ;;  %v5557_v50 = vld [vmem:[%s8521_s9 + $0x748] sm:$0xff] }
0x1b09   : > { %7059 = vmatpush3.msra.mxu1 %v5462_v30  ;;  %7097 = vmatpush3.msra.mxu0 %v5494_v32  ;;  %v5300_v30 = vmax.f32 %v5051_v25, 0.0  ;;  %v5302_v32 = vmax.f32 %v5128_v26, 0.0  ;;  %v5539_v25 = vld [vmem:[%s8521_s9 + $0x6b8] sm:$0xff] }
0x1b0a   : > { %7060 = vmatprep.subr.mxu1 %v5477_v35  ;;  %7098 = vmatprep.subr.mxu0 %v5509_v42  ;;  %v9440_v35 = vrot.slane %v9217_v12, %v4612_v2  ;;  %v5206_v42 = vpop.f32.mrf.mxu1  ;;  %v5134_v2 = vadd.f32 %v5133_v59, %v4633_v14  ;;  %v5560_v59 = vld [vmem:[%s8521_s9 + $0x760] sm:$0xff]  ;;  %v5574_v14 = vld [vmem:[%s8521_s9 + $0x7d0] sm:$0xff]  ;;  %v5571_v26 = vld [vmem:[%s8521_s9 + $0x7b8] sm:$0xff] }
0x1b0b   : > { %7061 = vmatpush3.msra.mxu1 %v5461_v13  ;;  %7099 = vmatpush3.msra.mxu0 %v5493_v44  ;;  %v9447_v13 = vrot.slane %v9217_v12, %v4620_v3  ;;  %v5057_v44 = vadd.f32 %v9401_v5, %v4625_v11  ;;  %v5578_v12 = vld [vmem:[%s8521_s9 + $0x7f0] sm:$0xff]  ;;  %v5544_v5 = vld [vmem:[%s8521_s9 + $0x6e0] sm:$0xff] }
0x1b0c   : > { %7062 = vmatprep.subr.mxu1 %v5476_v46  ;;  %7100 = vmatprep.subr.mxu0 %v5508_v49  ;;  %v5317_v46 = vmax.f32 %v5059_v29, 0.0  ;;  %v5319_v49 = vmax.f32 %v5136_v61, 0.0  ;;  %v5207_v3 = vadd.f32 %v5206_v42, %v9440_v35  ;;  %v5542_v11 = vld [vmem:[%s8521_s9 + $0x6d0] sm:$0xff]  ;;  %v5210_v42 = vpop.f32.mrf.mxu1 }
0x1b0d   : > { %7063 = vmatpush3.msra.mxu1 %v5460_v51  ;;  %7101 = vmatpush3.msra.mxu0 %v5492_v37  ;;  %v5283_v51 = vpop.f32.mrf.mxu0  ;;  %v5531_v37 = vld [vmem:[%s8521_s9 + $0x678] sm:$0xff]  ;;  %v5522_v29 = vld [vmem:[%s8521_s9 + $0x630] sm:$0xff] }
0x1b0e   : > { %7064 = vmatprep.subr.mxu1 %v5475_v53  ;;  %7102 = vmatprep.subr.mxu0 %v5507_v48  ;;  %v5563_v53 = vld [vmem:[%s8521_s9 + $0x778] sm:$0xff]  ;;  %v5530_v48 = vld [vmem:[%s8521_s9 + $0x670] sm:$0xff] }
0x1b0f   : > { %7065 = vmatpush3.msra.mxu1 %v5459_v23  ;;  %7103 = vmatpush3.msra.mxu0 %v5491_v56  ;;  %v5562_v23 = vld [vmem:[%s8521_s9 + $0x770] sm:$0xff]  ;;  %v5284_v56 = vadd.f32 %v5283_v51, %v9447_v13  ;;  %v5567_v51 = vld [vmem:[%s8521_s9 + $0x798] sm:$0xff] }
0x1b10   : > { %7066 = vmatprep.subr.mxu1 %v5474_v60  ;;  %7104 = vmatprep.subr.mxu0 %v5506_v62  ;;  %v5316_v60 = vmax.f32 %v5057_v44, 0.0  ;;  %v5318_v62 = vmax.f32 %v5134_v2, 0.0  ;;  %v5554_v61 = vld [vmem:[%s8521_s9 + $0x730] sm:$0xff]  ;;  %v5287_v44 = vpop.f32.mrf.mxu0  ;;  %v5520_v2 = vld [vmem:[%s8521_s9 + $0x620] sm:$0xff] }
0x1b11   : > { %7067 = vmatpush3.msra.mxu1 %v5458_v7  ;;  %7105 = vmatpush3.msra.mxu0 %v5490_v4  ;;  %v5545_v7 = vld [vmem:[%s8521_s9 + $0x6e8] sm:$0xff] }
0x1b12   : > { %7068 = vmatprep.subr.mxu1 %v5473_v39  ;;  %7106 = vmatprep.subr.mxu0 %v5505_v0  ;;  %v5577_v4 = vld [vmem:[%s8521_s9 + $0x7e8] sm:$0xff]  ;;  %v5305_v0 = vmax.f32 %v5207_v3, 0.0  ;;  %v5212_v3 = vpop.f32.mrf.mxu1 }
0x1b13   : > { %7069 = vmatpush3.msra.mxu1 %v5457_v58  ;;  %7107 = vmatpush3.msra.mxu0 %v5489_v1  ;;  %v5529_v39 = vld [vmem:[%s8521_s9 + $0x668] sm:$0xff]  ;;  %v5307_v1 = vmax.f32 %v5284_v56, 0.0  ;;  %v5550_v56 = vld [vmem:[%s8521_s9 + $0x710] sm:$0xff] }
0x1b14   : > { %7070 = vmatprep.subr.mxu1 %v5472_v45  ;;  %7108 = vmatprep.subr.mxu0 %v5504_v6  ;;  %v5561_v58 = vld [vmem:[%s8521_s9 + $0x768] sm:$0xff]  ;;  %v5576_v45 = vld [vmem:[%s8521_s9 + $0x7e0] sm:$0xff] }
0x1b15   : > { %7071 = vmatpush3.msra.mxu1 %v5456_v38  ;;  %7109 = vmatpush3.msra.mxu0 %v5488_v43  ;;  %v5528_v6 = vld [vmem:[%s8521_s9 + $0x660] sm:$0xff]  ;;  %v5543_v38 = vld [vmem:[%s8521_s9 + $0x6d8] sm:$0xff] }
0x1b16   : > { %7072 = vmatprep.subr.mxu1 %v5471_v9  ;;  %7110 = vmatprep.subr.mxu0 %v5503_v10  ;;  %v5575_v43 = vld [vmem:[%s8521_s9 + $0x7d8] sm:$0xff] }
0x1b17   : > { %7073 = vmatpush3.msra.mxu1 %v5455_v15  ;;  %7111 = vmatpush3.msra.mxu0 %v5487_v16  ;;  %v5527_v9 = vld [vmem:[%s8521_s9 + $0x658] sm:$0xff]  ;;  %v5526_v15 = vld [vmem:[%s8521_s9 + $0x650] sm:$0xff] }
0x1b18   : > { %7074 = vmatprep.subr.mxu1 %v5470_v21  ;;  %7112 = vmatprep.subr.mxu0 %v5502_v22  ;;  %v5559_v10 = vld [vmem:[%s8521_s9 + $0x758] sm:$0xff]  ;;  %v5558_v16 = vld [vmem:[%s8521_s9 + $0x750] sm:$0xff]  ;;  %v5573_v21 = vld [vmem:[%s8521_s9 + $0x7c8] sm:$0xff] }
0x1b19   : > { %7075 = vmatpush3.msra.mxu1 %v5454_v31  ;;  %7113 = vmatpush3.msra.mxu0 %v5486_v34  ;;  %v5525_v22 = vld [vmem:[%s8521_s9 + $0x648] sm:$0xff]  ;;  %v5540_v31 = vld [vmem:[%s8521_s9 + $0x6c0] sm:$0xff] }
0x1b1a   : > { %7076 = vmatprep.subr.mxu1 %v5469_v54  ;;  %7114 = vmatprep.subr.mxu0 %v5501_v24  ;;  %v5572_v34 = vld [vmem:[%s8521_s9 + $0x7c0] sm:$0xff] }
0x1b1b   : > { %7077 = vmatpush3.msra.mxu1 %v5453_v27  ;;  %7115 = vmatpush3.msra.mxu0 %v5485_v28  ;;  %v5524_v54 = vld [vmem:[%s8521_s9 + $0x640] sm:$0xff]  ;;  %v5523_v27 = vld [vmem:[%s8521_s9 + $0x638] sm:$0xff] }
0x1b1c   : > { %7078 = vmatprep.subr.mxu1 %v5468_v52  ;;  %7116 = vmatprep.subr.mxu0 %v5500_v19  ;;  %v5556_v24 = vld [vmem:[%s8521_s9 + $0x740] sm:$0xff]  ;;  %v5555_v28 = vld [vmem:[%s8521_s9 + $0x738] sm:$0xff]  ;;  %v5538_v52 = vld [vmem:[%s8521_s9 + $0x6b0] sm:$0xff] }
0x1b1d   : > { %7079 = vmatpush3.msra.mxu1 %v5452_v55  ;;  %7117 = vmatpush3.msra.mxu0 %v5484_v41  ;;  %v5570_v19 = vld [vmem:[%s8521_s9 + $0x7b0] sm:$0xff]  ;;  %v5537_v55 = vld [vmem:[%s8521_s9 + $0x6a8] sm:$0xff] }
0x1b1e   : > { %5952 = vmatmul.mubr.f32.vlgmr.msra.gmra.mxu1 %v5300_v30  ;;  %6027 = vmatmul.mubr.f32.vlgmr.msra.gmra.mxu0 %v5302_v32  ;;  %v5569_v41 = vld [vmem:[%s8521_s9 + $0x7a8] sm:$0xff] }
0x1b1f   : > { %7124 = vmatprep.subr.mxu1 %v5547_v57  ;;  %7162 = vmatprep.subr.mxu0 %v5579_v63  ;;  %v5521_v30 = vld [vmem:[%s8521_s9 + $0x628] sm:$0xff]  ;;  %v5536_v57 = vld [vmem:[%s8521_s9 + $0x6a0] sm:$0xff] }
0x1b20   : > { %5956 = vmatprep.mubr.f32.mxu1 %v5317_v46  ;;  %6031 = vmatprep.mubr.f32.mxu0 %v5319_v49  ;;  %v5553_v32 = vld [vmem:[%s8521_s9 + $0x728] sm:$0xff]  ;;  %v5568_v63 = vld [vmem:[%s8521_s9 + $0x7a0] sm:$0xff]  ;;  %v5535_v49 = vld [vmem:[%s8521_s9 + $0x698] sm:$0xff] }
0x1b21   : > { %7125 = vmatpush3.msra.mxu1 %v5531_v37  ;;  %7163 = vmatpush3.msra.mxu0 %v5563_v53  ;;  %v5552_v46 = vld [vmem:[%s8521_s9 + $0x720] sm:$0xff]  ;;  %v5519_v37 = vld [vmem:[%s8521_s9 + $0x618] sm:$0xff] }
0x1b22   : > { %7126 = vmatprep.subr.mxu1 %v5546_v17  ;;  %7164 = vmatprep.subr.mxu0 %v5578_v12  ;;  %v5551_v53 = vld [vmem:[%s8521_s9 + $0x718] sm:$0xff]  ;;  %v5534_v17 = vld [vmem:[%s8521_s9 + $0x690] sm:$0xff] }
0x1b23   : > { %7127 = vmatpush3.msra.mxu1 %v5530_v48  ;;  %7165 = vmatpush3.msra.mxu0 %v5562_v23  ;;  %v5566_v12 = vld [vmem:[%s8521_s9 + $0x790] sm:$0xff]  ;;  %v5289_v48 = vpop.f32.mrf.mxu0 }
0x1b24   : > { %5957 = vmatmul.mubr.f32.gmra.mxu1 %v5316_v60  ;;  %6032 = vmatmul.mubr.f32.gmra.mxu0 %v5318_v62  ;;  %v5518_v23 = vld [vmem:[%s8521_s9 + $0x610] sm:$0xff]  ;;  %v5533_v60 = vld [vmem:[%s8521_s9 + $0x688] sm:$0xff] }
0x1b25   : > { %7128 = vmatprep.subr.mxu1 %v5545_v7  ;;  %7166 = vmatprep.subr.mxu0 %v5577_v4  ;;  %v5565_v62 = vld [vmem:[%s8521_s9 + $0x788] sm:$0xff]  ;;  %v5205_v7 = vadd.f32 %v9427_v20, %v9222_v8  ;;  %v5282_v4 = vadd.f32 %v9433_v40, %v9227_v33 }
0x1b26   : > { %7129 = vmatpush3.msra.mxu1 %v5529_v39  ;;  %6101 = vmatprep.mubr.f32.mxu1 %v5305_v0  ;;  %v5517_v39 = vld [vmem:[%s8521_s9 + $0x608] sm:$0xff] }
0x1b27   : > { %7167 = vmatpush3.msra.mxu0 %v5561_v58  ;;  %6176 = vmatprep.mubr.f32.mxu0 %v5307_v1  ;;  %v5549_v0 = vld [vmem:[%s8521_s9 + $0x708] sm:$0xff]  ;;  %v5213_v58 = vadd.f32 %v5212_v3, %v9440_v35  ;;  %v5290_v1 = vadd.f32 %v5289_v48, %v9447_v13  ;;  %v5304_v20 = vmax.f32 %v5205_v7, 0.0  ;;  %v5306_v40 = vmax.f32 %v5282_v4, 0.0 }
0x1b28   : > { %7130 = vmatprep.subr.mxu1 %v5544_v5  ;;  %7168 = vmatprep.subr.mxu0 %v5576_v45  ;;  %v5532_v5 = vld [vmem:[%s8521_s9 + $0x680] sm:$0xff] }
0x1b29   : > { %7131 = vmatpush3.msra.mxu1 %v5528_v6  ;;  %7169 = vmatpush3.msra.mxu0 %v5560_v59  ;;  %v5564_v45 = vld [vmem:[%s8521_s9 + $0x780] sm:$0xff]  ;;  %v5321_v35 = vmax.f32 %v5213_v58, 0.0  ;;  %v5323_v13 = vmax.f32 %v5290_v1, 0.0 }
0x1b2a   : > { %7132 = vmatprep.subr.mxu1 %v5543_v38  ;;  %7170 = vmatprep.subr.mxu0 %v5575_v43  ;;  %v5516_v6 = vld [vmem:[%s8521_s9 + $0x600] sm:$0xff]  ;;  %v5211_v38 = vadd.f32 %v5210_v42, %v9222_v8  ;;  %v5288_v43 = vadd.f32 %v5287_v44, %v9227_v33 }
0x1b2b   : > { %7133 = vmatpush3.msra.mxu1 %v5527_v9  ;;  %7171 = vmatpush3.msra.mxu0 %v5559_v10  ;;  %v5548_v59 = vld [vmem:[%s8521_s9 + $0x700] sm:$0xff] }
0x1b2c   : > { %7134 = vmatprep.subr.mxu1 %v5542_v11  ;;  %7172 = vmatprep.subr.mxu0 %v5574_v14  ;;  %v5320_v9 = vmax.f32 %v5211_v38, 0.0  ;;  %v5322_v10 = vmax.f32 %v5288_v43, 0.0 }
0x1b2d   : > { %7135 = vmatpush3.msra.mxu1 %v5526_v15  ;;  %7173 = vmatpush3.msra.mxu0 %v5558_v16 }
0x1b2e   : > { %7136 = vmatprep.subr.mxu1 %v5541_v18  ;;  %7174 = vmatprep.subr.mxu0 %v5573_v21 }
0x1b2f   : > { %7137 = vmatpush3.msra.mxu1 %v5525_v22  ;;  %7175 = vmatpush3.msra.mxu0 %v5557_v50 }
0x1b30   : > { %7138 = vmatprep.subr.mxu1 %v5540_v31  ;;  %7176 = vmatprep.subr.mxu0 %v5572_v34 }
0x1b31   : > { %7139 = vmatpush3.msra.mxu1 %v5524_v54  ;;  %7177 = vmatpush3.msra.mxu0 %v5556_v24 }
0x1b32   : > { %7140 = vmatprep.subr.mxu1 %v5539_v25  ;;  %7178 = vmatprep.subr.mxu0 %v5571_v26 }
0x1b33   : > { %7141 = vmatpush3.msra.mxu1 %v5523_v27  ;;  %7179 = vmatpush3.msra.mxu0 %v5555_v28  ;;  %v6767_v27 = vld [vmem:[%s9657_s22] ss:$0 sm:$0xff] }
0x1b34   : > { %7142 = vmatprep.subr.mxu1 %v5538_v52  ;;  %7180 = vmatprep.subr.mxu0 %v5570_v19 }
0x1b35   : > { %7143 = vmatpush3.msra.mxu1 %v5522_v29  ;;  %7181 = vmatpush3.msra.mxu0 %v5554_v61 }
0x1b36   : > { %7144 = vmatprep.subr.mxu1 %v5537_v55  ;;  %7182 = vmatprep.subr.mxu0 %v5569_v41 }
0x1b37   : > { %7145 = vmatpush3.msra.mxu1 %v5521_v30  ;;  %7183 = vmatpush3.msra.mxu0 %v5553_v32 }
0x1b38   : > { %7146 = vmatprep.subr.mxu1 %v5536_v57  ;;  %7184 = vmatprep.subr.mxu0 %v5568_v63 }
0x1b39   : > { %7147 = vmatpush3.msra.mxu1 %v5520_v2  ;;  %7185 = vmatpush3.msra.mxu0 %v5552_v46 }
0x1b3a   : > { %7148 = vmatprep.subr.mxu1 %v5535_v49  ;;  %7186 = vmatprep.subr.mxu0 %v5567_v51 }
0x1b3b   : > { %7149 = vmatpush3.msra.mxu1 %v5519_v37  ;;  %7187 = vmatpush3.msra.mxu0 %v5551_v53 }
0x1b3c   : > { %7150 = vmatprep.subr.mxu1 %v5534_v17  ;;  %7188 = vmatprep.subr.mxu0 %v5566_v12 }
0x1b3d   : > { %7151 = vmatpush3.msra.mxu1 %v5518_v23  ;;  %7189 = vmatpush3.msra.mxu0 %v5550_v56 }
0x1b3e   : > { %7152 = vmatprep.subr.mxu1 %v5533_v60  ;;  %7190 = vmatprep.subr.mxu0 %v5565_v62 }
0x1b3f   : > { %7153 = vmatpush3.msra.mxu1 %v5517_v39  ;;  %7191 = vmatpush3.msra.mxu0 %v5549_v0 }
0x1b40   : > { %7154 = vmatprep.subr.mxu1 %v5532_v5  ;;  %7192 = vmatprep.subr.mxu0 %v5564_v45 }
0x1b41   : > { %7155 = vmatpush3.msra.mxu1 %v5516_v6  ;;  %7193 = vmatpush3.msra.mxu0 %v5548_v59 }
0x1b42   : > { %6102 = vmatmul.mubr.f32.vlgmr.msra.gmra.mxu1 %v5304_v20  ;;  %6177 = vmatmul.mubr.f32.vlgmr.msra.gmra.mxu0 %v5306_v40 }
0x1b43   : > { %6106 = vmatprep.mubr.f32.mxu1 %v5321_v35  ;;  %6181 = vmatprep.mubr.f32.mxu0 %v5323_v13 }
0x1b46   : > { %6107 = vmatmul.mubr.f32.gmra.mxu1 %v5320_v9  ;;  %6182 = vmatmul.mubr.f32.gmra.mxu0 %v5322_v10 }
0x1b97   : > { %v6928_v11 = vpop.f32.mrf.mxu1  ;;  %v6966_v14 = vpop.f32.mrf.mxu0 }
0x1b99   : > { %v6929_v8 = vpop.f32.mrf.mxu1  ;;  %v6967_v15 = vpop.f32.mrf.mxu0 }
0x1b9a   : > { %v6930_v26 = vadd.f32 %v6929_v8, %v6928_v11  ;;  %v6968_v41 = vadd.f32 %v6967_v15, %v6966_v14 }
0x1b9c   : > { %v5654_v29 = vadd.f32 %v6930_v26, %v6767_v27 }
0x1b9d   : > { %v6931_v33 = vpop.f32.mrf.mxu1  ;;  %v6969_v16 = vpop.f32.mrf.mxu0 }
0x1b9e   : > { %v5729_v57 = vadd.f32 %v6968_v41, %v5654_v29 }
0x1b9f   : > { %v6932_v18 = vpop.f32.mrf.mxu1  ;;  %v6970_v21 = vpop.f32.mrf.mxu0 }
0x1ba0   : > { %v6933_v61 = vadd.f32 %v6932_v18, %v6931_v33  ;;  %v6971_v44 = vadd.f32 %v6970_v21, %v6969_v16 }
0x1ba2   : > { %v5659_v63 = vadd.f32 %v6933_v61, %v6767_v27 }
0x1ba4   : > { %v5734_v51 = vadd.f32 %v6971_v44, %v5659_v63 }
0x1bba   : > { %v7004_v22 = vpop.f32.mrf.mxu1  ;;  %v7042_v50 = vpop.f32.mrf.mxu0 }
0x1bbc   : > { %v7005_v31 = vpop.f32.mrf.mxu1  ;;  %v7043_v34 = vpop.f32.mrf.mxu0 }
0x1bbd   : > { %v7006_v30 = vadd.f32 %v7005_v31, %v7004_v22  ;;  %v7044_v37 = vadd.f32 %v7043_v34, %v7042_v50 }
0x1bbf   : > { %v5804_v2 = vadd.f32 %v7006_v30, %v5729_v57  ;;  %v6771_v30 = vld [vmem:[%s8539_s4 + $0x2] ss:$0 sm:$0xff] }
0x1bc0   : > { %v7007_v54 = vpop.f32.mrf.mxu1  ;;  %v7045_v24 = vpop.f32.mrf.mxu0 }
0x1bc1   : > { %v5879_v12 = vadd.f32 %v7044_v37, %v5804_v2 }
0x1bc2   : > { %v7008_v25 = vpop.f32.mrf.mxu1  ;;  %v7046_v28 = vpop.f32.mrf.mxu0 }
0x1bc3   : > { %v7009_v46 = vadd.f32 %v7008_v25, %v7007_v54  ;;  %v7047_v23 = vadd.f32 %v7046_v28, %v7045_v24 }
0x1bc5   : > { %v5809_v3 = vadd.f32 %v7009_v46, %v5734_v51 }
0x1bc7   : > { %v5884_v4 = vadd.f32 %v7047_v23, %v5809_v3 }
0x1bde   : > { %v7080_v52 = vpop.f32.mrf.mxu1  ;;  %v7118_v19 = vpop.f32.mrf.mxu0 }
0x1be0   : > { %v7081_v55 = vpop.f32.mrf.mxu1  ;;  %v7119_v32 = vpop.f32.mrf.mxu0 }
0x1be1   : > { %v7082_v53 = vadd.f32 %v7081_v55, %v7080_v52  ;;  %v7120_v39 = vadd.f32 %v7119_v32, %v7118_v19  ;;  %v6769_v55 = vld [vmem:[%s8534_s3 + $0x2] ss:$0 sm:$0xff] }
0x1be3   : > { %v5954_v56 = vadd.f32 %v7082_v53, %v5879_v12 }
0x1be4   : > { %v7083_v42 = vpop.f32.mrf.mxu1  ;;  %v7121_v49 = vpop.f32.mrf.mxu0 }
0x1be5   : > { %v6029_v1 = vadd.f32 %v7120_v39, %v5954_v56 }
0x1be6   : > { %v7084_v17 = vpop.f32.mrf.mxu1  ;;  %v7122_v48 = vpop.f32.mrf.mxu0 }
0x1be7   : > { %v7085_v60 = vadd.f32 %v7084_v17, %v7083_v42  ;;  %v7123_v20 = vadd.f32 %v7122_v48, %v7121_v49 }
0x1be9   : > { %v5959_v5 = vadd.f32 %v7085_v60, %v5884_v4 }
0x1beb   : > { %v6034_v13 = vadd.f32 %v7123_v20, %v5959_v5 }
0x1c02   : > { %v7156_v62 = vpop.f32.mrf.mxu1  ;;  %v7194_v7 = vpop.f32.mrf.mxu0 }
0x1c04   : > { %v7157_v0 = vpop.f32.mrf.mxu1  ;;  %v7195_v58 = vpop.f32.mrf.mxu0 }
0x1c05   : > { %v7158_v45 = vadd.f32 %v7157_v0, %v7156_v62  ;;  %v7196_v38 = vadd.f32 %v7195_v58, %v7194_v7 }
0x1c06   : > { %v7159_v6 = vpop.f32.mrf.mxu1  ;;  %v7197_v59 = vpop.f32.mrf.mxu0 }
0x1c07   : > { %v6104_v40 = vadd.f32 %v7158_v45, %v6029_v1 }
0x1c08   : > { %v7160_v43 = vpop.f32.mrf.mxu1  ;;  %v7198_v35 = vpop.f32.mrf.mxu0 }
0x1c09   : > { %v6179_v9 = vadd.f32 %v7196_v38, %v6104_v40  ;;  %v7161_v10 = vadd.f32 %v7160_v43, %v7159_v6  ;;  %v7199_v14 = vadd.f32 %v7198_v35, %v7197_v59 }
0x1c0b   : > { %v6109_v11 = vadd.f32 %v7161_v10, %v6034_v13  ;;  %v6187_v8 = vadd.f32 %v6179_v9, %v9052_v36 }
0x1c0d   : > { %v6184_v15 = vadd.f32 %v7199_v14, %v6109_v11  ;;  %v6189_v33 = vsel %vm1186_vm1, %v6187_v8, 0.0 }
0x1c0e   : > { %6190 = vadd.xlane.f32.xlu1 %v6189_v33 }
0x1c0f   : > { %v6188_v16 = vadd.f32 %v6184_v15, %v9064_v47 }
0x1c11   : > { %v6192_v18 = vsel %vm1186_vm1, %v6188_v16, 0.0 }
0x1c12   : > { %6193 = vadd.xlane.f32.xlu0 %v6192_v18 }
0x1c97   : > { %v6191_v21 = vpop.xlane.xlu1 %6190 }
0x1c98   : > { %v6195_v22 = vmul.f32 0.03125, %v6191_v21 }
0x1c9a   : > { %v6197_v50 = vsub.f32 %v6187_v8, %v6195_v22 }
0x1c9b   : > { %v6194_v31 = vpop.xlane.xlu0 %6193 }
0x1c9c   : > { %v6196_v34 = vmul.f32 0.03125, %v6194_v31  ;;  %v6199_v54 = vmul.f32 %v6197_v50, %v6197_v50 }
0x1c9e   : > { %v6198_v24 = vsub.f32 %v6188_v16, %v6196_v34  ;;  %v6201_v25 = vsel %vm1186_vm1, %v6199_v54, 0.0 }
0x1c9f   : > { %6202 = vadd.xlane.f32.xlu1 %v6201_v25 }
0x1ca0   : > { %v6200_v36 = vmul.f32 %v6198_v24, %v6198_v24 }
0x1ca2   : > { %v6204_v26 = vsel %vm1186_vm1, %v6200_v36, 0.0 }
0x1ca3   : > { %6205 = vadd.xlane.f32.xlu0 %v6204_v26 }
0x1d28   : > { %v6203_v47 = vpop.xlane.xlu1 %6202 }
0x1d29   : > { %v6207_v27 = vmul.f32 0.03125, %v6203_v47 }
0x1d2b   : > { %v6209_v28 = vadd.f32 1e-05, %v6207_v27 }
0x1d2c   : > { %v6206_v52 = vpop.xlane.xlu0 %6205 }
0x1d2d   : > { %7618 = vrsqrt.f32 %v6209_v28  ;;  %v6208_v19 = vmul.f32 0.03125, %v6206_v52 }
0x1d2f   : > { %v6210_v29 = vadd.f32 1e-05, %v6208_v19 }
0x1d31   : > { %7620 = vrsqrt.f32 %v6210_v29 }
0x1d3a   : > { %v7619_v61 = vpop.eup %7618 }
0x1d3b   : > { %v6213_v41 = vmul.f32 %v7619_v61, %v6197_v50 }
0x1d3d   : > { %v6223_v32 = vmul.f32 %v6769_v55, %v6213_v41 }
0x1d3e   : > { %v7621_v57 = vpop.eup %7620 }
0x1d3f   : > { %v6233_v63 = vadd.f32 %v6771_v30, %v6223_v32  ;;  %v6214_v42 = vmul.f32 %v7621_v57, %v6198_v24 }
0x1d41   : > { %6235 = vst.msk [vmem:[%s9647_s1] sm:$0xff] %vm1186_vm1, %v6233_v63  ;;  %v6224_v44 = vmul.f32 %v6769_v55, %v6214_v42 }
0x1d43   : > { %v6234_v2 = vadd.f32 %v6771_v30, %v6224_v44 }
0x1d45   : > { %6236 = vst.msk [vmem:[%s9647_s1 + $0x8] sm:$0xff] %vm1186_vm1, %v6234_v2 }
0x1d46 PF: > { %s52_s19 = sadd.s32 1, %s8064_s19   ;;  %s9658_s27 = sld [smem:[#allocation32_spill]] }
0x1d47   : > { %p49_p7 = scmp.ge.s32.totalorder %s52_s19, 4   ;;  %s9659_s28 = sld [smem:[#allocation33_spill]] }
0x1d48   : > { %s9660_s29 = sld [smem:[#allocation37_spill]]  ;;  %s9662_s30 = smov %s8060_s0 }
0x1d49   : > { %s9661_s4 = sld [smem:[#allocation35_spill]] }
0x1d4b   :  { %51 = sbr.rel (!%p49_p7) target bundleno = 34 (0x22), region = 309 }
0x1d4f   : > { %s9663_s0 = smov %s9661_s4 }
0x1d50   :  { %6259 = vsyncpa [#allocation3], 1 }
0x1d51   :  { %6261 = vsyncpa [#allocation3 + $0x1], 1 }
0x1d52   :  { %6262 = vsyncpa [#allocation5], 1 }
0x1d53   :  { %6264 = vsyncpa [#allocation5 + $0x1], 1 }
0x1d54   :  { %6265 = vsyncpa [#allocation8], 1 }
0x1d55   :  { %6267 = vsyncpa [#allocation8 + $0x1], 1 }
0x1d56   :  { %6268 = vsyncpa [#allocation11], 1 }
0x1d57   :  { %6270 = vsyncpa [#allocation11 + $0x1], 1 }
0x1d58   :  { %6271 = vsyncpa [#allocation14], 1 }
0x1d59   :  { %6273 = vsyncpa [#allocation14 + $0x1], 1 }
0x1d5a   :  { %6274 = vsyncpa [#allocation17], 1 }
0x1d5b   :  { %6276 = vsyncpa [#allocation17 + $0x1], 1 }
0x1d5c   :  { %6277 = vsyncpa [#allocation20], 1 }
0x1d5d   :  { %6279 = vsyncpa [#allocation20 + $0x1], 1 }
0x1d5e   :  { %6280 = vsyncpa [#allocation23], 1 }
0x1d5f   :  { %6282 = vsyncpa [#allocation23 + $0x1], 1 }

</bundles_post_ra>
